<compile_context>
chip_gen: v7x
topology: tpu7x:2x2x1
jax: 0.10.0
libtpu: 0.0.40
codegen_flags: <defaults>
</compile_context>

<pallas_src>
import jax
import jax.numpy as jnp
from jax.experimental import pallas as pl
from jax.experimental.pallas import tpu as pltpu

# ----------------------------------------------------------------------------
# Small model configuration (consistent with the module's __init__ defaults,
# scaled down: growth_rate=8, block_config=(2,2), num_init_features=16).
# ----------------------------------------------------------------------------
GROWTH_RATE = 8
BLOCK_CONFIG = (2, 2)
NUM_INIT_FEATURES = 16
BN_SIZE = 2
NUM_CLASSES = 2
BN_EPS = 1e-5

_MAX_ROW_TILE = 256  # rows per grid step; tiny model -> every block fits VMEM


def _row_tile(m):
    """Largest row tile (multiple of 8, capped) that divides m exactly."""
    for t in (_MAX_ROW_TILE, 128, 64, 32, 16, 8):
        if m % t == 0:
            return t
    return m


# ----------------------------------------------------------------------------
# Fused (BN+ReLU) -> matmul -> (BN+ReLU) kernel.
#   pre  = (scale, shift) with shape (1, K): applied to the input slab.
#   post = (scale, shift) with shape (1, N): applied to the matmul output.
# Weights are bf16; activations are f32; MXU accumulates in f32.
# ----------------------------------------------------------------------------
def fused_matmul(x, w, pre=None, post=None):
    m, k = x.shape
    kw_, n = w.shape
    assert k == kw_
    tm = _row_tile(m)
    grid = (m // tm,)
    has_pre = pre is not None
    has_post = post is not None

    operands = [x]
    in_specs = [pl.BlockSpec((tm, k), lambda i: (i, 0))]
    if has_pre:
        operands += [pre[0], pre[1]]
        in_specs += [pl.BlockSpec((1, k), lambda i: (0, 0)),
                     pl.BlockSpec((1, k), lambda i: (0, 0))]
    operands.append(w)
    in_specs.append(pl.BlockSpec((k, n), lambda i: (0, 0)))
    if has_post:
        operands += [post[0], post[1]]
        in_specs += [pl.BlockSpec((1, n), lambda i: (0, 0)),
                     pl.BlockSpec((1, n), lambda i: (0, 0))]

    def kernel(*refs):
        it = iter(refs)
        x_ref = next(it)
        if has_pre:
            ps_ref, pt_ref = next(it), next(it)
        w_ref = next(it)
        if has_post:
            qs_ref, qt_ref = next(it), next(it)
        o_ref = next(it)

        a = x_ref[...]
        if has_pre:                                   # BN + ReLU prologue (f32)
            a = jnp.maximum(a * ps_ref[...] + pt_ref[...], 0.0)
        y = jnp.dot(a.astype(w_ref.dtype), w_ref[...],
                    preferred_element_type=jnp.float32)
        if has_post:                                  # BN + ReLU epilogue (f32)
            y = jnp.maximum(y * qs_ref[...] + qt_ref[...], 0.0)
        o_ref[...] = y.astype(o_ref.dtype)

    return pl.pallas_call(
        kernel,
        out_shape=jax.ShapeDtypeStruct((m, n), jnp.float32),
        grid=grid,
        in_specs=in_specs,
        out_specs=pl.BlockSpec((tm, n), lambda i: (i, 0)),
        compiler_params=pltpu.CompilerParams(
            dimension_semantics=("parallel",)),
    )(*operands)


# ----------------------------------------------------------------------------
# Pooling.  The padded input is split ONCE into its 2x2 stride phases in JAX
# (total ~1x data, not k*k x), and a single Pallas kernel reduces the k*k taps
# with static, unstrided in-kernel slices of the phase refs.
# ----------------------------------------------------------------------------
def _phase_split(x):
    return (x[:, 0::2, 0::2, :], x[:, 0::2, 1::2, :],
            x[:, 1::2, 0::2, :], x[:, 1::2, 1::2, :])


def _maxpool_kernel(p00, p01, p10, p11, o_ref):
    n, ho, wo, c = o_ref.shape
    phases = ((p00, p01), (p10, p11))
    res = None
    for dy in range(3):
        a, oy = dy % 2, dy // 2
        for dx in range(3):
            b, ox = dx % 2, dx // 2
            tap = phases[a][b][:, oy:oy + ho, ox:ox + wo, :]
            res = tap if res is None else jnp.maximum(res, tap)
    o_ref[...] = res


def maxpool_3x3_s2_p1(x):
    """MaxPool2d(kernel_size=3, stride=2, padding=1) on NHWC."""
    n, h, w, c = x.shape
    assert h % 2 == 0 and w % 2 == 0
    ho, wo = (h - 1) // 2 + 1, (w - 1) // 2 + 1
    neg = -3.0e38  # input is post-ReLU (>= 0); padding never wins the max
    xp = jnp.pad(x, ((0, 0), (1, 1), (1, 1), (0, 0)), constant_values=neg)
    phases = _phase_split(xp)                     # 4 tensors, ~1x data total
    in_specs = [pl.BlockSpec(p.shape, lambda i: (0, 0, 0, 0)) for p in phases]
    return pl.pallas_call(
        _maxpool_kernel,
        out_shape=jax.ShapeDtypeStruct((n, ho, wo, c), jnp.float32),
        grid=(1,),
        in_specs=in_specs,
        out_specs=pl.BlockSpec((n, ho, wo, c), lambda i: (0, 0, 0, 0)),
    )(*phases)


def _avgpool_kernel(p00, p01, p10, p11, o_ref):
    o_ref[...] = 0.25 * (p00[...] + p01[...] + p10[...] + p11[...])


def avgpool_2x2_s2(x):
    """AvgPool2d(kernel_size=2, stride=2) on NHWC (no padding -> plain mean)."""
    n, h, w, c = x.shape
    assert h % 2 == 0 and w % 2 == 0
    ho, wo = h // 2, w // 2
    phases = _phase_split(x)                      # the 4 taps, exactly
    in_specs = [pl.BlockSpec(p.shape, lambda i: (0, 0, 0, 0)) for p in phases]
    return pl.pallas_call(
        _avgpool_kernel,
        out_shape=jax.ShapeDtypeStruct((n, ho, wo, c), jnp.float32),
        grid=(1,),
        in_specs=in_specs,
        out_specs=pl.BlockSpec((n, ho, wo, c), lambda i: (0, 0, 0, 0)),
    )(*phases)


# ----------------------------------------------------------------------------
# Fused tail: BN_final + ReLU -> AdaptiveAvgPool2d((1,1)) -> Linear (+bias).
# Reduces over axis=1 of the natural (N, H*W, C) layout (no transpose).
# ----------------------------------------------------------------------------
def _tail_kernel(x_ref, s_ref, t_ref, w_ref, b_ref, o_ref):
    y = jnp.maximum(x_ref[...] * s_ref[...] + t_ref[...], 0.0)   # (N, HW, C) f32
    pooled = jnp.mean(y, axis=1)                                 # (N, C)
    o_ref[...] = (jnp.dot(pooled.astype(w_ref.dtype), w_ref[...],
                          preferred_element_type=jnp.float32) + b_ref[...])


def tail_bn_pool_fc(x, scale, shift, fc_w, fc_b):
    n, h, w, c = x.shape
    x3 = x.reshape(n, h * w, c)
    return pl.pallas_call(
        _tail_kernel,
        out_shape=jax.ShapeDtypeStruct((n, NUM_CLASSES), jnp.float32),
        grid=(1,),
        in_specs=[pl.BlockSpec((n, h * w, c), lambda i: (0, 0, 0)),
                  pl.BlockSpec((1, 1, c), lambda i: (0, 0, 0)),
                  pl.BlockSpec((1, 1, c), lambda i: (0, 0, 0)),
                  pl.BlockSpec((c, NUM_CLASSES), lambda i: (0, 0)),
                  pl.BlockSpec((1, NUM_CLASSES), lambda i: (0, 0))],
        out_specs=pl.BlockSpec((n, NUM_CLASSES), lambda i: (0, 0)),
    )(x3, scale.reshape(1, 1, c), shift.reshape(1, 1, c), fc_w, fc_b)


# ----------------------------------------------------------------------------
# im2col glue (only for spatial kernels: 7x7 stem and 3x3 dense-layer convs).
# Weight matrices are pre-laid-out as (kh*kw*Cin, Cout) with (dy, dx, cin)
# row order to match the patch concatenation below.
# ----------------------------------------------------------------------------
def _im2col(x, kh, kw, stride, padding):
    n, h, w, c = x.shape
    s, p = stride, padding
    ho = (h + 2 * p - kh) // s + 1
    wo = (w + 2 * p - kw) // s + 1
    xp = jnp.pad(x, ((0, 0), (p, p), (p, p), (0, 0)))
    cols = []
    for dy in range(kh):
        for dx in range(kw):
            cols.append(xp[:, dy:dy + s * ho:s, dx:dx + s * wo:s, :])
    patches = jnp.concatenate(cols, axis=-1)      # (N, Ho, Wo, kh*kw*Cin)
    return patches.reshape(n * ho * wo, kh * kw * c), (n, ho, wo)


# ----------------------------------------------------------------------------
# Network pieces
# ----------------------------------------------------------------------------
def _dense_layer(x, p):
    """BN1+ReLU -> 1x1 conv -> BN2+ReLU (one fused kernel), then 3x3 conv."""
    n, h, w, c = x.shape
    bneck = fused_matmul(x.reshape(n * h * w, c), p["w1"],
                         pre=(p["bn1_scale"], p["bn1_shift"]),
                         post=(p["bn2_scale"], p["bn2_shift"]))
    bneck = bneck.reshape(n, h, w, -1)
    # 3x3 conv, zero padding applied to the post-BN2-ReLU activation (as in
    # PyTorch, where Conv2d pads the ReLU output).
    patches, (_, ho, wo) = _im2col(bneck, 3, 3, stride=1, padding=1)
    new = fused_matmul(patches, p["w2"]).reshape(n, ho, wo, -1)
    return jnp.concatenate([x, new], axis=-1)     # dense connectivity


def _transition(x, p):
    """BN+ReLU -> 1x1 conv (one fused kernel) -> 2x2/2 avg pool."""
    n, h, w, c = x.shape
    out = fused_matmul(x.reshape(n * h * w, c), p["w"],
                       pre=(p["bn_scale"], p["bn_shift"]))
    return avgpool_2x2_s2(out.reshape(n, h, w, -1))


@jax.jit
def densenet_forward(x_nchw, params):
    # NCHW (PyTorch) -> NHWC (kernel layout)
    x = jnp.transpose(x_nchw, (0, 2, 3, 1)).astype(jnp.float32)

    # Stem: 7x7/2 conv (im2col + MXU matmul) with BN0+ReLU fused as epilogue,
    # then 3x3/2 pad-1 max pool.
    patches, (n, ho, wo) = _im2col(x, 7, 7, stride=2, padding=3)
    x = fused_matmul(patches, params["conv0_w"],
                     post=(params["bn0_scale"], params["bn0_shift"]))
    x = x.reshape(n, ho, wo, -1)
    x = maxpool_3x3_s2_p1(x)

    for b, num_layers in enumerate(BLOCK_CONFIG):
        for l in range(num_layers):
            x = _dense_layer(x, params[f"block{b}_layer{l}"])
        if b != len(BLOCK_CONFIG) - 1:
            x = _transition(x, params[f"trans{b}"])

    # Fused tail: BN_final + ReLU + global average pool + FC.
    return tail_bn_pool_fc(x, params["bnf_scale"], params["bnf_shift"],
                           params["fc_w"], params["fc_b"])


# ----------------------------------------------------------------------------
# Parameter initialization (deterministic, synthetic).  BN running statistics
# are folded into per-channel scale/shift at init; conv weights are stored as
# bf16 (kh*kw*Cin, Cout) matmul matrices so the traced forward has no
# transposes and MXU inputs are bf16 with f32 accumulation.
# ----------------------------------------------------------------------------
def _init_bn_affine(key, c):
    k1, k2, k3, k4 = jax.random.split(key, 4)
    gamma = 1.0 + 0.1 * jax.random.normal(k1, (c,), jnp.float32)
    beta = 0.1 * jax.random.normal(k2, (c,), jnp.float32)
    mean = 0.1 * jax.random.normal(k3, (c,), jnp.float32)
    var = 1.0 + 0.1 * jnp.abs(jax.random.normal(k4, (c,), jnp.float32))
    scale = gamma / jnp.sqrt(var + BN_EPS)
    shift = beta - mean * scale
    return scale.reshape(1, c), shift.reshape(1, c)


def _init_conv_mat(key, cout, cin, kh, kw):
    fan_in = cin * kh * kw
    w = (jax.random.normal(key, (cout, cin, kh, kw), jnp.float32)
         / jnp.sqrt(float(fan_in)))
    # (Cout, Cin, kh, kw) -> (kh*kw*Cin, Cout), matching im2col (dy, dx, cin).
    return (jnp.transpose(w, (2, 3, 1, 0))
            .reshape(kh * kw * cin, cout).astype(jnp.bfloat16))


def init_params(key):
    params = {}
    keys = jax.random.split(key, 64)
    ki = iter(range(64))

    params["conv0_w"] = _init_conv_mat(keys[next(ki)], NUM_INIT_FEATURES, 3, 7, 7)
    params["bn0_scale"], params["bn0_shift"] = _init_bn_affine(
        keys[next(ki)], NUM_INIT_FEATURES)

    num_features = NUM_INIT_FEATURES
    for b, num_layers in enumerate(BLOCK_CONFIG):
        for l in range(num_layers):
            cin = num_features + l * GROWTH_RATE
            bneck = BN_SIZE * GROWTH_RATE
            layer = {}
            layer["bn1_scale"], layer["bn1_shift"] = _init_bn_affine(
                keys[next(ki)], cin)
            layer["w1"] = _init_conv_mat(keys[next(ki)], bneck, cin, 1, 1)
            layer["bn2_scale"], layer["bn2_shift"] = _init_bn_affine(
                keys[next(ki)], bneck)
            layer["w2"] = _init_conv_mat(keys[next(ki)], GROWTH_RATE, bneck, 3, 3)
            params[f"block{b}_layer{l}"] = layer
        num_features += num_layers * GROWTH_RATE
        if b != len(BLOCK_CONFIG) - 1:
            trans = {}
            trans["bn_scale"], trans["bn_shift"] = _init_bn_affine(
                keys[next(ki)], num_features)
            trans["w"] = _init_conv_mat(keys[next(ki)], num_features // 2,
                                        num_features, 1, 1)
            params[f"trans{b}"] = trans
            num_features //= 2

    params["bnf_scale"], params["bnf_shift"] = _init_bn_affine(
        keys[next(ki)], num_features)
    params["fc_w"] = ((jax.random.normal(keys[next(ki)],
                                         (num_features, NUM_CLASSES), jnp.float32)
                       / jnp.sqrt(float(num_features))).astype(jnp.bfloat16))
    params["fc_b"] = 0.1 * jax.random.normal(keys[next(ki)],
                                             (1, NUM_CLASSES), jnp.float32)
    return params


# ----------------------------------------------------------------------------
if __name__ == "__main__":
    key = jax.random.PRNGKey(0)
    k_params, k_input = jax.random.split(key)
    params = init_params(k_params)
    x = jax.random.normal(k_input, (2, 3, 32, 32), jnp.float32)   # NCHW

    logits = densenet_forward(x, params)
    jax.block_until_ready(logits)
    assert logits.shape == (2, NUM_CLASSES)
    assert bool(jnp.all(jnp.isfinite(logits)))
    print("KERNEL_OK")
</pallas_src>

<mosaic_0001>
module attributes {stable_mosaic.version = 11 : i64} {
  func.func @kernel(%arg0: i32, %arg1: memref<256x147xf32, #tpu.memory_space<vmem>>, %arg2: memref<147x16xbf16, #tpu.memory_space<vmem>>, %arg3: memref<1x16xf32, #tpu.memory_space<vmem>>, %arg4: memref<1x16xf32, #tpu.memory_space<vmem>>, %arg5: memref<256x16xf32, #tpu.memory_space<vmem>>) attributes {dimension_semantics = [#tpu.dimension_semantics<parallel>], iteration_bounds = array<i64: 2>, scalar_prefetch = 0 : i64, scratch_operands = 0 : i64, tpu.core_type = #tpu.core_type<tc>, window_params = [{transform_indices = @transform_0, window_bounds = array<i64: 256, 147>}, {pipeline_mode = #tpu.pipeline_mode<synchronous>, transform_indices = @transform_1, window_bounds = array<i64: 147, 16>}, {pipeline_mode = #tpu.pipeline_mode<synchronous>, transform_indices = @transform_2, window_bounds = array<i64: 1, 16>}, {pipeline_mode = #tpu.pipeline_mode<synchronous>, transform_indices = @transform_3, window_bounds = array<i64: 1, 16>}, {transform_indices = @transform_4, window_bounds = array<i64: 256, 16>}]} {
    %c0 = arith.constant 0 : index
    %c0_0 = arith.constant 0 : index
    %0 = vector.load %arg1[%c0, %c0_0] : memref<256x147xf32, #tpu.memory_space<vmem>>, vector<256x147xf32>
    %1 = arith.truncf %0 : vector<256x147xf32> to vector<256x147xbf16>
    %c0_1 = arith.constant 0 : index
    %c0_2 = arith.constant 0 : index
    %2 = vector.load %arg2[%c0_1, %c0_2] : memref<147x16xbf16, #tpu.memory_space<vmem>>, vector<147x16xbf16>
    %cst = arith.constant dense<0.000000e+00> : vector<256x16xf32>
    %3 = tpu.matmul %1, %2, %cst {dimension_numbers = #tpu.dot_dimension_numbers<[1], [0], [0], [1], [0, 0, 1, 1], [], []>} : vector<256x147xbf16>, vector<147x16xbf16>, vector<256x16xf32> -> vector<256x16xf32>
    %c0_3 = arith.constant 0 : index
    %c0_4 = arith.constant 0 : index
    %4 = vector.load %arg3[%c0_3, %c0_4] : memref<1x16xf32, #tpu.memory_space<vmem>>, vector<1x16xf32>
    %5 = vector.broadcast %4 : vector<1x16xf32> to vector<256x16xf32>
    %6 = arith.mulf %3, %5 : vector<256x16xf32>
    %c0_5 = arith.constant 0 : index
    %c0_6 = arith.constant 0 : index
    %7 = vector.load %arg4[%c0_5, %c0_6] : memref<1x16xf32, #tpu.memory_space<vmem>>, vector<1x16xf32>
    %8 = vector.broadcast %7 : vector<1x16xf32> to vector<256x16xf32>
    %9 = arith.addf %6, %8 : vector<256x16xf32>
    %cst_7 = arith.constant 0.000000e+00 : f32
    %10 = vector.broadcast %cst_7 : f32 to vector<256x16xf32>
    %11 = arith.maximumf %9, %10 : vector<256x16xf32>
    %c0_8 = arith.constant 0 : index
    %c0_9 = arith.constant 0 : index
    %12 = vector.load %arg5[%c0_8, %c0_9] : memref<256x16xf32, #tpu.memory_space<vmem>>, vector<256x16xf32>
    tpu.vector_store %arg5[%c0_8, %c0_9], %11 {strides = array<i32>} : memref<256x16xf32, #tpu.memory_space<vmem>>, vector<256x16xf32>,
    return
  }
  func.func @transform_0(%arg0: i32) -> (i32, i32) {
    %c0_i32 = arith.constant 0 : i32
    %c0_i32_0 = arith.constant 0 : i32
    return %arg0, %c0_i32 : i32, i32
  }
  func.func @transform_1(%arg0: i32) -> (i32, i32) {
    %c0_i32 = arith.constant 0 : i32
    %c0_i32_0 = arith.constant 0 : i32
    %c0_i32_1 = arith.constant 0 : i32
    return %c0_i32, %c0_i32_0 : i32, i32
  }
  func.func @transform_2(%arg0: i32) -> (i32, i32) {
    %c0_i32 = arith.constant 0 : i32
    %c0_i32_0 = arith.constant 0 : i32
    %c0_i32_1 = arith.constant 0 : i32
    return %c0_i32, %c0_i32_0 : i32, i32
  }
  func.func @transform_3(%arg0: i32) -> (i32, i32) {
    %c0_i32 = arith.constant 0 : i32
    %c0_i32_0 = arith.constant 0 : i32
    %c0_i32_1 = arith.constant 0 : i32
    return %c0_i32, %c0_i32_0 : i32, i32
  }
  func.func @transform_4(%arg0: i32) -> (i32, i32) {
    %c0_i32 = arith.constant 0 : i32
    %c0_i32_0 = arith.constant 0 : i32
    return %arg0, %c0_i32 : i32, i32
  }
}

module attributes {stable_mosaic.version = 11 : i64} {
  func.func @kernel(%arg0: i32, %arg1: memref<128x16xf32, #tpu.memory_space<vmem>>, %arg2: memref<1x16xf32, #tpu.memory_space<vmem>>, %arg3: memref<1x16xf32, #tpu.memory_space<vmem>>, %arg4: memref<16x16xbf16, #tpu.memory_space<vmem>>, %arg5: memref<1x16xf32, #tpu.memory_space<vmem>>, %arg6: memref<1x16xf32, #tpu.memory_space<vmem>>, %arg7: memref<128x16xf32, #tpu.memory_space<vmem>>) attributes {dimension_semantics = [#tpu.dimension_semantics<parallel>], iteration_bounds = array<i64: 1>, scalar_prefetch = 0 : i64, scratch_operands = 0 : i64, tpu.core_type = #tpu.core_type<tc>, window_params = [{transform_indices = @transform_0, window_bounds = array<i64: 128, 16>}, {pipeline_mode = #tpu.pipeline_mode<synchronous>, transform_indices = @transform_1, window_bounds = array<i64: 1, 16>}, {pipeline_mode = #tpu.pipeline_mode<synchronous>, transform_indices = @transform_2, window_bounds = array<i64: 1, 16>}, {pipeline_mode = #tpu.pipeline_mode<synchronous>, transform_indices = @transform_3, window_bounds = array<i64: 16, 16>}, {pipeline_mode = #tpu.pipeline_mode<synchronous>, transform_indices = @transform_4, window_bounds = array<i64: 1, 16>}, {pipeline_mode = #tpu.pipeline_mode<synchronous>, transform_indices = @transform_5, window_bounds = array<i64: 1, 16>}, {transform_indices = @transform_6, window_bounds = array<i64: 128, 16>}]} {
    %c0 = arith.constant 0 : index
    %c0_0 = arith.constant 0 : index
    %0 = vector.load %arg1[%c0, %c0_0] : memref<128x16xf32, #tpu.memory_space<vmem>>, vector<128x16xf32>
    %c0_1 = arith.constant 0 : index
    %c0_2 = arith.constant 0 : index
    %1 = vector.load %arg2[%c0_1, %c0_2] : memref<1x16xf32, #tpu.memory_space<vmem>>, vector<1x16xf32>
    %2 = vector.broadcast %1 : vector<1x16xf32> to vector<128x16xf32>
    %3 = arith.mulf %0, %2 : vector<128x16xf32>
    %c0_3 = arith.constant 0 : index
    %c0_4 = arith.constant 0 : index
    %4 = vector.load %arg3[%c0_3, %c0_4] : memref<1x16xf32, #tpu.memory_space<vmem>>, vector<1x16xf32>
    %5 = vector.broadcast %4 : vector<1x16xf32> to vector<128x16xf32>
    %6 = arith.addf %3, %5 : vector<128x16xf32>
    %cst = arith.constant 0.000000e+00 : f32
    %7 = vector.broadcast %cst : f32 to vector<128x16xf32>
    %8 = arith.maximumf %6, %7 : vector<128x16xf32>
    %9 = arith.truncf %8 : vector<128x16xf32> to vector<128x16xbf16>
    %c0_5 = arith.constant 0 : index
    %c0_6 = arith.constant 0 : index
    %10 = vector.load %arg4[%c0_5, %c0_6] : memref<16x16xbf16, #tpu.memory_space<vmem>>, vector<16x16xbf16>
    %cst_7 = arith.constant dense<0.000000e+00> : vector<128x16xf32>
    %11 = tpu.matmul %9, %10, %cst_7 {dimension_numbers = #tpu.dot_dimension_numbers<[1], [0], [0], [1], [0, 0, 1, 1], [], []>} : vector<128x16xbf16>, vector<16x16xbf16>, vector<128x16xf32> -> vector<128x16xf32>
    %c0_8 = arith.constant 0 : index
    %c0_9 = arith.constant 0 : index
    %12 = vector.load %arg5[%c0_8, %c0_9] : memref<1x16xf32, #tpu.memory_space<vmem>>, vector<1x16xf32>
    %13 = vector.broadcast %12 : vector<1x16xf32> to vector<128x16xf32>
    %14 = arith.mulf %11, %13 : vector<128x16xf32>
    %c0_10 = arith.constant 0 : index
    %c0_11 = arith.constant 0 : index
    %15 = vector.load %arg6[%c0_10, %c0_11] : memref<1x16xf32, #tpu.memory_space<vmem>>, vector<1x16xf32>
    %16 = vector.broadcast %15 : vector<1x16xf32> to vector<128x16xf32>
    %17 = arith.addf %14, %16 : vector<128x16xf32>
    %cst_12 = arith.constant 0.000000e+00 : f32
    %18 = vector.broadcast %cst_12 : f32 to vector<128x16xf32>
    %19 = arith.maximumf %17, %18 : vector<128x16xf32>
    %c0_13 = arith.constant 0 : index
    %c0_14 = arith.constant 0 : index
    %20 = vector.load %arg7[%c0_13, %c0_14] : memref<128x16xf32, #tpu.memory_space<vmem>>, vector<128x16xf32>
    tpu.vector_store %arg7[%c0_13, %c0_14], %19 {strides = array<i32>} : memref<128x16xf32, #tpu.memory_space<vmem>>, vector<128x16xf32>,
    return
  }
  func.func @transform_0(%arg0: i32) -> (i32, i32) {
    %c0_i32 = arith.constant 0 : i32
    %c0_i32_0 = arith.constant 0 : i32
    return %arg0, %c0_i32 : i32, i32
  }
  func.func @transform_1(%arg0: i32) -> (i32, i32) {
    %c0_i32 = arith.constant 0 : i32
    %c0_i32_0 = arith.constant 0 : i32
    %c0_i32_1 = arith.constant 0 : i32
    return %c0_i32, %c0_i32_0 : i32, i32
  }
  func.func @transform_2(%arg0: i32) -> (i32, i32) {
    %c0_i32 = arith.constant 0 : i32
    %c0_i32_0 = arith.constant 0 : i32
    %c0_i32_1 = arith.constant 0 : i32
    return %c0_i32, %c0_i32_0 : i32, i32
  }
  func.func @transform_3(%arg0: i32) -> (i32, i32) {
    %c0_i32 = arith.constant 0 : i32
    %c0_i32_0 = arith.constant 0 : i32
    %c0_i32_1 = arith.constant 0 : i32
    return %c0_i32, %c0_i32_0 : i32, i32
  }
  func.func @transform_4(%arg0: i32) -> (i32, i32) {
    %c0_i32 = arith.constant 0 : i32
    %c0_i32_0 = arith.constant 0 : i32
    %c0_i32_1 = arith.constant 0 : i32
    return %c0_i32, %c0_i32_0 : i32, i32
  }
  func.func @transform_5(%arg0: i32) -> (i32, i32) {
    %c0_i32 = arith.constant 0 : i32
    %c0_i32_0 = arith.constant 0 : i32
    %c0_i32_1 = arith.constant 0 : i32
    return %c0_i32, %c0_i32_0 : i32, i32
  }
  func.func @transform_6(%arg0: i32) -> (i32, i32) {
    %c0_i32 = arith.constant 0 : i32
    %c0_i32_0 = arith.constant 0 : i32
    return %arg0, %c0_i32 : i32, i32
  }
}

module attributes {stable_mosaic.version = 11 : i64} {
  func.func @_maxpool_kernel(%arg0: i32, %arg1: memref<2x9x9x16xf32, #tpu.memory_space<vmem>>, %arg2: memref<2x9x9x16xf32, #tpu.memory_space<vmem>>, %arg3: memref<2x9x9x16xf32, #tpu.memory_space<vmem>>, %arg4: memref<2x9x9x16xf32, #tpu.memory_space<vmem>>, %arg5: memref<2x8x8x16xf32, #tpu.memory_space<vmem>>) attributes {dimension_semantics = [#tpu.dimension_semantics<arbitrary>], iteration_bounds = array<i64: 1>, scalar_prefetch = 0 : i64, scratch_operands = 0 : i64, tpu.core_type = #tpu.core_type<tc>, window_params = [{pipeline_mode = #tpu.pipeline_mode<synchronous>, transform_indices = @transform_0, window_bounds = array<i64: 2, 9, 9, 16>}, {pipeline_mode = #tpu.pipeline_mode<synchronous>, transform_indices = @transform_1, window_bounds = array<i64: 2, 9, 9, 16>}, {pipeline_mode = #tpu.pipeline_mode<synchronous>, transform_indices = @transform_2, window_bounds = array<i64: 2, 9, 9, 16>}, {pipeline_mode = #tpu.pipeline_mode<synchronous>, transform_indices = @transform_3, window_bounds = array<i64: 2, 9, 9, 16>}, {pipeline_mode = #tpu.pipeline_mode<synchronous>, transform_indices = @transform_4, window_bounds = array<i64: 2, 8, 8, 16>}]} {
    %c0 = arith.constant 0 : index
    %c0_0 = arith.constant 0 : index
    %c0_1 = arith.constant 0 : index
    %c0_2 = arith.constant 0 : index
    %0 = vector.load %arg1[%c0, %c0_0, %c0_1, %c0_2] : memref<2x9x9x16xf32, #tpu.memory_space<vmem>>, vector<2x8x8x16xf32>
    %c0_3 = arith.constant 0 : index
    %c0_4 = arith.constant 0 : index
    %c0_5 = arith.constant 0 : index
    %c0_6 = arith.constant 0 : index
    %1 = vector.load %arg2[%c0_3, %c0_4, %c0_5, %c0_6] : memref<2x9x9x16xf32, #tpu.memory_space<vmem>>, vector<2x8x8x16xf32>
    %2 = arith.maximumf %0, %1 : vector<2x8x8x16xf32>
    %c0_7 = arith.constant 0 : index
    %c0_8 = arith.constant 0 : index
    %c1 = arith.constant 1 : index
    %c0_9 = arith.constant 0 : index
    %3 = vector.load %arg1[%c0_7, %c0_8, %c1, %c0_9] : memref<2x9x9x16xf32, #tpu.memory_space<vmem>>, vector<2x8x8x16xf32>
    %4 = arith.maximumf %2, %3 : vector<2x8x8x16xf32>
    %c0_10 = arith.constant 0 : index
    %c0_11 = arith.constant 0 : index
    %c0_12 = arith.constant 0 : index
    %c0_13 = arith.constant 0 : index
    %5 = vector.load %arg3[%c0_10, %c0_11, %c0_12, %c0_13] : memref<2x9x9x16xf32, #tpu.memory_space<vmem>>, vector<2x8x8x16xf32>
    %6 = arith.maximumf %4, %5 : vector<2x8x8x16xf32>
    %c0_14 = arith.constant 0 : index
    %c0_15 = arith.constant 0 : index
    %c0_16 = arith.constant 0 : index
    %c0_17 = arith.constant 0 : index
    %7 = vector.load %arg4[%c0_14, %c0_15, %c0_16, %c0_17] : memref<2x9x9x16xf32, #tpu.memory_space<vmem>>, vector<2x8x8x16xf32>
    %8 = arith.maximumf %6, %7 : vector<2x8x8x16xf32>
    %c0_18 = arith.constant 0 : index
    %c0_19 = arith.constant 0 : index
    %c1_20 = arith.constant 1 : index
    %c0_21 = arith.constant 0 : index
    %9 = vector.load %arg3[%c0_18, %c0_19, %c1_20, %c0_21] : memref<2x9x9x16xf32, #tpu.memory_space<vmem>>, vector<2x8x8x16xf32>
    %10 = arith.maximumf %8, %9 : vector<2x8x8x16xf32>
    %c0_22 = arith.constant 0 : index
    %c1_23 = arith.constant 1 : index
    %c0_24 = arith.constant 0 : index
    %c0_25 = arith.constant 0 : index
    %11 = vector.load %arg1[%c0_22, %c1_23, %c0_24, %c0_25] : memref<2x9x9x16xf32, #tpu.memory_space<vmem>>, vector<2x8x8x16xf32>
    %12 = arith.maximumf %10, %11 : vector<2x8x8x16xf32>
    %c0_26 = arith.constant 0 : index
    %c1_27 = arith.constant 1 : index
    %c0_28 = arith.constant 0 : index
    %c0_29 = arith.constant 0 : index
    %13 = vector.load %arg2[%c0_26, %c1_27, %c0_28, %c0_29] : memref<2x9x9x16xf32, #tpu.memory_space<vmem>>, vector<2x8x8x16xf32>
    %14 = arith.maximumf %12, %13 : vector<2x8x8x16xf32>
    %c0_30 = arith.constant 0 : index
    %c1_31 = arith.constant 1 : index
    %c1_32 = arith.constant 1 : index
    %c0_33 = arith.constant 0 : index
    %15 = vector.load %arg1[%c0_30, %c1_31, %c1_32, %c0_33] : memref<2x9x9x16xf32, #tpu.memory_space<vmem>>, vector<2x8x8x16xf32>
    %16 = arith.maximumf %14, %15 : vector<2x8x8x16xf32>
    %c0_34 = arith.constant 0 : index
    %c0_35 = arith.constant 0 : index
    %c0_36 = arith.constant 0 : index
    %c0_37 = arith.constant 0 : index
    %17 = vector.load %arg5[%c0_34, %c0_35, %c0_36, %c0_37] : memref<2x8x8x16xf32, #tpu.memory_space<vmem>>, vector<2x8x8x16xf32>
    tpu.vector_store %arg5[%c0_34, %c0_35, %c0_36, %c0_37], %16 {strides = array<i32>} : memref<2x8x8x16xf32, #tpu.memory_space<vmem>>, vector<2x8x8x16xf32>,
    return
  }
  func.func @transform_0(%arg0: i32) -> (i32, i32, i32, i32) {
    %c0_i32 = arith.constant 0 : i32
    %c0_i32_0 = arith.constant 0 : i32
    %c0_i32_1 = arith.constant 0 : i32
    %c0_i32_2 = arith.constant 0 : i32
    %c0_i32_3 = arith.constant 0 : i32
    return %c0_i32, %c0_i32_0, %c0_i32_1, %c0_i32_2 : i32, i32, i32, i32
  }
  func.func @transform_1(%arg0: i32) -> (i32, i32, i32, i32) {
    %c0_i32 = arith.constant 0 : i32
    %c0_i32_0 = arith.constant 0 : i32
    %c0_i32_1 = arith.constant 0 : i32
    %c0_i32_2 = arith.constant 0 : i32
    %c0_i32_3 = arith.constant 0 : i32
    return %c0_i32, %c0_i32_0, %c0_i32_1, %c0_i32_2 : i32, i32, i32, i32
  }
  func.func @transform_2(%arg0: i32) -> (i32, i32, i32, i32) {
    %c0_i32 = arith.constant 0 : i32
    %c0_i32_0 = arith.constant 0 : i32
    %c0_i32_1 = arith.constant 0 : i32
    %c0_i32_2 = arith.constant 0 : i32
    %c0_i32_3 = arith.constant 0 : i32
    return %c0_i32, %c0_i32_0, %c0_i32_1, %c0_i32_2 : i32, i32, i32, i32
  }
  func.func @transform_3(%arg0: i32) -> (i32, i32, i32, i32) {
    %c0_i32 = arith.constant 0 : i32
    %c0_i32_0 = arith.constant 0 : i32
    %c0_i32_1 = arith.constant 0 : i32
    %c0_i32_2 = arith.constant 0 : i32
    %c0_i32_3 = arith.constant 0 : i32
    return %c0_i32, %c0_i32_0, %c0_i32_1, %c0_i32_2 : i32, i32, i32, i32
  }
  func.func @transform_4(%arg0: i32) -> (i32, i32, i32, i32) {
    %c0_i32 = arith.constant 0 : i32
    %c0_i32_0 = arith.constant 0 : i32
    %c0_i32_1 = arith.constant 0 : i32
    %c0_i32_2 = arith.constant 0 : i32
    %c0_i32_3 = arith.constant 0 : i32
    return %c0_i32, %c0_i32_0, %c0_i32_1, %c0_i32_2 : i32, i32, i32, i32
  }
}

module attributes {stable_mosaic.version = 11 : i64} {
  func.func @kernel(%arg0: i32, %arg1: memref<128x144xf32, #tpu.memory_space<vmem>>, %arg2: memref<144x8xbf16, #tpu.memory_space<vmem>>, %arg3: memref<128x8xf32, #tpu.memory_space<vmem>>) attributes {dimension_semantics = [#tpu.dimension_semantics<parallel>], iteration_bounds = array<i64: 1>, scalar_prefetch = 0 : i64, scratch_operands = 0 : i64, tpu.core_type = #tpu.core_type<tc>, window_params = [{transform_indices = @transform_0, window_bounds = array<i64: 128, 144>}, {pipeline_mode = #tpu.pipeline_mode<synchronous>, transform_indices = @transform_1, window_bounds = array<i64: 144, 8>}, {transform_indices = @transform_2, window_bounds = array<i64: 128, 8>}]} {
    %c0 = arith.constant 0 : index
    %c0_0 = arith.constant 0 : index
    %0 = vector.load %arg1[%c0, %c0_0] : memref<128x144xf32, #tpu.memory_space<vmem>>, vector<128x144xf32>
    %1 = arith.truncf %0 : vector<128x144xf32> to vector<128x144xbf16>
    %c0_1 = arith.constant 0 : index
    %c0_2 = arith.constant 0 : index
    %2 = vector.load %arg2[%c0_1, %c0_2] : memref<144x8xbf16, #tpu.memory_space<vmem>>, vector<144x8xbf16>
    %cst = arith.constant dense<0.000000e+00> : vector<128x8xf32>
    %3 = tpu.matmul %1, %2, %cst {dimension_numbers = #tpu.dot_dimension_numbers<[1], [0], [0], [1], [0, 0, 1, 1], [], []>} : vector<128x144xbf16>, vector<144x8xbf16>, vector<128x8xf32> -> vector<128x8xf32>
    %c0_3 = arith.constant 0 : index
    %c0_4 = arith.constant 0 : index
    %4 = vector.load %arg3[%c0_3, %c0_4] : memref<128x8xf32, #tpu.memory_space<vmem>>, vector<128x8xf32>
    tpu.vector_store %arg3[%c0_3, %c0_4], %3 {strides = array<i32>} : memref<128x8xf32, #tpu.memory_space<vmem>>, vector<128x8xf32>,
    return
  }
  func.func @transform_0(%arg0: i32) -> (i32, i32) {
    %c0_i32 = arith.constant 0 : i32
    %c0_i32_0 = arith.constant 0 : i32
    return %arg0, %c0_i32 : i32, i32
  }
  func.func @transform_1(%arg0: i32) -> (i32, i32) {
    %c0_i32 = arith.constant 0 : i32
    %c0_i32_0 = arith.constant 0 : i32
    %c0_i32_1 = arith.constant 0 : i32
    return %c0_i32, %c0_i32_0 : i32, i32
  }
  func.func @transform_2(%arg0: i32) -> (i32, i32) {
    %c0_i32 = arith.constant 0 : i32
    %c0_i32_0 = arith.constant 0 : i32
    return %arg0, %c0_i32 : i32, i32
  }
}

module attributes {stable_mosaic.version = 11 : i64} {
  func.func @kernel(%arg0: i32, %arg1: memref<128x24xf32, #tpu.memory_space<vmem>>, %arg2: memref<1x24xf32, #tpu.memory_space<vmem>>, %arg3: memref<1x24xf32, #tpu.memory_space<vmem>>, %arg4: memref<24x16xbf16, #tpu.memory_space<vmem>>, %arg5: memref<1x16xf32, #tpu.memory_space<vmem>>, %arg6: memref<1x16xf32, #tpu.memory_space<vmem>>, %arg7: memref<128x16xf32, #tpu.memory_space<vmem>>) attributes {dimension_semantics = [#tpu.dimension_semantics<parallel>], iteration_bounds = array<i64: 1>, scalar_prefetch = 0 : i64, scratch_operands = 0 : i64, tpu.core_type = #tpu.core_type<tc>, window_params = [{transform_indices = @transform_0, window_bounds = array<i64: 128, 24>}, {pipeline_mode = #tpu.pipeline_mode<synchronous>, transform_indices = @transform_1, window_bounds = array<i64: 1, 24>}, {pipeline_mode = #tpu.pipeline_mode<synchronous>, transform_indices = @transform_2, window_bounds = array<i64: 1, 24>}, {pipeline_mode = #tpu.pipeline_mode<synchronous>, transform_indices = @transform_3, window_bounds = array<i64: 24, 16>}, {pipeline_mode = #tpu.pipeline_mode<synchronous>, transform_indices = @transform_4, window_bounds = array<i64: 1, 16>}, {pipeline_mode = #tpu.pipeline_mode<synchronous>, transform_indices = @transform_5, window_bounds = array<i64: 1, 16>}, {transform_indices = @transform_6, window_bounds = array<i64: 128, 16>}]} {
    %c0 = arith.constant 0 : index
    %c0_0 = arith.constant 0 : index
    %0 = vector.load %arg1[%c0, %c0_0] : memref<128x24xf32, #tpu.memory_space<vmem>>, vector<128x24xf32>
    %c0_1 = arith.constant 0 : index
    %c0_2 = arith.constant 0 : index
    %1 = vector.load %arg2[%c0_1, %c0_2] : memref<1x24xf32, #tpu.memory_space<vmem>>, vector<1x24xf32>
    %2 = vector.broadcast %1 : vector<1x24xf32> to vector<128x24xf32>
    %3 = arith.mulf %0, %2 : vector<128x24xf32>
    %c0_3 = arith.constant 0 : index
    %c0_4 = arith.constant 0 : index
    %4 = vector.load %arg3[%c0_3, %c0_4] : memref<1x24xf32, #tpu.memory_space<vmem>>, vector<1x24xf32>
    %5 = vector.broadcast %4 : vector<1x24xf32> to vector<128x24xf32>
    %6 = arith.addf %3, %5 : vector<128x24xf32>
    %cst = arith.constant 0.000000e+00 : f32
    %7 = vector.broadcast %cst : f32 to vector<128x24xf32>
    %8 = arith.maximumf %6, %7 : vector<128x24xf32>
    %9 = arith.truncf %8 : vector<128x24xf32> to vector<128x24xbf16>
    %c0_5 = arith.constant 0 : index
    %c0_6 = arith.constant 0 : index
    %10 = vector.load %arg4[%c0_5, %c0_6] : memref<24x16xbf16, #tpu.memory_space<vmem>>, vector<24x16xbf16>
    %cst_7 = arith.constant dense<0.000000e+00> : vector<128x16xf32>
    %11 = tpu.matmul %9, %10, %cst_7 {dimension_numbers = #tpu.dot_dimension_numbers<[1], [0], [0], [1], [0, 0, 1, 1], [], []>} : vector<128x24xbf16>, vector<24x16xbf16>, vector<128x16xf32> -> vector<128x16xf32>
    %c0_8 = arith.constant 0 : index
    %c0_9 = arith.constant 0 : index
    %12 = vector.load %arg5[%c0_8, %c0_9] : memref<1x16xf32, #tpu.memory_space<vmem>>, vector<1x16xf32>
    %13 = vector.broadcast %12 : vector<1x16xf32> to vector<128x16xf32>
    %14 = arith.mulf %11, %13 : vector<128x16xf32>
    %c0_10 = arith.constant 0 : index
    %c0_11 = arith.constant 0 : index
    %15 = vector.load %arg6[%c0_10, %c0_11] : memref<1x16xf32, #tpu.memory_space<vmem>>, vector<1x16xf32>
    %16 = vector.broadcast %15 : vector<1x16xf32> to vector<128x16xf32>
    %17 = arith.addf %14, %16 : vector<128x16xf32>
    %cst_12 = arith.constant 0.000000e+00 : f32
    %18 = vector.broadcast %cst_12 : f32 to vector<128x16xf32>
    %19 = arith.maximumf %17, %18 : vector<128x16xf32>
    %c0_13 = arith.constant 0 : index
    %c0_14 = arith.constant 0 : index
    %20 = vector.load %arg7[%c0_13, %c0_14] : memref<128x16xf32, #tpu.memory_space<vmem>>, vector<128x16xf32>
    tpu.vector_store %arg7[%c0_13, %c0_14], %19 {strides = array<i32>} : memref<128x16xf32, #tpu.memory_space<vmem>>, vector<128x16xf32>,
    return
  }
  func.func @transform_0(%arg0: i32) -> (i32, i32) {
    %c0_i32 = arith.constant 0 : i32
    %c0_i32_0 = arith.constant 0 : i32
    return %arg0, %c0_i32 : i32, i32
  }
  func.func @transform_1(%arg0: i32) -> (i32, i32) {
    %c0_i32 = arith.constant 0 : i32
    %c0_i32_0 = arith.constant 0 : i32
    %c0_i32_1 = arith.constant 0 : i32
    return %c0_i32, %c0_i32_0 : i32, i32
  }
  func.func @transform_2(%arg0: i32) -> (i32, i32) {
    %c0_i32 = arith.constant 0 : i32
    %c0_i32_0 = arith.constant 0 : i32
    %c0_i32_1 = arith.constant 0 : i32
    return %c0_i32, %c0_i32_0 : i32, i32
  }
  func.func @transform_3(%arg0: i32) -> (i32, i32) {
    %c0_i32 = arith.constant 0 : i32
    %c0_i32_0 = arith.constant 0 : i32
    %c0_i32_1 = arith.constant 0 : i32
    return %c0_i32, %c0_i32_0 : i32, i32
  }
  func.func @transform_4(%arg0: i32) -> (i32, i32) {
    %c0_i32 = arith.constant 0 : i32
    %c0_i32_0 = arith.constant 0 : i32
    %c0_i32_1 = arith.constant 0 : i32
    return %c0_i32, %c0_i32_0 : i32, i32
  }
  func.func @transform_5(%arg0: i32) -> (i32, i32) {
    %c0_i32 = arith.constant 0 : i32
    %c0_i32_0 = arith.constant 0 : i32
    %c0_i32_1 = arith.constant 0 : i32
    return %c0_i32, %c0_i32_0 : i32, i32
  }
  func.func @transform_6(%arg0: i32) -> (i32, i32) {
    %c0_i32 = arith.constant 0 : i32
    %c0_i32_0 = arith.constant 0 : i32
    return %arg0, %c0_i32 : i32, i32
  }
}

module attributes {stable_mosaic.version = 11 : i64} {
  func.func @kernel(%arg0: i32, %arg1: memref<128x32xf32, #tpu.memory_space<vmem>>, %arg2: memref<1x32xf32, #tpu.memory_space<vmem>>, %arg3: memref<1x32xf32, #tpu.memory_space<vmem>>, %arg4: memref<32x16xbf16, #tpu.memory_space<vmem>>, %arg5: memref<128x16xf32, #tpu.memory_space<vmem>>) attributes {dimension_semantics = [#tpu.dimension_semantics<parallel>], iteration_bounds = array<i64: 1>, scalar_prefetch = 0 : i64, scratch_operands = 0 : i64, tpu.core_type = #tpu.core_type<tc>, window_params = [{transform_indices = @transform_0, window_bounds = array<i64: 128, 32>}, {pipeline_mode = #tpu.pipeline_mode<synchronous>, transform_indices = @transform_1, window_bounds = array<i64: 1, 32>}, {pipeline_mode = #tpu.pipeline_mode<synchronous>, transform_indices = @transform_2, window_bounds = array<i64: 1, 32>}, {pipeline_mode = #tpu.pipeline_mode<synchronous>, transform_indices = @transform_3, window_bounds = array<i64: 32, 16>}, {transform_indices = @transform_4, window_bounds = array<i64: 128, 16>}]} {
    %c0 = arith.constant 0 : index
    %c0_0 = arith.constant 0 : index
    %0 = vector.load %arg1[%c0, %c0_0] : memref<128x32xf32, #tpu.memory_space<vmem>>, vector<128x32xf32>
    %c0_1 = arith.constant 0 : index
    %c0_2 = arith.constant 0 : index
    %1 = vector.load %arg2[%c0_1, %c0_2] : memref<1x32xf32, #tpu.memory_space<vmem>>, vector<1x32xf32>
    %2 = vector.broadcast %1 : vector<1x32xf32> to vector<128x32xf32>
    %3 = arith.mulf %0, %2 : vector<128x32xf32>
    %c0_3 = arith.constant 0 : index
    %c0_4 = arith.constant 0 : index
    %4 = vector.load %arg3[%c0_3, %c0_4] : memref<1x32xf32, #tpu.memory_space<vmem>>, vector<1x32xf32>
    %5 = vector.broadcast %4 : vector<1x32xf32> to vector<128x32xf32>
    %6 = arith.addf %3, %5 : vector<128x32xf32>
    %cst = arith.constant 0.000000e+00 : f32
    %7 = vector.broadcast %cst : f32 to vector<128x32xf32>
    %8 = arith.maximumf %6, %7 : vector<128x32xf32>
    %9 = arith.truncf %8 : vector<128x32xf32> to vector<128x32xbf16>
    %c0_5 = arith.constant 0 : index
    %c0_6 = arith.constant 0 : index
    %10 = vector.load %arg4[%c0_5, %c0_6] : memref<32x16xbf16, #tpu.memory_space<vmem>>, vector<32x16xbf16>
    %cst_7 = arith.constant dense<0.000000e+00> : vector<128x16xf32>
    %11 = tpu.matmul %9, %10, %cst_7 {dimension_numbers = #tpu.dot_dimension_numbers<[1], [0], [0], [1], [0, 0, 1, 1], [], []>} : vector<128x32xbf16>, vector<32x16xbf16>, vector<128x16xf32> -> vector<128x16xf32>
    %c0_8 = arith.constant 0 : index
    %c0_9 = arith.constant 0 : index
    %12 = vector.load %arg5[%c0_8, %c0_9] : memref<128x16xf32, #tpu.memory_space<vmem>>, vector<128x16xf32>
    tpu.vector_store %arg5[%c0_8, %c0_9], %11 {strides = array<i32>} : memref<128x16xf32, #tpu.memory_space<vmem>>, vector<128x16xf32>,
    return
  }
  func.func @transform_0(%arg0: i32) -> (i32, i32) {
    %c0_i32 = arith.constant 0 : i32
    %c0_i32_0 = arith.constant 0 : i32
    return %arg0, %c0_i32 : i32, i32
  }
  func.func @transform_1(%arg0: i32) -> (i32, i32) {
    %c0_i32 = arith.constant 0 : i32
    %c0_i32_0 = arith.constant 0 : i32
    %c0_i32_1 = arith.constant 0 : i32
    return %c0_i32, %c0_i32_0 : i32, i32
  }
  func.func @transform_2(%arg0: i32) -> (i32, i32) {
    %c0_i32 = arith.constant 0 : i32
    %c0_i32_0 = arith.constant 0 : i32
    %c0_i32_1 = arith.constant 0 : i32
    return %c0_i32, %c0_i32_0 : i32, i32
  }
  func.func @transform_3(%arg0: i32) -> (i32, i32) {
    %c0_i32 = arith.constant 0 : i32
    %c0_i32_0 = arith.constant 0 : i32
    %c0_i32_1 = arith.constant 0 : i32
    return %c0_i32, %c0_i32_0 : i32, i32
  }
  func.func @transform_4(%arg0: i32) -> (i32, i32) {
    %c0_i32 = arith.constant 0 : i32
    %c0_i32_0 = arith.constant 0 : i32
    return %arg0, %c0_i32 : i32, i32
  }
}

module attributes {stable_mosaic.version = 11 : i64} {
  func.func @kernel(%arg0: i32, %arg1: memref<32x16xf32, #tpu.memory_space<vmem>>, %arg2: memref<1x16xf32, #tpu.memory_space<vmem>>, %arg3: memref<1x16xf32, #tpu.memory_space<vmem>>, %arg4: memref<16x16xbf16, #tpu.memory_space<vmem>>, %arg5: memref<1x16xf32, #tpu.memory_space<vmem>>, %arg6: memref<1x16xf32, #tpu.memory_space<vmem>>, %arg7: memref<32x16xf32, #tpu.memory_space<vmem>>) attributes {dimension_semantics = [#tpu.dimension_semantics<parallel>], iteration_bounds = array<i64: 1>, scalar_prefetch = 0 : i64, scratch_operands = 0 : i64, tpu.core_type = #tpu.core_type<tc>, window_params = [{transform_indices = @transform_0, window_bounds = array<i64: 32, 16>}, {pipeline_mode = #tpu.pipeline_mode<synchronous>, transform_indices = @transform_1, window_bounds = array<i64: 1, 16>}, {pipeline_mode = #tpu.pipeline_mode<synchronous>, transform_indices = @transform_2, window_bounds = array<i64: 1, 16>}, {pipeline_mode = #tpu.pipeline_mode<synchronous>, transform_indices = @transform_3, window_bounds = array<i64: 16, 16>}, {pipeline_mode = #tpu.pipeline_mode<synchronous>, transform_indices = @transform_4, window_bounds = array<i64: 1, 16>}, {pipeline_mode = #tpu.pipeline_mode<synchronous>, transform_indices = @transform_5, window_bounds = array<i64: 1, 16>}, {transform_indices = @transform_6, window_bounds = array<i64: 32, 16>}]} {
    %c0 = arith.constant 0 : index
    %c0_0 = arith.constant 0 : index
    %0 = vector.load %arg1[%c0, %c0_0] : memref<32x16xf32, #tpu.memory_space<vmem>>, vector<32x16xf32>
    %c0_1 = arith.constant 0 : index
    %c0_2 = arith.constant 0 : index
    %1 = vector.load %arg2[%c0_1, %c0_2] : memref<1x16xf32, #tpu.memory_space<vmem>>, vector<1x16xf32>
    %2 = vector.broadcast %1 : vector<1x16xf32> to vector<32x16xf32>
    %3 = arith.mulf %0, %2 : vector<32x16xf32>
    %c0_3 = arith.constant 0 : index
    %c0_4 = arith.constant 0 : index
    %4 = vector.load %arg3[%c0_3, %c0_4] : memref<1x16xf32, #tpu.memory_space<vmem>>, vector<1x16xf32>
    %5 = vector.broadcast %4 : vector<1x16xf32> to vector<32x16xf32>
    %6 = arith.addf %3, %5 : vector<32x16xf32>
    %cst = arith.constant 0.000000e+00 : f32
    %7 = vector.broadcast %cst : f32 to vector<32x16xf32>
    %8 = arith.maximumf %6, %7 : vector<32x16xf32>
    %9 = arith.truncf %8 : vector<32x16xf32> to vector<32x16xbf16>
    %c0_5 = arith.constant 0 : index
    %c0_6 = arith.constant 0 : index
    %10 = vector.load %arg4[%c0_5, %c0_6] : memref<16x16xbf16, #tpu.memory_space<vmem>>, vector<16x16xbf16>
    %cst_7 = arith.constant dense<0.000000e+00> : vector<32x16xf32>
    %11 = tpu.matmul %9, %10, %cst_7 {dimension_numbers = #tpu.dot_dimension_numbers<[1], [0], [0], [1], [0, 0, 1, 1], [], []>} : vector<32x16xbf16>, vector<16x16xbf16>, vector<32x16xf32> -> vector<32x16xf32>
    %c0_8 = arith.constant 0 : index
    %c0_9 = arith.constant 0 : index
    %12 = vector.load %arg5[%c0_8, %c0_9] : memref<1x16xf32, #tpu.memory_space<vmem>>, vector<1x16xf32>
    %13 = vector.broadcast %12 : vector<1x16xf32> to vector<32x16xf32>
    %14 = arith.mulf %11, %13 : vector<32x16xf32>
    %c0_10 = arith.constant 0 : index
    %c0_11 = arith.constant 0 : index
    %15 = vector.load %arg6[%c0_10, %c0_11] : memref<1x16xf32, #tpu.memory_space<vmem>>, vector<1x16xf32>
    %16 = vector.broadcast %15 : vector<1x16xf32> to vector<32x16xf32>
    %17 = arith.addf %14, %16 : vector<32x16xf32>
    %cst_12 = arith.constant 0.000000e+00 : f32
    %18 = vector.broadcast %cst_12 : f32 to vector<32x16xf32>
    %19 = arith.maximumf %17, %18 : vector<32x16xf32>
    %c0_13 = arith.constant 0 : index
    %c0_14 = arith.constant 0 : index
    %20 = vector.load %arg7[%c0_13, %c0_14] : memref<32x16xf32, #tpu.memory_space<vmem>>, vector<32x16xf32>
    tpu.vector_store %arg7[%c0_13, %c0_14], %19 {strides = array<i32>} : memref<32x16xf32, #tpu.memory_space<vmem>>, vector<32x16xf32>,
    return
  }
  func.func @transform_0(%arg0: i32) -> (i32, i32) {
    %c0_i32 = arith.constant 0 : i32
    %c0_i32_0 = arith.constant 0 : i32
    return %arg0, %c0_i32 : i32, i32
  }
  func.func @transform_1(%arg0: i32) -> (i32, i32) {
    %c0_i32 = arith.constant 0 : i32
    %c0_i32_0 = arith.constant 0 : i32
    %c0_i32_1 = arith.constant 0 : i32
    return %c0_i32, %c0_i32_0 : i32, i32
  }
  func.func @transform_2(%arg0: i32) -> (i32, i32) {
    %c0_i32 = arith.constant 0 : i32
    %c0_i32_0 = arith.constant 0 : i32
    %c0_i32_1 = arith.constant 0 : i32
    return %c0_i32, %c0_i32_0 : i32, i32
  }
  func.func @transform_3(%arg0: i32) -> (i32, i32) {
    %c0_i32 = arith.constant 0 : i32
    %c0_i32_0 = arith.constant 0 : i32
    %c0_i32_1 = arith.constant 0 : i32
    return %c0_i32, %c0_i32_0 : i32, i32
  }
  func.func @transform_4(%arg0: i32) -> (i32, i32) {
    %c0_i32 = arith.constant 0 : i32
    %c0_i32_0 = arith.constant 0 : i32
    %c0_i32_1 = arith.constant 0 : i32
    return %c0_i32, %c0_i32_0 : i32, i32
  }
  func.func @transform_5(%arg0: i32) -> (i32, i32) {
    %c0_i32 = arith.constant 0 : i32
    %c0_i32_0 = arith.constant 0 : i32
    %c0_i32_1 = arith.constant 0 : i32
    return %c0_i32, %c0_i32_0 : i32, i32
  }
  func.func @transform_6(%arg0: i32) -> (i32, i32) {
    %c0_i32 = arith.constant 0 : i32
    %c0_i32_0 = arith.constant 0 : i32
    return %arg0, %c0_i32 : i32, i32
  }
}

module attributes {stable_mosaic.version = 11 : i64} {
  func.func @_avgpool_kernel(%arg0: i32, %arg1: memref<2x4x4x16xf32, #tpu.memory_space<vmem>>, %arg2: memref<2x4x4x16xf32, #tpu.memory_space<vmem>>, %arg3: memref<2x4x4x16xf32, #tpu.memory_space<vmem>>, %arg4: memref<2x4x4x16xf32, #tpu.memory_space<vmem>>, %arg5: memref<2x4x4x16xf32, #tpu.memory_space<vmem>>) attributes {dimension_semantics = [#tpu.dimension_semantics<arbitrary>], iteration_bounds = array<i64: 1>, scalar_prefetch = 0 : i64, scratch_operands = 0 : i64, tpu.core_type = #tpu.core_type<tc>, window_params = [{pipeline_mode = #tpu.pipeline_mode<synchronous>, transform_indices = @transform_0, window_bounds = array<i64: 2, 4, 4, 16>}, {pipeline_mode = #tpu.pipeline_mode<synchronous>, transform_indices = @transform_1, window_bounds = array<i64: 2, 4, 4, 16>}, {pipeline_mode = #tpu.pipeline_mode<synchronous>, transform_indices = @transform_2, window_bounds = array<i64: 2, 4, 4, 16>}, {pipeline_mode = #tpu.pipeline_mode<synchronous>, transform_indices = @transform_3, window_bounds = array<i64: 2, 4, 4, 16>}, {pipeline_mode = #tpu.pipeline_mode<synchronous>, transform_indices = @transform_4, window_bounds = array<i64: 2, 4, 4, 16>}]} {
    %c0 = arith.constant 0 : index
    %c0_0 = arith.constant 0 : index
    %c0_1 = arith.constant 0 : index
    %c0_2 = arith.constant 0 : index
    %0 = vector.load %arg1[%c0, %c0_0, %c0_1, %c0_2] : memref<2x4x4x16xf32, #tpu.memory_space<vmem>>, vector<2x4x4x16xf32>
    %c0_3 = arith.constant 0 : index
    %c0_4 = arith.constant 0 : index
    %c0_5 = arith.constant 0 : index
    %c0_6 = arith.constant 0 : index
    %1 = vector.load %arg2[%c0_3, %c0_4, %c0_5, %c0_6] : memref<2x4x4x16xf32, #tpu.memory_space<vmem>>, vector<2x4x4x16xf32>
    %2 = arith.addf %0, %1 : vector<2x4x4x16xf32>
    %c0_7 = arith.constant 0 : index
    %c0_8 = arith.constant 0 : index
    %c0_9 = arith.constant 0 : index
    %c0_10 = arith.constant 0 : index
    %3 = vector.load %arg3[%c0_7, %c0_8, %c0_9, %c0_10] : memref<2x4x4x16xf32, #tpu.memory_space<vmem>>, vector<2x4x4x16xf32>
    %4 = arith.addf %2, %3 : vector<2x4x4x16xf32>
    %c0_11 = arith.constant 0 : index
    %c0_12 = arith.constant 0 : index
    %c0_13 = arith.constant 0 : index
    %c0_14 = arith.constant 0 : index
    %5 = vector.load %arg4[%c0_11, %c0_12, %c0_13, %c0_14] : memref<2x4x4x16xf32, #tpu.memory_space<vmem>>, vector<2x4x4x16xf32>
    %6 = arith.addf %4, %5 : vector<2x4x4x16xf32>
    %cst = arith.constant 2.500000e-01 : f32
    %7 = vector.broadcast %cst : f32 to vector<2x4x4x16xf32>
    %8 = arith.mulf %7, %6 : vector<2x4x4x16xf32>
    %c0_15 = arith.constant 0 : index
    %c0_16 = arith.constant 0 : index
    %c0_17 = arith.constant 0 : index
    %c0_18 = arith.constant 0 : index
    %9 = vector.load %arg5[%c0_15, %c0_16, %c0_17, %c0_18] : memref<2x4x4x16xf32, #tpu.memory_space<vmem>>, vector<2x4x4x16xf32>
    tpu.vector_store %arg5[%c0_15, %c0_16, %c0_17, %c0_18], %8 {strides = array<i32>} : memref<2x4x4x16xf32, #tpu.memory_space<vmem>>, vector<2x4x4x16xf32>,
    return
  }
  func.func @transform_0(%arg0: i32) -> (i32, i32, i32, i32) {
    %c0_i32 = arith.constant 0 : i32
    %c0_i32_0 = arith.constant 0 : i32
    %c0_i32_1 = arith.constant 0 : i32
    %c0_i32_2 = arith.constant 0 : i32
    %c0_i32_3 = arith.constant 0 : i32
    return %c0_i32, %c0_i32_0, %c0_i32_1, %c0_i32_2 : i32, i32, i32, i32
  }
  func.func @transform_1(%arg0: i32) -> (i32, i32, i32, i32) {
    %c0_i32 = arith.constant 0 : i32
    %c0_i32_0 = arith.constant 0 : i32
    %c0_i32_1 = arith.constant 0 : i32
    %c0_i32_2 = arith.constant 0 : i32
    %c0_i32_3 = arith.constant 0 : i32
    return %c0_i32, %c0_i32_0, %c0_i32_1, %c0_i32_2 : i32, i32, i32, i32
  }
  func.func @transform_2(%arg0: i32) -> (i32, i32, i32, i32) {
    %c0_i32 = arith.constant 0 : i32
    %c0_i32_0 = arith.constant 0 : i32
    %c0_i32_1 = arith.constant 0 : i32
    %c0_i32_2 = arith.constant 0 : i32
    %c0_i32_3 = arith.constant 0 : i32
    return %c0_i32, %c0_i32_0, %c0_i32_1, %c0_i32_2 : i32, i32, i32, i32
  }
  func.func @transform_3(%arg0: i32) -> (i32, i32, i32, i32) {
    %c0_i32 = arith.constant 0 : i32
    %c0_i32_0 = arith.constant 0 : i32
    %c0_i32_1 = arith.constant 0 : i32
    %c0_i32_2 = arith.constant 0 : i32
    %c0_i32_3 = arith.constant 0 : i32
    return %c0_i32, %c0_i32_0, %c0_i32_1, %c0_i32_2 : i32, i32, i32, i32
  }
  func.func @transform_4(%arg0: i32) -> (i32, i32, i32, i32) {
    %c0_i32 = arith.constant 0 : i32
    %c0_i32_0 = arith.constant 0 : i32
    %c0_i32_1 = arith.constant 0 : i32
    %c0_i32_2 = arith.constant 0 : i32
    %c0_i32_3 = arith.constant 0 : i32
    return %c0_i32, %c0_i32_0, %c0_i32_1, %c0_i32_2 : i32, i32, i32, i32
  }
}

module attributes {stable_mosaic.version = 11 : i64} {
  func.func @kernel(%arg0: i32, %arg1: memref<32x144xf32, #tpu.memory_space<vmem>>, %arg2: memref<144x8xbf16, #tpu.memory_space<vmem>>, %arg3: memref<32x8xf32, #tpu.memory_space<vmem>>) attributes {dimension_semantics = [#tpu.dimension_semantics<parallel>], iteration_bounds = array<i64: 1>, scalar_prefetch = 0 : i64, scratch_operands = 0 : i64, tpu.core_type = #tpu.core_type<tc>, window_params = [{transform_indices = @transform_0, window_bounds = array<i64: 32, 144>}, {pipeline_mode = #tpu.pipeline_mode<synchronous>, transform_indices = @transform_1, window_bounds = array<i64: 144, 8>}, {transform_indices = @transform_2, window_bounds = array<i64: 32, 8>}]} {
    %c0 = arith.constant 0 : index
    %c0_0 = arith.constant 0 : index
    %0 = vector.load %arg1[%c0, %c0_0] : memref<32x144xf32, #tpu.memory_space<vmem>>, vector<32x144xf32>
    %1 = arith.truncf %0 : vector<32x144xf32> to vector<32x144xbf16>
    %c0_1 = arith.constant 0 : index
    %c0_2 = arith.constant 0 : index
    %2 = vector.load %arg2[%c0_1, %c0_2] : memref<144x8xbf16, #tpu.memory_space<vmem>>, vector<144x8xbf16>
    %cst = arith.constant dense<0.000000e+00> : vector<32x8xf32>
    %3 = tpu.matmul %1, %2, %cst {dimension_numbers = #tpu.dot_dimension_numbers<[1], [0], [0], [1], [0, 0, 1, 1], [], []>} : vector<32x144xbf16>, vector<144x8xbf16>, vector<32x8xf32> -> vector<32x8xf32>
    %c0_3 = arith.constant 0 : index
    %c0_4 = arith.constant 0 : index
    %4 = vector.load %arg3[%c0_3, %c0_4] : memref<32x8xf32, #tpu.memory_space<vmem>>, vector<32x8xf32>
    tpu.vector_store %arg3[%c0_3, %c0_4], %3 {strides = array<i32>} : memref<32x8xf32, #tpu.memory_space<vmem>>, vector<32x8xf32>,
    return
  }
  func.func @transform_0(%arg0: i32) -> (i32, i32) {
    %c0_i32 = arith.constant 0 : i32
    %c0_i32_0 = arith.constant 0 : i32
    return %arg0, %c0_i32 : i32, i32
  }
  func.func @transform_1(%arg0: i32) -> (i32, i32) {
    %c0_i32 = arith.constant 0 : i32
    %c0_i32_0 = arith.constant 0 : i32
    %c0_i32_1 = arith.constant 0 : i32
    return %c0_i32, %c0_i32_0 : i32, i32
  }
  func.func @transform_2(%arg0: i32) -> (i32, i32) {
    %c0_i32 = arith.constant 0 : i32
    %c0_i32_0 = arith.constant 0 : i32
    return %arg0, %c0_i32 : i32, i32
  }
}

module attributes {stable_mosaic.version = 11 : i64} {
  func.func @_tail_kernel(%arg0: i32, %arg1: memref<2x16x32xf32, #tpu.memory_space<vmem>>, %arg2: memref<1x1x32xf32, #tpu.memory_space<vmem>>, %arg3: memref<1x1x32xf32, #tpu.memory_space<vmem>>, %arg4: memref<32x2xbf16, #tpu.memory_space<vmem>>, %arg5: memref<1x2xf32, #tpu.memory_space<vmem>>, %arg6: memref<2x2xf32, #tpu.memory_space<vmem>>) attributes {dimension_semantics = [#tpu.dimension_semantics<arbitrary>], iteration_bounds = array<i64: 1>, scalar_prefetch = 0 : i64, scratch_operands = 0 : i64, tpu.core_type = #tpu.core_type<tc>, window_params = [{pipeline_mode = #tpu.pipeline_mode<synchronous>, transform_indices = @transform_0, window_bounds = array<i64: 2, 16, 32>}, {pipeline_mode = #tpu.pipeline_mode<synchronous>, transform_indices = @transform_1, window_bounds = array<i64: 1, 1, 32>}, {pipeline_mode = #tpu.pipeline_mode<synchronous>, transform_indices = @transform_2, window_bounds = array<i64: 1, 1, 32>}, {pipeline_mode = #tpu.pipeline_mode<synchronous>, transform_indices = @transform_3, window_bounds = array<i64: 32, 2>}, {pipeline_mode = #tpu.pipeline_mode<synchronous>, transform_indices = @transform_4, window_bounds = array<i64: 1, 2>}, {pipeline_mode = #tpu.pipeline_mode<synchronous>, transform_indices = @transform_5, window_bounds = array<i64: 2, 2>}]} {
    %c0 = arith.constant 0 : index
    %c0_0 = arith.constant 0 : index
    %c0_1 = arith.constant 0 : index
    %0 = vector.load %arg1[%c0, %c0_0, %c0_1] : memref<2x16x32xf32, #tpu.memory_space<vmem>>, vector<2x16x32xf32>
    %c0_2 = arith.constant 0 : index
    %c0_3 = arith.constant 0 : index
    %c0_4 = arith.constant 0 : index
    %1 = vector.load %arg2[%c0_2, %c0_3, %c0_4] : memref<1x1x32xf32, #tpu.memory_space<vmem>>, vector<1x1x32xf32>
    %2 = vector.broadcast %1 : vector<1x1x32xf32> to vector<2x16x32xf32>
    %3 = arith.mulf %0, %2 : vector<2x16x32xf32>
    %c0_5 = arith.constant 0 : index
    %c0_6 = arith.constant 0 : index
    %c0_7 = arith.constant 0 : index
    %4 = vector.load %arg3[%c0_5, %c0_6, %c0_7] : memref<1x1x32xf32, #tpu.memory_space<vmem>>, vector<1x1x32xf32>
    %5 = vector.broadcast %4 : vector<1x1x32xf32> to vector<2x16x32xf32>
    %6 = arith.addf %3, %5 : vector<2x16x32xf32>
    %cst = arith.constant 0.000000e+00 : f32
    %7 = vector.broadcast %cst : f32 to vector<2x16x32xf32>
    %8 = arith.maximumf %6, %7 : vector<2x16x32xf32>
    %cst_8 = arith.constant dense<0.000000e+00> : vector<2x32xf32>
    %9 = vector.multi_reduction <add>, %8, %cst_8 [1] : vector<2x16x32xf32> to vector<2x32xf32>
    %cst_9 = arith.constant 1.600000e+01 : f32
    %10 = vector.broadcast %cst_9 : f32 to vector<2x32xf32>
    %11 = arith.divf %9, %10 : vector<2x32xf32>
    %12 = arith.truncf %11 : vector<2x32xf32> to vector<2x32xbf16>
    %c0_10 = arith.constant 0 : index
    %c0_11 = arith.constant 0 : index
    %13 = vector.load %arg4[%c0_10, %c0_11] : memref<32x2xbf16, #tpu.memory_space<vmem>>, vector<32x2xbf16>
    %cst_12 = arith.constant dense<0.000000e+00> : vector<2x2xf32>
    %14 = tpu.matmul %12, %13, %cst_12 {dimension_numbers = #tpu.dot_dimension_numbers<[1], [0], [0], [1], [0, 0, 1, 1], [], []>} : vector<2x32xbf16>, vector<32x2xbf16>, vector<2x2xf32> -> vector<2x2xf32>
    %c0_13 = arith.constant 0 : index
    %c0_14 = arith.constant 0 : index
    %15 = vector.load %arg5[%c0_13, %c0_14] : memref<1x2xf32, #tpu.memory_space<vmem>>, vector<1x2xf32>
    %16 = vector.broadcast %15 : vector<1x2xf32> to vector<2x2xf32>
    %17 = arith.addf %14, %16 : vector<2x2xf32>
    %c0_15 = arith.constant 0 : index
    %c0_16 = arith.constant 0 : index
    %18 = vector.load %arg6[%c0_15, %c0_16] : memref<2x2xf32, #tpu.memory_space<vmem>>, vector<2x2xf32>
    tpu.vector_store %arg6[%c0_15, %c0_16], %17 {strides = array<i32>} : memref<2x2xf32, #tpu.memory_space<vmem>>, vector<2x2xf32>,
    return
  }
  func.func @transform_0(%arg0: i32) -> (i32, i32, i32) {
    %c0_i32 = arith.constant 0 : i32
    %c0_i32_0 = arith.constant 0 : i32
    %c0_i32_1 = arith.constant 0 : i32
    %c0_i32_2 = arith.constant 0 : i32
    return %c0_i32, %c0_i32_0, %c0_i32_1 : i32, i32, i32
  }
  func.func @transform_1(%arg0: i32) -> (i32, i32, i32) {
    %c0_i32 = arith.constant 0 : i32
    %c0_i32_0 = arith.constant 0 : i32
    %c0_i32_1 = arith.constant 0 : i32
    %c0_i32_2 = arith.constant 0 : i32
    return %c0_i32, %c0_i32_0, %c0_i32_1 : i32, i32, i32
  }
  func.func @transform_2(%arg0: i32) -> (i32, i32, i32) {
    %c0_i32 = arith.constant 0 : i32
    %c0_i32_0 = arith.constant 0 : i32
    %c0_i32_1 = arith.constant 0 : i32
    %c0_i32_2 = arith.constant 0 : i32
    return %c0_i32, %c0_i32_0, %c0_i32_1 : i32, i32, i32
  }
  func.func @transform_3(%arg0: i32) -> (i32, i32) {
    %c0_i32 = arith.constant 0 : i32
    %c0_i32_0 = arith.constant 0 : i32
    %c0_i32_1 = arith.constant 0 : i32
    return %c0_i32, %c0_i32_0 : i32, i32
  }
  func.func @transform_4(%arg0: i32) -> (i32, i32) {
    %c0_i32 = arith.constant 0 : i32
    %c0_i32_0 = arith.constant 0 : i32
    %c0_i32_1 = arith.constant 0 : i32
    return %c0_i32, %c0_i32_0 : i32, i32
  }
  func.func @transform_5(%arg0: i32) -> (i32, i32) {
    %c0_i32 = arith.constant 0 : i32
    %c0_i32_0 = arith.constant 0 : i32
    %c0_i32_1 = arith.constant 0 : i32
    return %c0_i32, %c0_i32_0 : i32, i32
  }
}

module attributes {stable_mosaic.version = 11 : i64} {
  func.func @kernel(%arg0: i32, %arg1: memref<32x24xf32, #tpu.memory_space<vmem>>, %arg2: memref<1x24xf32, #tpu.memory_space<vmem>>, %arg3: memref<1x24xf32, #tpu.memory_space<vmem>>, %arg4: memref<24x16xbf16, #tpu.memory_space<vmem>>, %arg5: memref<1x16xf32, #tpu.memory_space<vmem>>, %arg6: memref<1x16xf32, #tpu.memory_space<vmem>>, %arg7: memref<32x16xf32, #tpu.memory_space<vmem>>) attributes {dimension_semantics = [#tpu.dimension_semantics<parallel>], iteration_bounds = array<i64: 1>, scalar_prefetch = 0 : i64, scratch_operands = 0 : i64, tpu.core_type = #tpu.core_type<tc>, window_params = [{transform_indices = @transform_0, window_bounds = array<i64: 32, 24>}, {pipeline_mode = #tpu.pipeline_mode<synchronous>, transform_indices = @transform_1, window_bounds = array<i64: 1, 24>}, {pipeline_mode = #tpu.pipeline_mode<synchronous>, transform_indices = @transform_2, window_bounds = array<i64: 1, 24>}, {pipeline_mode = #tpu.pipeline_mode<synchronous>, transform_indices = @transform_3, window_bounds = array<i64: 24, 16>}, {pipeline_mode = #tpu.pipeline_mode<synchronous>, transform_indices = @transform_4, window_bounds = array<i64: 1, 16>}, {pipeline_mode = #tpu.pipeline_mode<synchronous>, transform_indices = @transform_5, window_bounds = array<i64: 1, 16>}, {transform_indices = @transform_6, window_bounds = array<i64: 32, 16>}]} {
    %c0 = arith.constant 0 : index
    %c0_0 = arith.constant 0 : index
    %0 = vector.load %arg1[%c0, %c0_0] : memref<32x24xf32, #tpu.memory_space<vmem>>, vector<32x24xf32>
    %c0_1 = arith.constant 0 : index
    %c0_2 = arith.constant 0 : index
    %1 = vector.load %arg2[%c0_1, %c0_2] : memref<1x24xf32, #tpu.memory_space<vmem>>, vector<1x24xf32>
    %2 = vector.broadcast %1 : vector<1x24xf32> to vector<32x24xf32>
    %3 = arith.mulf %0, %2 : vector<32x24xf32>
    %c0_3 = arith.constant 0 : index
    %c0_4 = arith.constant 0 : index
    %4 = vector.load %arg3[%c0_3, %c0_4] : memref<1x24xf32, #tpu.memory_space<vmem>>, vector<1x24xf32>
    %5 = vector.broadcast %4 : vector<1x24xf32> to vector<32x24xf32>
    %6 = arith.addf %3, %5 : vector<32x24xf32>
    %cst = arith.constant 0.000000e+00 : f32
    %7 = vector.broadcast %cst : f32 to vector<32x24xf32>
    %8 = arith.maximumf %6, %7 : vector<32x24xf32>
    %9 = arith.truncf %8 : vector<32x24xf32> to vector<32x24xbf16>
    %c0_5 = arith.constant 0 : index
    %c0_6 = arith.constant 0 : index
    %10 = vector.load %arg4[%c0_5, %c0_6] : memref<24x16xbf16, #tpu.memory_space<vmem>>, vector<24x16xbf16>
    %cst_7 = arith.constant dense<0.000000e+00> : vector<32x16xf32>
    %11 = tpu.matmul %9, %10, %cst_7 {dimension_numbers = #tpu.dot_dimension_numbers<[1], [0], [0], [1], [0, 0, 1, 1], [], []>} : vector<32x24xbf16>, vector<24x16xbf16>, vector<32x16xf32> -> vector<32x16xf32>
    %c0_8 = arith.constant 0 : index
    %c0_9 = arith.constant 0 : index
    %12 = vector.load %arg5[%c0_8, %c0_9] : memref<1x16xf32, #tpu.memory_space<vmem>>, vector<1x16xf32>
    %13 = vector.broadcast %12 : vector<1x16xf32> to vector<32x16xf32>
    %14 = arith.mulf %11, %13 : vector<32x16xf32>
    %c0_10 = arith.constant 0 : index
    %c0_11 = arith.constant 0 : index
    %15 = vector.load %arg6[%c0_10, %c0_11] : memref<1x16xf32, #tpu.memory_space<vmem>>, vector<1x16xf32>
    %16 = vector.broadcast %15 : vector<1x16xf32> to vector<32x16xf32>
    %17 = arith.addf %14, %16 : vector<32x16xf32>
    %cst_12 = arith.constant 0.000000e+00 : f32
    %18 = vector.broadcast %cst_12 : f32 to vector<32x16xf32>
    %19 = arith.maximumf %17, %18 : vector<32x16xf32>
    %c0_13 = arith.constant 0 : index
    %c0_14 = arith.constant 0 : index
    %20 = vector.load %arg7[%c0_13, %c0_14] : memref<32x16xf32, #tpu.memory_space<vmem>>, vector<32x16xf32>
    tpu.vector_store %arg7[%c0_13, %c0_14], %19 {strides = array<i32>} : memref<32x16xf32, #tpu.memory_space<vmem>>, vector<32x16xf32>,
    return
  }
  func.func @transform_0(%arg0: i32) -> (i32, i32) {
    %c0_i32 = arith.constant 0 : i32
    %c0_i32_0 = arith.constant 0 : i32
    return %arg0, %c0_i32 : i32, i32
  }
  func.func @transform_1(%arg0: i32) -> (i32, i32) {
    %c0_i32 = arith.constant 0 : i32
    %c0_i32_0 = arith.constant 0 : i32
    %c0_i32_1 = arith.constant 0 : i32
    return %c0_i32, %c0_i32_0 : i32, i32
  }
  func.func @transform_2(%arg0: i32) -> (i32, i32) {
    %c0_i32 = arith.constant 0 : i32
    %c0_i32_0 = arith.constant 0 : i32
    %c0_i32_1 = arith.constant 0 : i32
    return %c0_i32, %c0_i32_0 : i32, i32
  }
  func.func @transform_3(%arg0: i32) -> (i32, i32) {
    %c0_i32 = arith.constant 0 : i32
    %c0_i32_0 = arith.constant 0 : i32
    %c0_i32_1 = arith.constant 0 : i32
    return %c0_i32, %c0_i32_0 : i32, i32
  }
  func.func @transform_4(%arg0: i32) -> (i32, i32) {
    %c0_i32 = arith.constant 0 : i32
    %c0_i32_0 = arith.constant 0 : i32
    %c0_i32_1 = arith.constant 0 : i32
    return %c0_i32, %c0_i32_0 : i32, i32
  }
  func.func @transform_5(%arg0: i32) -> (i32, i32) {
    %c0_i32 = arith.constant 0 : i32
    %c0_i32_0 = arith.constant 0 : i32
    %c0_i32_1 = arith.constant 0 : i32
    return %c0_i32, %c0_i32_0 : i32, i32
  }
  func.func @transform_6(%arg0: i32) -> (i32, i32) {
    %c0_i32 = arith.constant 0 : i32
    %c0_i32_0 = arith.constant 0 : i32
    return %arg0, %c0_i32 : i32, i32
  }
}

</mosaic_0001>

<bundles_post_ra>
// kernel: densenet_forward.15
= control target key start
LH: loop header
LB: loop body
LE: loop exit
PB: predicated region body
PF: predicated region fallthrough
CT: control target
= control target key end

     0   :  { %vm118_vm0 = vcmask 130048   ;;  %s607_s3 = inlined_call_operand.vmem [shape: bf16[16,16], index: 3, kind: input, shape index: {}]   ;;  %s608_s0 = inlined_call_operand.vmem [shape: f32[128,16], index: 0, kind: input, shape index: {}]   ;;  %s609_s1 = inlined_call_operand.vmem [shape: f32[1,16], index: 1, kind: input, shape index: {}]   ;;  %s610_s2 = inlined_call_operand.vmem [shape: f32[1,16], index: 2, kind: input, shape index: {}]   ;;  %s611_s4 = inlined_call_operand.vmem [shape: f32[1,16], index: 4, kind: input, shape index: {}]   ;;  %s612_s5 = inlined_call_operand.vmem [shape: f32[1,16], index: 5, kind: input, shape index: {}]   ;;  %s613_s6 = inlined_call_operand.vmem [shape: f32[128,16], index: 6, kind: output, shape index: {}]  }
   0x1   :  { %v364_v0 = vld [vmem:[%s607_s3] sm:$0xff]   ;;  %v25_v2 = vld [vmem:[%s608_s0 + $0x8] sm:$0xff]  ;;  %v26_v11 = vld [vmem:[%s608_s0 + $0x10] sm:$0xff] }
   0x2   :  { %v24_v1 = vld [vmem:[%s608_s0] sm:$0xff]  ;;  %344 = vmatprep.subr.bf16.mxu0 %v364_v0  ;;  %362 = vmatprep.subr.bf16.mxu1 %v364_v0  ;;  %v33_v8 = vld [vmem:[%s608_s0 + $0x48] sm:$0xff]  ;;  %v27_v12 = vld [vmem:[%s608_s0 + $0x18] sm:$0xff] }
   0x3   :  { %v412_v3 = vld [vmem:[%s609_s1] ss:$0 sm:$0xff]  ;;  %345 = vmatpush3.bf16.msra.mxu0 %v364_v0  ;;  %363 = vmatpush3.bf16.msra.mxu1 %v364_v0  ;;  %v34_v13 = vld [vmem:[%s608_s0 + $0x50] sm:$0xff]  ;;  %v35_v18 = vld [vmem:[%s608_s0 + $0x58] sm:$0xff] }
   0x4   :  { %v47_v4 = vmul.f32 %v412_v3, %v24_v1  ;;  %v48_v5 = vmul.f32 %v412_v3, %v25_v2  ;;  %v419_v6 = vld [vmem:[%s610_s2] ss:$0 sm:$0xff]  ;;  %v56_v10 = vmul.f32 %v412_v3, %v33_v8  ;;  %v49_v16 = vmul.f32 %v412_v3, %v26_v11  ;;  %v29_v28 = vld [vmem:[%s608_s0 + $0x28] sm:$0xff]  ;;  %v30_v39 = vld [vmem:[%s608_s0 + $0x30] sm:$0xff] }
   0x5   :  { %v32_v7 = vld [vmem:[%s608_s0 + $0x40] sm:$0xff]  ;;  %v50_v17 = vmul.f32 %v412_v3, %v27_v12  ;;  %v57_v21 = vmul.f32 %v412_v3, %v34_v13  ;;  %v58_v22 = vmul.f32 %v412_v3, %v35_v18  ;;  %v37_v34 = vld [vmem:[%s608_s0 + $0x68] sm:$0xff]  ;;  %v31_v40 = vld [vmem:[%s608_s0 + $0x38] sm:$0xff]  ;;  %v52_v44 = vmul.f32 %v412_v3, %v29_v28 }
   0x6   :  { %v55_v9 = vmul.f32 %v412_v3, %v32_v7  ;;  %v70_v14 = vadd.f32 %v419_v6, %v47_v4  ;;  %v71_v15 = vadd.f32 %v419_v6, %v48_v5  ;;  %v79_v20 = vadd.f32 %v419_v6, %v56_v10  ;;  %v28_v23 = vld [vmem:[%s608_s0 + $0x20] sm:$0xff]  ;;  %v38_v45 = vld [vmem:[%s608_s0 + $0x70] sm:$0xff]  ;;  %v39_v50 = vld [vmem:[%s608_s0 + $0x78] sm:$0xff] }
   0x7   :  { %v72_v26 = vadd.f32 %v419_v6, %v49_v16  ;;  %v73_v27 = vadd.f32 %v419_v6, %v50_v17  ;;  %v80_v31 = vadd.f32 %v419_v6, %v57_v21  ;;  %v81_v32 = vadd.f32 %v419_v6, %v58_v22  ;;  %v36_v33 = vld [vmem:[%s608_s0 + $0x60] sm:$0xff] }
   0x8   :  { %v78_v19 = vadd.f32 %v419_v6, %v55_v9  ;;  %v86_v24 = vmax.f32 %v70_v14, 0.0  ;;  %v87_v25 = vmax.f32 %v71_v15, 0.0  ;;  %v95_v30 = vmax.f32 %v79_v20, 0.0 }
   0x9   :  { %v88_v36 = vmax.f32 %v72_v26, 0.0  ;;  %v89_v37 = vmax.f32 %v73_v27, 0.0  ;;  %v51_v38 = vmul.f32 %v412_v3, %v28_v23  ;;  %v96_v42 = vmax.f32 %v80_v31, 0.0 }
   0xa   :  { %v94_v29 = vmax.f32 %v78_v19, 0.0  ;;  %v102_v35 = vpack.c.bf16 %v87_v25, %v86_v24  ;;  %v97_v43 = vmax.f32 %v81_v32, 0.0  ;;  %v59_v48 = vmul.f32 %v412_v3, %v36_v33 }
   0xb   :  { %v103_v46 = vpack.c.bf16 %v89_v37, %v88_v36  ;;  %v74_v47 = vadd.f32 %v419_v6, %v51_v38  ;;  %v60_v49 = vmul.f32 %v412_v3, %v37_v34  ;;  %v75_v52 = vadd.f32 %v419_v6, %v52_v44 }
   0xc   :  { %v106_v41 = vpack.c.bf16 %v95_v30, %v94_v29  ;;  %346 = vmatprep.mubr.msk.bf16.mxu0 %vm118_vm0, %v102_v35  ;;  %v107_v51 = vpack.c.bf16 %v97_v43, %v96_v42  ;;  %v53_v53 = vmul.f32 %v412_v3, %v30_v39  ;;  %v54_v54 = vmul.f32 %v412_v3, %v31_v40 }
   0xd   :  { %347 = vmatmul.mubr.msk.bf16.vlgmr.msra.gmra.mrb[0].mxu0 %vm118_vm0, %v103_v46  ;;  %v90_v55 = vmax.f32 %v74_v47, 0.0  ;;  %v82_v56 = vadd.f32 %v419_v6, %v59_v48  ;;  %v83_v57 = vadd.f32 %v419_v6, %v60_v49  ;;  %v61_v58 = vmul.f32 %v412_v3, %v38_v45 }
   0xe   :  { %354 = vmatprep.mubr.msk.bf16.mxu1 %vm118_vm0, %v106_v41  ;;  %v91_v59 = vmax.f32 %v75_v52, 0.0  ;;  %v76_v60 = vadd.f32 %v419_v6, %v53_v53  ;;  %v77_v61 = vadd.f32 %v419_v6, %v54_v54  ;;  %v62_v62 = vmul.f32 %v412_v3, %v39_v50  ;;  %v504_v3 = vld [vmem:[%s611_s4] ss:$0 sm:$0xff] }
   0xf   :  { %355 = vmatmul.mubr.msk.bf16.vlgmr.msra.gmra.mrb[0].mxu1 %vm118_vm0, %v107_v51  ;;  %v98_v63 = vmax.f32 %v82_v56, 0.0  ;;  %v99_v0 = vmax.f32 %v83_v57, 0.0  ;;  %v84_v1 = vadd.f32 %v419_v6, %v61_v58 }
  0x10   :  { %v104_v2 = vpack.c.bf16 %v91_v59, %v90_v55  ;;  %v92_v4 = vmax.f32 %v76_v60, 0.0  ;;  %v93_v5 = vmax.f32 %v77_v61, 0.0  ;;  %v85_v7 = vadd.f32 %v419_v6, %v62_v62  ;;  %v509_v6 = vld [vmem:[%s612_s5] ss:$0 sm:$0xff] }
  0x11   :  { %v108_v8 = vpack.c.bf16 %v99_v0, %v98_v63  ;;  %v100_v9 = vmax.f32 %v84_v1, 0.0 }
  0x12   :  { %350 = vmatprep.mubr.msk.bf16.mxu0 %vm118_vm0, %v104_v2  ;;  %v105_v10 = vpack.c.bf16 %v93_v5, %v92_v4  ;;  %v101_v11 = vmax.f32 %v85_v7, 0.0 }
  0x13   :  { %358 = vmatprep.mubr.msk.bf16.mxu1 %vm118_vm0, %v108_v8 }
  0x14   :  { %v109_v12 = vpack.c.bf16 %v101_v11, %v100_v9 }
  0x15   :  { %351 = vmatmul.mubr.msk.bf16.gmra.mrb[4].mxu0 %vm118_vm0, %v105_v10 }
  0x17   :  { %359 = vmatmul.mubr.msk.bf16.gmra.mrb[4].mxu1 %vm118_vm0, %v109_v12 }
  0xe0   :  { %v348_v13 = vpop.f32.mrb[0].mxu0 }
  0xe1   :  { %v249_v14 = vmul.f32 %v348_v13, %v504_v3  ;;  %v177_v16 = vpop.f32.mrb[1].mxu0 }
  0xe2   :  { %v356_v15 = vpop.f32.mrb[0].mxu1  ;;  %v247_v18 = vmul.f32 %v504_v3, %v177_v16  ;;  %v349_v20 = vpop.f32.mrb[2].mxu0 }
  0xe3   :  { %v257_v17 = vmul.f32 %v356_v15, %v504_v3  ;;  %v209_v19 = vpop.f32.mrb[1].mxu1  ;;  %v272_v21 = vadd.f32 %v509_v6, %v249_v14  ;;  %v250_v23 = vmul.f32 %v349_v20, %v504_v3  ;;  %v180_v25 = vpop.f32.mrb[3].mxu0 }
  0xe4   :  { %v255_v22 = vmul.f32 %v504_v3, %v209_v19  ;;  %v357_v24 = vpop.f32.mrb[2].mxu1  ;;  %v270_v27 = vadd.f32 %v509_v6, %v247_v18  ;;  %v248_v29 = vmul.f32 %v504_v3, %v180_v25 }
  0xe5   :  { %v280_v26 = vadd.f32 %v509_v6, %v257_v17  ;;  %v258_v28 = vmul.f32 %v357_v24, %v504_v3  ;;  %v212_v30 = vpop.f32.mrb[3].mxu1  ;;  %v288_v31 = vmax.f32 %v272_v21, 0.0  ;;  %v273_v33 = vadd.f32 %v509_v6, %v250_v23 }
  0xe6   :  { %v278_v32 = vadd.f32 %v509_v6, %v255_v22  ;;  %v256_v34 = vmul.f32 %v504_v3, %v212_v30  ;;  %v286_v36 = vmax.f32 %v270_v27, 0.0  ;;  %v271_v38 = vadd.f32 %v509_v6, %v248_v29 }
  0xe7   :  { %v296_v35 = vmax.f32 %v280_v26, 0.0  ;;  %v281_v37 = vadd.f32 %v509_v6, %v258_v28  ;;  %304 = vst.msk [vmem:[%s613_s6 + $0x10] sm:$0xff] %vm118_vm0, %v288_v31  ;;  %v289_v40 = vmax.f32 %v273_v33, 0.0 }
  0xe8   :  { %v294_v39 = vmax.f32 %v278_v32, 0.0  ;;  %v279_v41 = vadd.f32 %v509_v6, %v256_v34  ;;  %302 = vst.msk [vmem:[%s613_s6] sm:$0xff] %vm118_vm0, %v286_v36  ;;  %v287_v43 = vmax.f32 %v271_v38, 0.0  ;;  %v352_v44 = vpop.f32.mrb[4].mxu0 }
  0xe9   :  { %312 = vst.msk [vmem:[%s613_s6 + $0x50] sm:$0xff] %vm118_vm0, %v296_v35  ;;  %v297_v42 = vmax.f32 %v281_v37, 0.0  ;;  %305 = vst.msk [vmem:[%s613_s6 + $0x18] sm:$0xff] %vm118_vm0, %v289_v40  ;;  %v253_v46 = vmul.f32 %v352_v44, %v504_v3  ;;  %v193_v48 = vpop.f32.mrb[5].mxu0 }
  0xea   :  { %310 = vst.msk [vmem:[%s613_s6 + $0x40] sm:$0xff] %vm118_vm0, %v294_v39  ;;  %v295_v45 = vmax.f32 %v279_v41, 0.0  ;;  %v360_v47 = vpop.f32.mrb[4].mxu1  ;;  %303 = vst.msk [vmem:[%s613_s6 + $0x8] sm:$0xff] %vm118_vm0, %v287_v43  ;;  %v251_v50 = vmul.f32 %v504_v3, %v193_v48  ;;  %v353_v52 = vpop.f32.mrb[6].mxu0 }
  0xeb   :  { %313 = vst.msk [vmem:[%s613_s6 + $0x58] sm:$0xff] %vm118_vm0, %v297_v42  ;;  %v261_v49 = vmul.f32 %v360_v47, %v504_v3  ;;  %v225_v51 = vpop.f32.mrb[5].mxu1  ;;  %v276_v53 = vadd.f32 %v509_v6, %v253_v46  ;;  %v254_v55 = vmul.f32 %v353_v52, %v504_v3  ;;  %v196_v57 = vpop.f32.mrb[7].mxu0 }
  0xec   :  { %311 = vst.msk [vmem:[%s613_s6 + $0x48] sm:$0xff] %vm118_vm0, %v295_v45  ;;  %v259_v54 = vmul.f32 %v504_v3, %v225_v51  ;;  %v361_v56 = vpop.f32.mrb[6].mxu1  ;;  %v274_v59 = vadd.f32 %v509_v6, %v251_v50  ;;  %v252_v61 = vmul.f32 %v504_v3, %v196_v57 }
  0xed   :  { %v284_v58 = vadd.f32 %v509_v6, %v261_v49  ;;  %v262_v60 = vmul.f32 %v361_v56, %v504_v3  ;;  %v228_v62 = vpop.f32.mrb[7].mxu1  ;;  %v292_v63 = vmax.f32 %v276_v53, 0.0  ;;  %v277_v1 = vadd.f32 %v509_v6, %v254_v55 }
  0xee   :  { %v282_v0 = vadd.f32 %v509_v6, %v259_v54  ;;  %v260_v2 = vmul.f32 %v504_v3, %v228_v62  ;;  %v290_v5 = vmax.f32 %v274_v59, 0.0  ;;  %v275_v8 = vadd.f32 %v509_v6, %v252_v61 }
  0xef   :  { %v300_v4 = vmax.f32 %v284_v58, 0.0  ;;  %v285_v7 = vadd.f32 %v509_v6, %v262_v60  ;;  %308 = vst.msk [vmem:[%s613_s6 + $0x30] sm:$0xff] %vm118_vm0, %v292_v63  ;;  %v293_v10 = vmax.f32 %v277_v1, 0.0 }
  0xf0   :  { %v298_v9 = vmax.f32 %v282_v0, 0.0  ;;  %v283_v11 = vadd.f32 %v509_v6, %v260_v2  ;;  %306 = vst.msk [vmem:[%s613_s6 + $0x20] sm:$0xff] %vm118_vm0, %v290_v5  ;;  %v291_v3 = vmax.f32 %v275_v8, 0.0 }
  0xf1   :  { %316 = vst.msk [vmem:[%s613_s6 + $0x70] sm:$0xff] %vm118_vm0, %v300_v4  ;;  %v301_v12 = vmax.f32 %v285_v7, 0.0  ;;  %309 = vst.msk [vmem:[%s613_s6 + $0x38] sm:$0xff] %vm118_vm0, %v293_v10 }
  0xf2   :  { %314 = vst.msk [vmem:[%s613_s6 + $0x60] sm:$0xff] %vm118_vm0, %v298_v9  ;;  %v299_v13 = vmax.f32 %v283_v11, 0.0  ;;  %307 = vst.msk [vmem:[%s613_s6 + $0x28] sm:$0xff] %vm118_vm0, %v291_v3 }
  0xf3   :  { %317 = vst.msk [vmem:[%s613_s6 + $0x78] sm:$0xff] %vm118_vm0, %v301_v12 }
  0xf4   :  { %315 = vst.msk [vmem:[%s613_s6 + $0x68] sm:$0xff] %vm118_vm0, %v299_v13 }

// kernel: densenet_forward.14
= control target key start
LH: loop header
LB: loop body
LE: loop exit
PB: predicated region body
PF: predicated region fallthrough
CT: control target
= control target key end

     0   :  { %vm291_vm0 = vcmask 130048   ;;  %s871_s0 = inlined_call_operand.vmem [shape: f32[2,9,9,16], index: 0, kind: input, shape index: {}]   ;;  %s872_s1 = inlined_call_operand.vmem [shape: f32[2,9,9,16], index: 1, kind: input, shape index: {}]   ;;  %s873_s2 = inlined_call_operand.vmem [shape: f32[2,9,9,16], index: 2, kind: input, shape index: {}]   ;;  %s874_s3 = inlined_call_operand.vmem [shape: f32[2,9,9,16], index: 3, kind: input, shape index: {}]   ;;  %s875_s4 = inlined_call_operand.vmem [shape: f32[2,8,8,16], index: 4, kind: output, shape index: {}]  }
   0x1   :  { %v17_v0 = vld [vmem:[%s871_s0] sm:$0xff]  ;;  %v312_v5 = vld [vmem:[%s871_s0 + $0x10] sm:$0xff] }
   0x2   :  { %v33_v1 = vld [vmem:[%s872_s1] sm:$0xff]  ;;  %v403_v6 = vld [vmem:[%s872_s1 + $0x10] sm:$0xff] }
   0x3   :  { %v65_v2 = vld [vmem:[%s871_s0 + $0x1] sm:$0xff]  ;;  %v49_v3 = vmax.f32 %v17_v0, %v33_v1  ;;  %v344_v7 = vld [vmem:[%s871_s0 + $0x11] sm:$0xff]  ;;  %v50_v10 = vmax.f32 %v312_v5, %v403_v6 }
   0x4   :  { %v97_v4 = vld [vmem:[%s873_s2] sm:$0xff]  ;;  %v98_v11 = vld [vmem:[%s873_s2 + $0x10] sm:$0xff] }
   0x5   :  { %v81_v8 = vmax.f32 %v49_v3, %v65_v2  ;;  %v129_v9 = vld [vmem:[%s874_s3] sm:$0xff]  ;;  %v82_v17 = vmax.f32 %v50_v10, %v344_v7  ;;  %v130_v18 = vld [vmem:[%s874_s3 + $0x10] sm:$0xff] }
   0x6   :  { %v313_v12 = vld [vmem:[%s871_s0 + $0x20] sm:$0xff]  ;;  %v314_v21 = vld [vmem:[%s871_s0 + $0x30] sm:$0xff] }
   0x7   :  { %v421_v13 = vld [vmem:[%s872_s1 + $0x20] sm:$0xff]  ;;  %v113_v15 = vmax.f32 %v81_v8, %v97_v4  ;;  %v444_v22 = vld [vmem:[%s872_s1 + $0x30] sm:$0xff]  ;;  %v114_v25 = vmax.f32 %v82_v17, %v98_v11 }
   0x8   :  { %v426_v14 = vld [vmem:[%s871_s0 + $0x21] sm:$0xff]  ;;  %v51_v19 = vmax.f32 %v313_v12, %v421_v13  ;;  %v449_v23 = vld [vmem:[%s871_s0 + $0x31] sm:$0xff]  ;;  %v52_v29 = vmax.f32 %v314_v21, %v444_v22 }
   0x9   :  { %v161_v16 = vld [vmem:[%s873_s2 + $0x1] sm:$0xff]  ;;  %v145_v24 = vmax.f32 %v113_v15, %v129_v9  ;;  %v162_v26 = vld [vmem:[%s873_s2 + $0x11] sm:$0xff]  ;;  %v146_v34 = vmax.f32 %v114_v25, %v130_v18 }
   0xa   :  { %v99_v20 = vld [vmem:[%s873_s2 + $0x20] sm:$0xff]  ;;  %v83_v27 = vmax.f32 %v51_v19, %v426_v14  ;;  %v100_v30 = vld [vmem:[%s873_s2 + $0x30] sm:$0xff]  ;;  %v84_v37 = vmax.f32 %v52_v29, %v449_v23 }
   0xb   :  { %v131_v28 = vld [vmem:[%s874_s3 + $0x20] sm:$0xff]  ;;  %v177_v33 = vmax.f32 %v145_v24, %v161_v16  ;;  %v132_v39 = vld [vmem:[%s874_s3 + $0x30] sm:$0xff]  ;;  %v178_v44 = vmax.f32 %v146_v34, %v162_v26 }
   0xc   :  { %v315_v31 = vld [vmem:[%s871_s0 + $0x40] sm:$0xff]  ;;  %v115_v35 = vmax.f32 %v83_v27, %v99_v20  ;;  %v316_v41 = vld [vmem:[%s871_s0 + $0x50] sm:$0xff]  ;;  %v116_v46 = vmax.f32 %v84_v37, %v100_v30 }
   0xd   :  { %v468_v32 = vld [vmem:[%s872_s1 + $0x40] sm:$0xff]  ;;  %v489_v42 = vld [vmem:[%s872_s1 + $0x50] sm:$0xff]  ;;  %v210_v43 = vmax.f32 %v177_v33, %v312_v5  ;;  %v211_v55 = vmax.f32 %v178_v44, %v313_v12 }
   0xe   :  { %v163_v36 = vld [vmem:[%s873_s2 + $0x21] sm:$0xff]  ;;  %v53_v40 = vmax.f32 %v315_v31, %v468_v32  ;;  %v147_v45 = vmax.f32 %v115_v35, %v131_v28  ;;  %v497_v48 = vld [vmem:[%s871_s0 + $0x51] sm:$0xff]  ;;  %v54_v51 = vmax.f32 %v316_v41, %v489_v42  ;;  %v148_v57 = vmax.f32 %v116_v46, %v132_v39 }
   0xf   :  { %v477_v38 = vld [vmem:[%s871_s0 + $0x41] sm:$0xff]  ;;  %v164_v49 = vld [vmem:[%s873_s2 + $0x31] sm:$0xff]  ;;  %v243_v54 = vmax.f32 %v210_v43, %v403_v6  ;;  %v244_v4 = vmax.f32 %v211_v55, %v421_v13 }
  0x10   :  { %v101_v47 = vld [vmem:[%s873_s2 + $0x40] sm:$0xff]  ;;  %v85_v50 = vmax.f32 %v53_v40, %v477_v38  ;;  %v179_v56 = vmax.f32 %v147_v45, %v163_v36  ;;  %v102_v59 = vld [vmem:[%s873_s2 + $0x50] sm:$0xff]  ;;  %v86_v63 = vmax.f32 %v54_v51, %v497_v48  ;;  %v180_v6 = vmax.f32 %v148_v57, %v164_v49 }
  0x11   :  { %v507_v52 = vld [vmem:[%s871_s0 + $0x60] sm:$0xff]  ;;  %v535_v1 = vld [vmem:[%s871_s0 + $0x70] sm:$0xff]  ;;  %v275_v3 = vmax.f32 %v243_v54, %v344_v7  ;;  %v276_v17 = vmax.f32 %v244_v4, %v426_v14 }
  0x12   :  { %v512_v53 = vld [vmem:[%s872_s1 + $0x60] sm:$0xff]  ;;  %v117_v61 = vmax.f32 %v85_v50, %v101_v47  ;;  %v540_v2 = vld [vmem:[%s872_s1 + $0x70] sm:$0xff]  ;;  %v212_v5 = vmax.f32 %v179_v56, %v314_v21  ;;  %v118_v12 = vmax.f32 %v86_v63, %v102_v59  ;;  %v213_v19 = vmax.f32 %v180_v6, %v315_v31 }
  0x13   :  { %v133_v58 = vld [vmem:[%s874_s3 + $0x40] sm:$0xff]  ;;  %v55_v0 = vmax.f32 %v507_v52, %v512_v53  ;;  %v134_v8 = vld [vmem:[%s874_s3 + $0x50] sm:$0xff]  ;;  %v56_v16 = vmax.f32 %v535_v1, %v540_v2  ;;  %292 = vst.msk [vmem:[%s875_s4] sm:$0xff] %vm291_vm0, %v275_v3  ;;  %293 = vst.msk [vmem:[%s875_s4 + $0x8] sm:$0xff] %vm291_vm0, %v276_v17 }
  0x14   :  { %v524_v60 = vld [vmem:[%s871_s0 + $0x61] sm:$0xff]  ;;  %v552_v10 = vld [vmem:[%s871_s0 + $0x71] sm:$0xff]  ;;  %v149_v11 = vmax.f32 %v117_v61, %v133_v58  ;;  %v245_v18 = vmax.f32 %v212_v5, %v444_v22  ;;  %v150_v26 = vmax.f32 %v118_v12, %v134_v8  ;;  %v246_v30 = vmax.f32 %v213_v19, %v468_v32 }
  0x15   :  { %v165_v62 = vld [vmem:[%s873_s2 + $0x41] sm:$0xff]  ;;  %v166_v7 = vld [vmem:[%s873_s2 + $0x51] sm:$0xff]  ;;  %v87_v13 = vmax.f32 %v55_v0, %v524_v60  ;;  %v88_v22 = vmax.f32 %v56_v16, %v552_v10 }
  0x16   :  { %v103_v9 = vld [vmem:[%s873_s2 + $0x60] sm:$0xff]  ;;  %v104_v20 = vld [vmem:[%s873_s2 + $0x70] sm:$0xff]  ;;  %v181_v25 = vmax.f32 %v149_v11, %v165_v62  ;;  %v277_v29 = vmax.f32 %v245_v18, %v449_v23  ;;  %v182_v37 = vmax.f32 %v150_v26, %v166_v7 }
  0x17   :  { %v135_v15 = vld [vmem:[%s874_s3 + $0x60] sm:$0xff]  ;;  %v25_v21 = vld [vmem:[%s871_s0 + $0x90] sm:$0xff]  ;;  %v119_v27 = vmax.f32 %v87_v13, %v103_v9  ;;  %v120_v39 = vmax.f32 %v88_v22, %v104_v20 }
  0x18   :  { %v41_v24 = vld [vmem:[%s872_s1 + $0x90] sm:$0xff]  ;;  %v167_v14 = vld [vmem:[%s873_s2 + $0x61] sm:$0xff]  ;;  %v214_v36 = vmax.f32 %v181_v25, %v316_v41  ;;  %294 = vst.msk [vmem:[%s875_s4 + $0x10] sm:$0xff] %vm291_vm0, %v277_v29  ;;  %v278_v41 = vmax.f32 %v246_v30, %v477_v38  ;;  %v215_v51 = vmax.f32 %v182_v37, %v507_v52 }
  0x19   :  { %v73_v28 = vld [vmem:[%s871_s0 + $0x91] sm:$0xff]  ;;  %v57_v33 = vmax.f32 %v25_v21, %v41_v24  ;;  %v597_v34 = vld [vmem:[%s871_s0 + $0xa0] sm:$0xff]  ;;  %v151_v23 = vmax.f32 %v119_v27, %v135_v15 }
  0x1a   :  { %v136_v31 = vld [vmem:[%s874_s3 + $0x70] sm:$0xff]  ;;  %v602_v35 = vld [vmem:[%s872_s1 + $0xa0] sm:$0xff]  ;;  %v247_v50 = vmax.f32 %v214_v36, %v489_v42  ;;  %295 = vst.msk [vmem:[%s875_s4 + $0x18] sm:$0xff] %vm291_vm0, %v278_v41  ;;  %v248_v4 = vmax.f32 %v215_v51, %v512_v53 }
  0x1b   :  { %v168_v32 = vld [vmem:[%s873_s2 + $0x71] sm:$0xff]  ;;  %v613_v43 = vld [vmem:[%s871_s0 + $0xa1] sm:$0xff]  ;;  %v89_v45 = vmax.f32 %v57_v33, %v73_v28  ;;  %v58_v47 = vmax.f32 %v597_v34, %v602_v35  ;;  %v183_v54 = vmax.f32 %v151_v23, %v167_v14  ;;  %v152_v55 = vmax.f32 %v120_v39, %v136_v31 }
  0x1c   :  { %v105_v40 = vld [vmem:[%s873_s2 + $0x90] sm:$0xff]  ;;  %v319_v44 = vld [vmem:[%s871_s0 + $0x80] sm:$0xff]  ;;  %v279_v3 = vmax.f32 %v247_v50, %v497_v48  ;;  %v280_v18 = vmax.f32 %v248_v4, %v524_v60 }
  0x1d   :  { %v137_v46 = vld [vmem:[%s874_s3 + $0x90] sm:$0xff]  ;;  %v106_v57 = vld [vmem:[%s873_s2 + $0xa0] sm:$0xff]  ;;  %v121_v52 = vmax.f32 %v89_v45, %v105_v40  ;;  %v90_v59 = vmax.f32 %v58_v47, %v613_v43  ;;  %v216_v5 = vmax.f32 %v183_v54, %v535_v1  ;;  %v184_v6 = vmax.f32 %v152_v55, %v168_v32 }
  0x1e   :  { %v631_v49 = vld [vmem:[%s871_s0 + $0xb0] sm:$0xff]  ;;  %v335_v42 = vld [vmem:[%s872_s1 + $0x80] sm:$0xff]  ;;  %296 = vst.msk [vmem:[%s875_s4 + $0x20] sm:$0xff] %vm291_vm0, %v279_v3  ;;  %297 = vst.msk [vmem:[%s875_s4 + $0x28] sm:$0xff] %vm291_vm0, %v280_v18 }
  0x1f   :  { %v636_v38 = vld [vmem:[%s872_s1 + $0xb0] sm:$0xff]  ;;  %v138_v61 = vld [vmem:[%s874_s3 + $0xa0] sm:$0xff]  ;;  %v153_v1 = vmax.f32 %v121_v52, %v137_v46  ;;  %v122_v12 = vmax.f32 %v90_v59, %v106_v57  ;;  %v249_v19 = vmax.f32 %v216_v5, %v540_v2  ;;  %v217_v20 = vmax.f32 %v184_v6, %v319_v44 }
  0x20   :  { %v169_v56 = vld [vmem:[%s873_s2 + $0x91] sm:$0xff]  ;;  %v59_v62 = vmax.f32 %v631_v49, %v636_v38  ;;  %v667_v63 = vld [vmem:[%s871_s0 + $0xc0] sm:$0xff] }
  0x21   :  { %v649_v58 = vld [vmem:[%s871_s0 + $0xb1] sm:$0xff]  ;;  %v672_v0 = vld [vmem:[%s872_s1 + $0xc0] sm:$0xff]  ;;  %v185_v2 = vmax.f32 %v153_v1, %v169_v56  ;;  %v154_v27 = vmax.f32 %v122_v12, %v138_v61  ;;  %v281_v31 = vmax.f32 %v249_v19, %v552_v10  ;;  %v250_v33 = vmax.f32 %v217_v20, %v335_v42 }
  0x22   :  { %v170_v8 = vld [vmem:[%s873_s2 + $0xa1] sm:$0xff]  ;;  %v107_v9 = vld [vmem:[%s873_s2 + $0xb0] sm:$0xff]  ;;  %v91_v7 = vmax.f32 %v59_v62, %v649_v58  ;;  %v60_v13 = vmax.f32 %v667_v63, %v672_v0 }
  0x23   :  { %v139_v11 = vld [vmem:[%s874_s3 + $0xb0] sm:$0xff]  ;;  %v689_v48 = vld [vmem:[%s871_s0 + $0xc1] sm:$0xff]  ;;  %v218_v40 = vmax.f32 %v185_v2, %v597_v34  ;;  %v186_v10 = vmax.f32 %v154_v27, %v170_v8  ;;  %298 = vst.msk [vmem:[%s875_s4 + $0x30] sm:$0xff] %vm291_vm0, %v281_v31 }
  0x24   :  { %v351_v53 = vld [vmem:[%s871_s0 + $0x81] sm:$0xff]  ;;  %v700_v15 = vld [vmem:[%s871_s0 + $0xd0] sm:$0xff]  ;;  %v123_v14 = vmax.f32 %v91_v7, %v107_v9  ;;  %v92_v22 = vmax.f32 %v60_v13, %v689_v48 }
  0x25   :  { %v705_v16 = vld [vmem:[%s872_s1 + $0xd0] sm:$0xff]  ;;  %v108_v24 = vld [vmem:[%s873_s2 + $0xc0] sm:$0xff]  ;;  %v282_v34 = vmax.f32 %v250_v33, %v351_v53  ;;  %v251_v42 = vmax.f32 %v218_v40, %v602_v35  ;;  %v219_v52 = vmax.f32 %v186_v10, %v631_v49 }
  0x26   :  { %v710_v17 = vld [vmem:[%s871_s0 + $0xd1] sm:$0xff]  ;;  %v140_v25 = vld [vmem:[%s874_s3 + $0xc0] sm:$0xff]  ;;  %v61_v26 = vmax.f32 %v700_v15, %v705_v16  ;;  %v155_v41 = vmax.f32 %v123_v14, %v139_v11  ;;  %v124_v44 = vmax.f32 %v92_v22, %v108_v24 }
  0x27   :  { %v171_v21 = vld [vmem:[%s873_s2 + $0xb1] sm:$0xff]  ;;  %v324_v28 = vld [vmem:[%s871_s0 + $0xe0] sm:$0xff]  ;;  %299 = vst.msk [vmem:[%s875_s4 + $0x38] sm:$0xff] %vm291_vm0, %v282_v34  ;;  %v283_v8 = vmax.f32 %v251_v42, %v613_v43  ;;  %v252_v9 = vmax.f32 %v219_v52, %v636_v38 }
  0x28   :  { %v109_v60 = vld [vmem:[%s873_s2 + $0xd0] sm:$0xff]  ;;  %v739_v29 = vld [vmem:[%s872_s1 + $0xe0] sm:$0xff]  ;;  %v93_v37 = vmax.f32 %v61_v26, %v710_v17  ;;  %v187_v59 = vmax.f32 %v155_v41, %v171_v21  ;;  %v156_v61 = vmax.f32 %v124_v44, %v140_v25 }
  0x29   :  { %v744_v30 = vld [vmem:[%s871_s0 + $0xe1] sm:$0xff]  ;;  %v141_v23 = vld [vmem:[%s874_s3 + $0xd0] sm:$0xff]  ;;  %v62_v39 = vmax.f32 %v324_v28, %v739_v29  ;;  %300 = vst.msk [vmem:[%s875_s4 + $0x40] sm:$0xff] %vm291_vm0, %v283_v8  ;;  %v284_v38 = vmax.f32 %v252_v9, %v649_v58 }
  0x2a   :  { %v172_v36 = vld [vmem:[%s873_s2 + $0xc1] sm:$0xff]  ;;  %v325_v45 = vld [vmem:[%s871_s0 + $0xf0] sm:$0xff]  ;;  %v125_v50 = vmax.f32 %v93_v37, %v109_v60  ;;  %v220_v11 = vmax.f32 %v187_v59, %v667_v63 }
  0x2b   :  { %v110_v32 = vld [vmem:[%s873_s2 + $0xe0] sm:$0xff]  ;;  %v341_v46 = vld [vmem:[%s872_s1 + $0xf0] sm:$0xff]  ;;  %v94_v54 = vmax.f32 %v62_v39, %v744_v30  ;;  %v188_v53 = vmax.f32 %v156_v61, %v172_v36  ;;  %301 = vst.msk [vmem:[%s875_s4 + $0x48] sm:$0xff] %vm291_vm0, %v284_v38 }
  0x2c   :  { %v357_v47 = vld [vmem:[%s871_s0 + $0xf1] sm:$0xff]  ;;  %v142_v55 = vld [vmem:[%s874_s3 + $0xe0] sm:$0xff]  ;;  %v63_v56 = vmax.f32 %v325_v45, %v341_v46  ;;  %v157_v35 = vmax.f32 %v125_v50, %v141_v23  ;;  %v253_v63 = vmax.f32 %v220_v11, %v672_v0 }
  0x2d   :  { %v173_v51 = vld [vmem:[%s873_s2 + $0xd1] sm:$0xff]  ;;  %v326_v62 = vld [vmem:[%s871_s0 + $0x100] sm:$0xff]  ;;  %v126_v49 = vmax.f32 %v94_v54, %v110_v32  ;;  %v221_v20 = vmax.f32 %v188_v53, %v700_v15 }
  0x2e   :  { %v111_v57 = vld [vmem:[%s873_s2 + $0xf0] sm:$0xff]  ;;  %v342_v3 = vld [vmem:[%s872_s1 + $0x100] sm:$0xff]  ;;  %v95_v5 = vmax.f32 %v63_v56, %v357_v47  ;;  %v189_v13 = vmax.f32 %v157_v35, %v173_v51  ;;  %v285_v58 = vmax.f32 %v253_v63, %v689_v48 }
  0x2f   :  { %v358_v4 = vld [vmem:[%s871_s0 + $0x101] sm:$0xff]  ;;  %v64_v6 = vmax.f32 %v326_v62, %v342_v3  ;;  %v143_v12 = vld [vmem:[%s874_s3 + $0xf0] sm:$0xff]  ;;  %v158_v18 = vmax.f32 %v126_v49, %v142_v55  ;;  %v254_v0 = vmax.f32 %v221_v20, %v705_v16 }
  0x30   :  { %v174_v1 = vld [vmem:[%s873_s2 + $0xe1] sm:$0xff]  ;;  %v127_v43 = vmax.f32 %v95_v5, %v111_v57  ;;  %v175_v21 = vld [vmem:[%s873_s2 + $0xf1] sm:$0xff]  ;;  %v222_v25 = vmax.f32 %v189_v13, %v324_v28  ;;  %302 = vst.msk [vmem:[%s875_s4 + $0x50] sm:$0xff] %vm291_vm0, %v285_v58 }
  0x31   :  { %v112_v7 = vld [vmem:[%s873_s2 + $0x100] sm:$0xff]  ;;  %v96_v19 = vmax.f32 %v64_v6, %v358_v4  ;;  %v190_v26 = vmax.f32 %v158_v18, %v174_v1  ;;  %v286_v31 = vmax.f32 %v254_v0, %v710_v17  ;;  %v327_v48 = vld [vmem:[%s871_s0 + $0x110] sm:$0xff] }
  0x32   :  { %v144_v24 = vld [vmem:[%s874_s3 + $0x100] sm:$0xff]  ;;  %v159_v60 = vmax.f32 %v127_v43, %v143_v12  ;;  %v255_v27 = vmax.f32 %v222_v25, %v739_v29  ;;  %v343_v29 = vld [vmem:[%s872_s1 + $0x110] sm:$0xff] }
  0x33   :  { %v128_v2 = vmax.f32 %v96_v19, %v112_v7  ;;  %v176_v15 = vld [vmem:[%s873_s2 + $0x101] sm:$0xff]  ;;  %v223_v14 = vmax.f32 %v190_v26, %v325_v45  ;;  %303 = vst.msk [vmem:[%s875_s4 + $0x58] sm:$0xff] %vm291_vm0, %v286_v31  ;;  %v359_v39 = vld [vmem:[%s871_s0 + $0x111] sm:$0xff] }
  0x34   :  { %v191_v22 = vmax.f32 %v159_v60, %v175_v21  ;;  %v287_v16 = vmax.f32 %v255_v27, %v744_v30 }
  0x35   :  { %v160_v28 = vmax.f32 %v128_v2, %v144_v24  ;;  %v256_v33 = vmax.f32 %v223_v14, %v341_v46 }
  0x36   :  { %v224_v36 = vmax.f32 %v191_v22, %v326_v62  ;;  %304 = vst.msk [vmem:[%s875_s4 + $0x60] sm:$0xff] %vm291_vm0, %v287_v16 }
  0x37   :  { %v192_v37 = vmax.f32 %v160_v28, %v176_v15  ;;  %v288_v17 = vmax.f32 %v256_v33, %v357_v47 }
  0x38   :  { %v257_v23 = vmax.f32 %v224_v36, %v342_v3 }
  0x39   :  { %v225_v30 = vmax.f32 %v192_v37, %v327_v48  ;;  %305 = vst.msk [vmem:[%s875_s4 + $0x68] sm:$0xff] %vm291_vm0, %v288_v17 }
  0x3a   :  { %v289_v32 = vmax.f32 %v257_v23, %v358_v4 }
  0x3b   :  { %v258_v40 = vmax.f32 %v225_v30, %v343_v29 }
  0x3c   :  { %306 = vst.msk [vmem:[%s875_s4 + $0x70] sm:$0xff] %vm291_vm0, %v289_v32 }
  0x3d   :  { %v290_v10 = vmax.f32 %v258_v40, %v359_v39 }
  0x3f   :  { %307 = vst.msk [vmem:[%s875_s4 + $0x78] sm:$0xff] %vm291_vm0, %v290_v10 }

// kernel: densenet_forward.13
= control target key start
LH: loop header
LB: loop body
LE: loop exit
PB: predicated region body
PF: predicated region fallthrough
CT: control target
= control target key end

     0   :  { %s909_s15 = smov 0   ;;  %s1202_s0 = inlined_call_operand.vmem [shape: f32[512,147], index: 0, kind: input, shape index: {}]   ;;  %s1203_s1 = inlined_call_operand.vmem [shape: bf16[147,16], index: 1, kind: input, shape index: {}]   ;;  %s1204_s2 = inlined_call_operand.vmem [shape: f32[1,16], index: 2, kind: input, shape index: {}]   ;;  %s1205_s3 = inlined_call_operand.vmem [shape: f32[1,16], index: 3, kind: input, shape index: {}]   ;;  %s1206_s4 = inlined_call_operand.vmem [shape: f32[512,16], index: 4, kind: output, shape index: {}]  }
   0x1 LB: > { %s793_s16 = sadd.s32 4294967295, %s880_s15   ;;  %p797_p0 = scmp.ge.s32.totalorder %s880_s15, 1  ;;  %s880_s15 = sphi %s909_s15, %s14_s15  }
   0x2   : > { %p164_p1 = scmp.lt.s32.totalorder %s880_s15, 3 }
   0x4   : > { %p165_p2 = pnand %p797_p0, %p164_p1 }
   0x5   : > { %v864_v0 = vld [vmem:[%s1203_s1] sm:$0xff] (!%p165_p2)   ;;  %v882_v1 = vmov (!%p165_p2), 0   ;;  %v865_v2 = vld [vmem:[%s1203_s1 + $0x8] sm:$0xff] (!%p165_p2)   ;;  %v866_v3 = vld [vmem:[%s1203_s1 + $0x10] sm:$0xff] (!%p165_p2)   ;;  %s798_s23 = sshll.u32 (!%p165_p2), %s793_s16, 5  ;;  %vm377_vm0 = vcmask (!%p165_p2), 154624  }
   0x6   : > { %168 = sbr.rel (%p165_p2) target bundleno = 323 (0x143), region = 36  ;;  %433 = vmatprep.subr.bf16.mxu0 (!%p165_p2), %v882_v1  ;;  %834 = vmatprep.subr.bf16.mxu1 (!%p165_p2), %v882_v1  ;;  %p192_p3 = scmp.lt.s32.totalorder (!%p165_p2), %s798_s23, 63  ;;  %v867_v4 = vld [vmem:[%s1203_s1 + $0x18] sm:$0xff] (!%p165_p2)   ;;  %v868_v8 = vld [vmem:[%s1203_s1 + $0x20] sm:$0xff] (!%p165_p2)   ;;  %v869_v12 = vld [vmem:[%s1203_s1 + $0x28] sm:$0xff] (!%p165_p2)   ;;  %vm426_vm1 = vcmask (!%p165_p2), 1040384  }
   0x7   : > { %434 = vmatpush1.bf16.msra.mxu0 (!%p165_p2), %v864_v0  ;;  %844 = vmatpush1.bf16.msra.mxu1 (!%p165_p2), %v864_v0  ;;  %v870_v13 = vld [vmem:[%s1203_s1 + $0x30] sm:$0xff] (!%p165_p2)   ;;  %v871_v14 = vld [vmem:[%s1203_s1 + $0x38] sm:$0xff] (!%p165_p2)   ;;  %vm427_vm2 = vcmask (!%p165_p2), 1041408   ;;  %v883_v15 = vmov (!%p165_p2), 65535   ;;  %v872_v17 = vld [vmem:[%s1203_s1 + $0x40] sm:$0xff] (!%p165_p2)   ;;  %vm704_vm3 = vcmask (!%p165_p2), 130048  }
   0x8   : > { %435 = vmatprep.subr.bf16.mxu0 (!%p165_p2), %v882_v1  ;;  %835 = vmatprep.subr.bf16.mxu1 (!%p165_p2), %v882_v1  ;;  %v428_v16 = vsel (!%p165_p2), %vm426_vm1, 4294967295, %v883_v15  ;;  %v873_v18 = vld [vmem:[%s1203_s1 + $0x48] ss:$0 sps:$4 sm:$0x33] (!%p165_p2)  }
   0x9   : > { %v429_v19 = vsel (!%p165_p2), %vm427_vm2, %v428_v16, 0 }
   0xa   : > { %v431_v22 = vand.u32 (!%p165_p2), %v873_v18, %v429_v19 }
   0xb   : > { %436 = vmatpush1.bf16.msra.mxu0 (!%p165_p2), %v865_v2  ;;  %845 = vmatpush1.bf16.msra.mxu1 (!%p165_p2), %v865_v2 }
   0xc   : > { %437 = vmatprep.subr.bf16.mxu0 (!%p165_p2), %v882_v1  ;;  %836 = vmatprep.subr.bf16.mxu1 (!%p165_p2), %v882_v1 }
   0xd   : > { %s1208_s23 = smov (!%p192_p3, %s798_s23), 63 }
   0xe   : > { %s833_s26 = sshll.u32 %s1208_s23, 4  ;;  %s802_s21 = sshll.u32 %s1208_s23, 3 }
   0xf   : > { %438 = vmatpush1.bf16.msra.mxu0 %v866_v3  ;;  %846 = vmatpush1.bf16.msra.mxu1 %v866_v3  ;;  %s943_s29 = scalar_lea.vmem %s1202_s0, %s833_s26  ;;  %s1075_s24 = scalar_lea.vmem %s1206_s4, %s802_s21 }
  0x10   : > { %439 = vmatprep.subr.bf16.mxu0 %v882_v1  ;;  %837 = vmatprep.subr.bf16.mxu1 %v882_v1  ;;  %v206_v5 = vld [vmem:[%s943_s29 + $0x8] sm:$0xff]  ;;  %v208_v6 = vld [vmem:[%s943_s29 + $0x18] sm:$0xff]  ;;  %v205_v20 = vld [vmem:[%s943_s29] sm:$0xff] }
  0x11   : > { %v238_v7 = vld [vmem:[%s943_s29 + $0x108] sm:$0xff]  ;;  %v270_v9 = vpack.c.bf16 %v208_v6, %v206_v5  ;;  %v240_v10 = vld [vmem:[%s943_s29 + $0x118] sm:$0xff]  ;;  %v207_v21 = vld [vmem:[%s943_s29 + $0x10] sm:$0xff] }
  0x12   : > { %v286_v11 = vpack.c.bf16 %v240_v10, %v238_v7  ;;  %v237_v23 = vld [vmem:[%s943_s29 + $0x100] sm:$0xff]  ;;  %v239_v24 = vld [vmem:[%s943_s29 + $0x110] sm:$0xff]  ;;  %v210_v25 = vld [vmem:[%s943_s29 + $0x28] sm:$0xff]  ;;  %v269_v29 = vpack.c.bf16 %v207_v21, %v205_v20 }
  0x13   : > { %440 = vmatpush1.bf16.msra.mxu0 %v867_v4  ;;  %847 = vmatpush1.bf16.msra.mxu1 %v867_v4  ;;  %v212_v26 = vld [vmem:[%s943_s29 + $0x38] sm:$0xff]  ;;  %v242_v27 = vld [vmem:[%s943_s29 + $0x128] sm:$0xff]  ;;  %v285_v30 = vpack.c.bf16 %v239_v24, %v237_v23  ;;  %v209_v33 = vld [vmem:[%s943_s29 + $0x20] sm:$0xff] }
  0x14   : > { %441 = vmatprep.subr.bf16.mxu0 %v882_v1  ;;  %838 = vmatprep.subr.bf16.mxu1 %v882_v1  ;;  %v244_v28 = vld [vmem:[%s943_s29 + $0x138] sm:$0xff]  ;;  %v272_v31 = vpack.c.bf16 %v212_v26, %v210_v25  ;;  %v211_v34 = vld [vmem:[%s943_s29 + $0x30] sm:$0xff]  ;;  %v241_v35 = vld [vmem:[%s943_s29 + $0x120] sm:$0xff] }
  0x15   : > { %813 = vmatprep.mubr.msk.bf16.mxu0 %vm377_vm0, %v270_v9  ;;  %821 = vmatprep.mubr.msk.bf16.mxu1 %vm377_vm0, %v286_v11  ;;  %v288_v32 = vpack.c.bf16 %v244_v28, %v242_v27  ;;  %v243_v36 = vld [vmem:[%s943_s29 + $0x130] sm:$0xff]  ;;  %v214_v37 = vld [vmem:[%s943_s29 + $0x48] sm:$0xff]  ;;  %v216_v38 = vld [vmem:[%s943_s29 + $0x58] sm:$0xff]  ;;  %v271_v41 = vpack.c.bf16 %v211_v34, %v209_v33 }
  0x16   : > { %v246_v39 = vld [vmem:[%s943_s29 + $0x148] sm:$0xff]  ;;  %v248_v40 = vld [vmem:[%s943_s29 + $0x158] sm:$0xff]  ;;  %v287_v42 = vpack.c.bf16 %v243_v36, %v241_v35  ;;  %v274_v43 = vpack.c.bf16 %v216_v38, %v214_v37  ;;  %v213_v45 = vld [vmem:[%s943_s29 + $0x40] sm:$0xff] }
  0x17   : > { %442 = vmatpush1.bf16.msra.mxu0 %v868_v8  ;;  %848 = vmatpush1.bf16.msra.mxu1 %v868_v8  ;;  %v290_v44 = vpack.c.bf16 %v248_v40, %v246_v39  ;;  %v215_v46 = vld [vmem:[%s943_s29 + $0x50] sm:$0xff]  ;;  %v245_v47 = vld [vmem:[%s943_s29 + $0x140] sm:$0xff]  ;;  %v218_v49 = vld [vmem:[%s943_s29 + $0x68] sm:$0xff] }
  0x18   : > { %443 = vmatprep.subr.bf16.mxu0 %v882_v1  ;;  %839 = vmatprep.subr.bf16.mxu1 %v882_v1  ;;  %v247_v48 = vld [vmem:[%s943_s29 + $0x150] sm:$0xff]  ;;  %v220_v50 = vld [vmem:[%s943_s29 + $0x78] sm:$0xff]  ;;  %v250_v51 = vld [vmem:[%s943_s29 + $0x168] sm:$0xff]  ;;  %v273_v53 = vpack.c.bf16 %v215_v46, %v213_v45 }
  0x19   : > { %v252_v52 = vld [vmem:[%s943_s29 + $0x178] sm:$0xff]  ;;  %v289_v54 = vpack.c.bf16 %v247_v48, %v245_v47  ;;  %v276_v55 = vpack.c.bf16 %v220_v50, %v218_v49  ;;  %v217_v57 = vld [vmem:[%s943_s29 + $0x60] sm:$0xff]  ;;  %v219_v58 = vld [vmem:[%s943_s29 + $0x70] sm:$0xff] }
  0x1a   : > { %v292_v56 = vpack.c.bf16 %v252_v52, %v250_v51  ;;  %v249_v59 = vld [vmem:[%s943_s29 + $0x160] sm:$0xff]  ;;  %v251_v60 = vld [vmem:[%s943_s29 + $0x170] sm:$0xff]  ;;  %v222_v61 = vld [vmem:[%s943_s29 + $0x88] sm:$0xff] }
  0x1b   : > { %444 = vmatpush1.bf16.msra.mxu0 %v869_v12  ;;  %849 = vmatpush1.bf16.msra.mxu1 %v869_v12  ;;  %v224_v62 = vld [vmem:[%s943_s29 + $0x98] sm:$0xff]  ;;  %v254_v63 = vld [vmem:[%s943_s29 + $0x188] sm:$0xff]  ;;  %v291_v2 = vpack.c.bf16 %v251_v60, %v249_v59  ;;  %v221_v5 = vld [vmem:[%s943_s29 + $0x80] sm:$0xff] }
  0x1c   : > { %445 = vmatprep.subr.bf16.mxu0 %v882_v1  ;;  %840 = vmatprep.subr.bf16.mxu1 %v882_v1  ;;  %v256_v0 = vld [vmem:[%s943_s29 + $0x198] sm:$0xff]  ;;  %v278_v3 = vpack.c.bf16 %v224_v62, %v222_v61  ;;  %v223_v6 = vld [vmem:[%s943_s29 + $0x90] sm:$0xff]  ;;  %v253_v7 = vld [vmem:[%s943_s29 + $0x180] sm:$0xff] }
  0x1d   : > { %v294_v4 = vpack.c.bf16 %v256_v0, %v254_v63  ;;  %v255_v8 = vld [vmem:[%s943_s29 + $0x190] sm:$0xff]  ;;  %v226_v9 = vld [vmem:[%s943_s29 + $0xa8] sm:$0xff]  ;;  %v228_v10 = vld [vmem:[%s943_s29 + $0xb8] sm:$0xff] }
  0x1e   : > { %v258_v11 = vld [vmem:[%s943_s29 + $0x1a8] sm:$0xff]  ;;  %v260_v12 = vld [vmem:[%s943_s29 + $0x1b8] sm:$0xff]  ;;  %v280_v15 = vpack.c.bf16 %v228_v10, %v226_v9  ;;  %v227_v18 = vld [vmem:[%s943_s29 + $0xb0] sm:$0xff] }
  0x1f   : > { %446 = vmatpush1.bf16.msra.mxu0 %v870_v13  ;;  %850 = vmatpush1.bf16.msra.mxu1 %v870_v13  ;;  %v277_v13 = vpack.c.bf16 %v223_v6, %v221_v5  ;;  %v296_v16 = vpack.c.bf16 %v260_v12, %v258_v11  ;;  %v257_v19 = vld [vmem:[%s943_s29 + $0x1a0] sm:$0xff]  ;;  %v259_v20 = vld [vmem:[%s943_s29 + $0x1b0] sm:$0xff]  ;;  %v230_v21 = vld [vmem:[%s943_s29 + $0xc8] sm:$0xff] }
  0x20   : > { %447 = vmatprep.subr.bf16.mxu0 %v882_v1  ;;  %841 = vmatprep.subr.bf16.mxu1 %v882_v1  ;;  %v262_v23 = vld [vmem:[%s943_s29 + $0x1c8] sm:$0xff]  ;;  %v264_v24 = vld [vmem:[%s943_s29 + $0x1d8] sm:$0xff]  ;;  %v295_v26 = vpack.c.bf16 %v259_v20, %v257_v19  ;;  %v1058_v47 = vld [vmem:[%s1204_s2] ss:$0 sm:$0xff] }
  0x21   : > { %v298_v28 = vpack.c.bf16 %v264_v24, %v262_v23  ;;  %v234_v33 = vld [vmem:[%s943_s29 + $0xe8] sm:$0xff]  ;;  %v236_v34 = vld [vmem:[%s943_s29 + $0xf8] sm:$0xff]  ;;  %v1063_v49 = vld [vmem:[%s1205_s3] ss:$0 sm:$0xff] }
  0x22   : > { %v266_v35 = vld [vmem:[%s943_s29 + $0x1e8] sm:$0xff]  ;;  %v268_v36 = vld [vmem:[%s943_s29 + $0x1f8] sm:$0xff]  ;;  %v284_v39 = vpack.c.bf16 %v236_v34, %v234_v33 }
  0x23   : > { %448 = vmatpush1.bf16.msra.mxu0 %v871_v14  ;;  %851 = vmatpush1.bf16.msra.mxu1 %v871_v14  ;;  %v293_v14 = vpack.c.bf16 %v255_v8, %v253_v7  ;;  %v300_v40 = vpack.c.bf16 %v268_v36, %v266_v35 }
  0x24   : > { %449 = vmatprep.subr.bf16.mxu0 %v882_v1  ;;  %842 = vmatprep.subr.bf16.mxu1 %v882_v1 }
  0x27   : > { %450 = vmatpush1.bf16.msra.mxu0 %v872_v17  ;;  %852 = vmatpush1.bf16.msra.mxu1 %v872_v17  ;;  %v225_v17 = vld [vmem:[%s943_s29 + $0xa0] sm:$0xff] }
  0x28   : > { %451 = vmatprep.subr.bf16.mxu0 %v882_v1  ;;  %843 = vmatprep.subr.bf16.mxu1 %v882_v1  ;;  %v275_v1 = vpack.c.bf16 %v219_v58, %v217_v57  ;;  %v279_v25 = vpack.c.bf16 %v227_v18, %v225_v17 }
  0x2b   : > { %452 = vmatpush1.bf16.msra.mxu0 %v431_v22  ;;  %853 = vmatpush1.bf16.msra.mxu1 %v431_v22  ;;  %v232_v22 = vld [vmem:[%s943_s29 + $0xd8] sm:$0xff] }
  0x2c   : > { %v282_v27 = vpack.c.bf16 %v232_v22, %v230_v21 }
  0x2e   : > { %466 = vmatmul.mubr.bf16.vlgmr.msra.gmra.mrb[0].mxu0 %v269_v29  ;;  %530 = vmatmul.mubr.bf16.vlgmr.msra.gmra.mrb[0].mxu1 %v285_v30  ;;  %v229_v29 = vld [vmem:[%s943_s29 + $0xc0] sm:$0xff]  ;;  %v231_v30 = vld [vmem:[%s943_s29 + $0xd0] sm:$0xff] }
  0x2f   : > { %814 = vmatprep.mubr.msk.bf16.mxu0 %vm377_vm0, %v272_v31  ;;  %822 = vmatprep.mubr.msk.bf16.mxu1 %vm377_vm0, %v288_v32  ;;  %v261_v31 = vld [vmem:[%s943_s29 + $0x1c0] sm:$0xff]  ;;  %v263_v32 = vld [vmem:[%s943_s29 + $0x1d0] sm:$0xff]  ;;  %v281_v37 = vpack.c.bf16 %v231_v30, %v229_v29 }
  0x30   : > { %v297_v38 = vpack.c.bf16 %v263_v32, %v261_v31 }
  0x36   : > { %474 = vmatmul.mubr.bf16.gmra.mrb[4].mxu0 %v271_v41  ;;  %538 = vmatmul.mubr.bf16.gmra.mrb[4].mxu1 %v287_v42  ;;  %v233_v41 = vld [vmem:[%s943_s29 + $0xe0] sm:$0xff]  ;;  %v235_v42 = vld [vmem:[%s943_s29 + $0xf0] sm:$0xff] }
  0x37   : > { %815 = vmatprep.mubr.msk.bf16.mxu0 %vm377_vm0, %v274_v43  ;;  %823 = vmatprep.mubr.msk.bf16.mxu1 %vm377_vm0, %v290_v44  ;;  %v265_v43 = vld [vmem:[%s943_s29 + $0x1e0] sm:$0xff]  ;;  %v267_v44 = vld [vmem:[%s943_s29 + $0x1f0] sm:$0xff]  ;;  %v283_v45 = vpack.c.bf16 %v235_v42, %v233_v41 }
  0x38   : > { %v299_v46 = vpack.c.bf16 %v267_v44, %v265_v43 }
  0x3e   : > { %482 = vmatmul.mubr.bf16.gmra.mrb[8].mxu0 %v273_v53  ;;  %546 = vmatmul.mubr.bf16.gmra.mrb[8].mxu1 %v289_v54 }
  0x3f   : > { %816 = vmatprep.mubr.msk.bf16.mxu0 %vm377_vm0, %v276_v55  ;;  %824 = vmatprep.mubr.msk.bf16.mxu1 %vm377_vm0, %v292_v56 }
  0x46   : > { %490 = vmatmul.mubr.bf16.gmra.mrb[12].mxu0 %v275_v1  ;;  %554 = vmatmul.mubr.bf16.gmra.mrb[12].mxu1 %v291_v2 }
  0x47   : > { %817 = vmatprep.mubr.msk.bf16.mxu0 %vm377_vm0, %v278_v3  ;;  %825 = vmatprep.mubr.msk.bf16.mxu1 %vm377_vm0, %v294_v4 }
  0x4e   : > { %498 = vmatmul.mubr.bf16.gmra.mrb[16].mxu0 %v277_v13  ;;  %562 = vmatmul.mubr.bf16.gmra.mrb[16].mxu1 %v293_v14 }
  0x4f   : > { %818 = vmatprep.mubr.msk.bf16.mxu0 %vm377_vm0, %v280_v15  ;;  %826 = vmatprep.mubr.msk.bf16.mxu1 %vm377_vm0, %v296_v16 }
  0x56   : > { %506 = vmatmul.mubr.bf16.gmra.mrb[20].mxu0 %v279_v25  ;;  %570 = vmatmul.mubr.bf16.gmra.mrb[20].mxu1 %v295_v26 }
  0x57   : > { %819 = vmatprep.mubr.msk.bf16.mxu0 %vm377_vm0, %v282_v27  ;;  %827 = vmatprep.mubr.msk.bf16.mxu1 %vm377_vm0, %v298_v28 }
  0x5e   : > { %514 = vmatmul.mubr.bf16.gmra.mrb[24].mxu0 %v281_v37  ;;  %578 = vmatmul.mubr.bf16.gmra.mrb[24].mxu1 %v297_v38 }
  0x5f   : > { %820 = vmatprep.mubr.msk.bf16.mxu0 %vm377_vm0, %v284_v39  ;;  %828 = vmatprep.mubr.msk.bf16.mxu1 %vm377_vm0, %v300_v40 }
  0x66   : > { %522 = vmatmul.mubr.bf16.gmra.mrb[28].mxu0 %v283_v45  ;;  %586 = vmatmul.mubr.bf16.gmra.mrb[28].mxu1 %v299_v46 }
 0x101   : > { %v467_v48 = vpop.f32.mrb[0].mxu0  ;;  %v531_v50 = vpop.f32.mrb[0].mxu1 }
 0x102   : > { %v601_v51 = vmul.f32 %v1058_v47, %v467_v48  ;;  %v617_v52 = vmul.f32 %v1058_v47, %v531_v50  ;;  %v469_v53 = vpop.f32.mrb[1].mxu0  ;;  %v533_v54 = vpop.f32.mrb[1].mxu1 }
 0x103   : > { %v470_v55 = vpop.f32.mrb[2].mxu0  ;;  %v534_v56 = vpop.f32.mrb[2].mxu1 }
 0x104   : > { %v640_v57 = vadd.f32 %v1063_v49, %v601_v51  ;;  %v656_v58 = vadd.f32 %v1063_v49, %v617_v52  ;;  %v602_v59 = vmul.f32 %v1058_v47, %v470_v55  ;;  %v618_v60 = vmul.f32 %v1058_v47, %v534_v56  ;;  %v472_v61 = vpop.f32.mrb[3].mxu0  ;;  %v536_v62 = vpop.f32.mrb[3].mxu1 }
 0x106   : > { %v672_v63 = vmax.f32 %v640_v57, 0.0  ;;  %v688_v0 = vmax.f32 %v656_v58, 0.0  ;;  %v641_v1 = vadd.f32 %v1063_v49, %v602_v59  ;;  %v657_v2 = vadd.f32 %v1063_v49, %v618_v60 }
 0x108   : > { %705 = vst.msk [vmem:[%s1075_s24] sm:$0xff] %vm704_vm3, %v672_v63  ;;  %721 = vst.msk [vmem:[%s1075_s24 + $0x80] sm:$0xff] %vm704_vm3, %v688_v0  ;;  %v673_v3 = vmax.f32 %v641_v1, 0.0  ;;  %v689_v4 = vmax.f32 %v657_v2, 0.0 }
 0x109   : > { %v475_v5 = vpop.f32.mrb[4].mxu0  ;;  %v539_v6 = vpop.f32.mrb[4].mxu1 }
 0x10a   : > { %706 = vst.msk [vmem:[%s1075_s24 + $0x8] sm:$0xff] %vm704_vm3, %v673_v3  ;;  %722 = vst.msk [vmem:[%s1075_s24 + $0x88] sm:$0xff] %vm704_vm3, %v689_v4  ;;  %v603_v7 = vmul.f32 %v1058_v47, %v475_v5  ;;  %v619_v8 = vmul.f32 %v1058_v47, %v539_v6  ;;  %v477_v9 = vpop.f32.mrb[5].mxu0  ;;  %v541_v10 = vpop.f32.mrb[5].mxu1 }
 0x10b   : > { %v478_v11 = vpop.f32.mrb[6].mxu0  ;;  %v542_v12 = vpop.f32.mrb[6].mxu1 }
 0x10c   : > { %v642_v13 = vadd.f32 %v1063_v49, %v603_v7  ;;  %v658_v14 = vadd.f32 %v1063_v49, %v619_v8  ;;  %v604_v15 = vmul.f32 %v1058_v47, %v478_v11  ;;  %v620_v16 = vmul.f32 %v1058_v47, %v542_v12  ;;  %v480_v17 = vpop.f32.mrb[7].mxu0  ;;  %v544_v18 = vpop.f32.mrb[7].mxu1 }
 0x10e   : > { %v674_v19 = vmax.f32 %v642_v13, 0.0  ;;  %v690_v20 = vmax.f32 %v658_v14, 0.0  ;;  %v643_v21 = vadd.f32 %v1063_v49, %v604_v15  ;;  %v659_v22 = vadd.f32 %v1063_v49, %v620_v16 }
 0x110   : > { %707 = vst.msk [vmem:[%s1075_s24 + $0x10] sm:$0xff] %vm704_vm3, %v674_v19  ;;  %723 = vst.msk [vmem:[%s1075_s24 + $0x90] sm:$0xff] %vm704_vm3, %v690_v20  ;;  %v675_v23 = vmax.f32 %v643_v21, 0.0  ;;  %v691_v24 = vmax.f32 %v659_v22, 0.0 }
 0x111   : > { %v483_v25 = vpop.f32.mrb[8].mxu0  ;;  %v547_v26 = vpop.f32.mrb[8].mxu1 }
 0x112   : > { %708 = vst.msk [vmem:[%s1075_s24 + $0x18] sm:$0xff] %vm704_vm3, %v675_v23  ;;  %724 = vst.msk [vmem:[%s1075_s24 + $0x98] sm:$0xff] %vm704_vm3, %v691_v24  ;;  %v605_v27 = vmul.f32 %v1058_v47, %v483_v25  ;;  %v621_v28 = vmul.f32 %v1058_v47, %v547_v26  ;;  %v485_v29 = vpop.f32.mrb[9].mxu0  ;;  %v549_v30 = vpop.f32.mrb[9].mxu1 }
 0x113   : > { %v486_v31 = vpop.f32.mrb[10].mxu0  ;;  %v550_v32 = vpop.f32.mrb[10].mxu1 }
 0x114   : > { %v644_v33 = vadd.f32 %v1063_v49, %v605_v27  ;;  %v660_v34 = vadd.f32 %v1063_v49, %v621_v28  ;;  %v606_v35 = vmul.f32 %v1058_v47, %v486_v31  ;;  %v622_v36 = vmul.f32 %v1058_v47, %v550_v32  ;;  %v488_v37 = vpop.f32.mrb[11].mxu0  ;;  %v552_v38 = vpop.f32.mrb[11].mxu1 }
 0x116   : > { %v676_v39 = vmax.f32 %v644_v33, 0.0  ;;  %v692_v40 = vmax.f32 %v660_v34, 0.0  ;;  %v645_v41 = vadd.f32 %v1063_v49, %v606_v35  ;;  %v661_v42 = vadd.f32 %v1063_v49, %v622_v36 }
 0x118   : > { %709 = vst.msk [vmem:[%s1075_s24 + $0x20] sm:$0xff] %vm704_vm3, %v676_v39  ;;  %725 = vst.msk [vmem:[%s1075_s24 + $0xa0] sm:$0xff] %vm704_vm3, %v692_v40  ;;  %v677_v43 = vmax.f32 %v645_v41, 0.0  ;;  %v693_v44 = vmax.f32 %v661_v42, 0.0 }
 0x119   : > { %v491_v45 = vpop.f32.mrb[12].mxu0  ;;  %v555_v46 = vpop.f32.mrb[12].mxu1 }
 0x11a   : > { %710 = vst.msk [vmem:[%s1075_s24 + $0x28] sm:$0xff] %vm704_vm3, %v677_v43  ;;  %726 = vst.msk [vmem:[%s1075_s24 + $0xa8] sm:$0xff] %vm704_vm3, %v693_v44  ;;  %v607_v48 = vmul.f32 %v1058_v47, %v491_v45  ;;  %v623_v50 = vmul.f32 %v1058_v47, %v555_v46  ;;  %v493_v51 = vpop.f32.mrb[13].mxu0  ;;  %v557_v52 = vpop.f32.mrb[13].mxu1 }
 0x11b   : > { %v494_v53 = vpop.f32.mrb[14].mxu0  ;;  %v558_v54 = vpop.f32.mrb[14].mxu1 }
 0x11c   : > { %v646_v55 = vadd.f32 %v1063_v49, %v607_v48  ;;  %v662_v56 = vadd.f32 %v1063_v49, %v623_v50  ;;  %v608_v57 = vmul.f32 %v1058_v47, %v494_v53  ;;  %v624_v58 = vmul.f32 %v1058_v47, %v558_v54  ;;  %v496_v59 = vpop.f32.mrb[15].mxu0  ;;  %v560_v60 = vpop.f32.mrb[15].mxu1 }
 0x11e   : > { %v678_v61 = vmax.f32 %v646_v55, 0.0  ;;  %v694_v62 = vmax.f32 %v662_v56, 0.0  ;;  %v647_v63 = vadd.f32 %v1063_v49, %v608_v57  ;;  %v663_v0 = vadd.f32 %v1063_v49, %v624_v58 }
 0x120   : > { %711 = vst.msk [vmem:[%s1075_s24 + $0x30] sm:$0xff] %vm704_vm3, %v678_v61  ;;  %727 = vst.msk [vmem:[%s1075_s24 + $0xb0] sm:$0xff] %vm704_vm3, %v694_v62  ;;  %v679_v1 = vmax.f32 %v647_v63, 0.0  ;;  %v695_v2 = vmax.f32 %v663_v0, 0.0 }
 0x121   : > { %v499_v3 = vpop.f32.mrb[16].mxu0  ;;  %v563_v4 = vpop.f32.mrb[16].mxu1 }
 0x122   : > { %712 = vst.msk [vmem:[%s1075_s24 + $0x38] sm:$0xff] %vm704_vm3, %v679_v1  ;;  %728 = vst.msk [vmem:[%s1075_s24 + $0xb8] sm:$0xff] %vm704_vm3, %v695_v2  ;;  %v609_v5 = vmul.f32 %v1058_v47, %v499_v3  ;;  %v625_v6 = vmul.f32 %v1058_v47, %v563_v4  ;;  %v501_v7 = vpop.f32.mrb[17].mxu0  ;;  %v565_v8 = vpop.f32.mrb[17].mxu1 }
 0x123   : > { %v502_v9 = vpop.f32.mrb[18].mxu0  ;;  %v566_v10 = vpop.f32.mrb[18].mxu1 }
 0x124   : > { %v648_v11 = vadd.f32 %v1063_v49, %v609_v5  ;;  %v664_v12 = vadd.f32 %v1063_v49, %v625_v6  ;;  %v610_v13 = vmul.f32 %v1058_v47, %v502_v9  ;;  %v626_v14 = vmul.f32 %v1058_v47, %v566_v10  ;;  %v504_v15 = vpop.f32.mrb[19].mxu0  ;;  %v568_v16 = vpop.f32.mrb[19].mxu1 }
 0x126   : > { %v680_v17 = vmax.f32 %v648_v11, 0.0  ;;  %v696_v18 = vmax.f32 %v664_v12, 0.0  ;;  %v649_v19 = vadd.f32 %v1063_v49, %v610_v13  ;;  %v665_v20 = vadd.f32 %v1063_v49, %v626_v14 }
 0x128   : > { %713 = vst.msk [vmem:[%s1075_s24 + $0x40] sm:$0xff] %vm704_vm3, %v680_v17  ;;  %729 = vst.msk [vmem:[%s1075_s24 + $0xc0] sm:$0xff] %vm704_vm3, %v696_v18  ;;  %v681_v21 = vmax.f32 %v649_v19, 0.0  ;;  %v697_v22 = vmax.f32 %v665_v20, 0.0 }
 0x129   : > { %v507_v23 = vpop.f32.mrb[20].mxu0  ;;  %v571_v24 = vpop.f32.mrb[20].mxu1 }
 0x12a   : > { %714 = vst.msk [vmem:[%s1075_s24 + $0x48] sm:$0xff] %vm704_vm3, %v681_v21  ;;  %730 = vst.msk [vmem:[%s1075_s24 + $0xc8] sm:$0xff] %vm704_vm3, %v697_v22  ;;  %v611_v25 = vmul.f32 %v1058_v47, %v507_v23  ;;  %v627_v26 = vmul.f32 %v1058_v47, %v571_v24  ;;  %v509_v27 = vpop.f32.mrb[21].mxu0  ;;  %v573_v28 = vpop.f32.mrb[21].mxu1 }
 0x12b   : > { %v510_v29 = vpop.f32.mrb[22].mxu0  ;;  %v574_v30 = vpop.f32.mrb[22].mxu1 }
 0x12c   : > { %v650_v31 = vadd.f32 %v1063_v49, %v611_v25  ;;  %v666_v32 = vadd.f32 %v1063_v49, %v627_v26  ;;  %v612_v33 = vmul.f32 %v1058_v47, %v510_v29  ;;  %v628_v34 = vmul.f32 %v1058_v47, %v574_v30  ;;  %v512_v35 = vpop.f32.mrb[23].mxu0  ;;  %v576_v36 = vpop.f32.mrb[23].mxu1 }
 0x12e   : > { %v682_v37 = vmax.f32 %v650_v31, 0.0  ;;  %v698_v38 = vmax.f32 %v666_v32, 0.0  ;;  %v651_v39 = vadd.f32 %v1063_v49, %v612_v33  ;;  %v667_v40 = vadd.f32 %v1063_v49, %v628_v34 }
 0x130   : > { %715 = vst.msk [vmem:[%s1075_s24 + $0x50] sm:$0xff] %vm704_vm3, %v682_v37  ;;  %731 = vst.msk [vmem:[%s1075_s24 + $0xd0] sm:$0xff] %vm704_vm3, %v698_v38  ;;  %v683_v41 = vmax.f32 %v651_v39, 0.0  ;;  %v699_v42 = vmax.f32 %v667_v40, 0.0 }
 0x131   : > { %v515_v43 = vpop.f32.mrb[24].mxu0  ;;  %v579_v44 = vpop.f32.mrb[24].mxu1 }
 0x132   : > { %716 = vst.msk [vmem:[%s1075_s24 + $0x58] sm:$0xff] %vm704_vm3, %v683_v41  ;;  %732 = vst.msk [vmem:[%s1075_s24 + $0xd8] sm:$0xff] %vm704_vm3, %v699_v42  ;;  %v613_v45 = vmul.f32 %v1058_v47, %v515_v43  ;;  %v629_v46 = vmul.f32 %v1058_v47, %v579_v44  ;;  %v517_v48 = vpop.f32.mrb[25].mxu0  ;;  %v581_v50 = vpop.f32.mrb[25].mxu1 }
 0x133   : > { %v518_v51 = vpop.f32.mrb[26].mxu0  ;;  %v582_v52 = vpop.f32.mrb[26].mxu1 }
 0x134   : > { %v652_v53 = vadd.f32 %v1063_v49, %v613_v45  ;;  %v668_v54 = vadd.f32 %v1063_v49, %v629_v46  ;;  %v614_v55 = vmul.f32 %v1058_v47, %v518_v51  ;;  %v630_v56 = vmul.f32 %v1058_v47, %v582_v52  ;;  %v520_v57 = vpop.f32.mrb[27].mxu0  ;;  %v584_v58 = vpop.f32.mrb[27].mxu1 }
 0x136   : > { %v684_v59 = vmax.f32 %v652_v53, 0.0  ;;  %v700_v60 = vmax.f32 %v668_v54, 0.0  ;;  %v653_v61 = vadd.f32 %v1063_v49, %v614_v55  ;;  %v669_v62 = vadd.f32 %v1063_v49, %v630_v56 }
 0x138   : > { %717 = vst.msk [vmem:[%s1075_s24 + $0x60] sm:$0xff] %vm704_vm3, %v684_v59  ;;  %733 = vst.msk [vmem:[%s1075_s24 + $0xe0] sm:$0xff] %vm704_vm3, %v700_v60  ;;  %v685_v63 = vmax.f32 %v653_v61, 0.0  ;;  %v701_v0 = vmax.f32 %v669_v62, 0.0 }
 0x139   : > { %v523_v1 = vpop.f32.mrb[28].mxu0  ;;  %v587_v2 = vpop.f32.mrb[28].mxu1 }
 0x13a   : > { %718 = vst.msk [vmem:[%s1075_s24 + $0x68] sm:$0xff] %vm704_vm3, %v685_v63  ;;  %734 = vst.msk [vmem:[%s1075_s24 + $0xe8] sm:$0xff] %vm704_vm3, %v701_v0  ;;  %v615_v3 = vmul.f32 %v1058_v47, %v523_v1  ;;  %v631_v4 = vmul.f32 %v1058_v47, %v587_v2  ;;  %v525_v5 = vpop.f32.mrb[29].mxu0  ;;  %v589_v6 = vpop.f32.mrb[29].mxu1 }
 0x13b   : > { %v526_v7 = vpop.f32.mrb[30].mxu0  ;;  %v590_v8 = vpop.f32.mrb[30].mxu1 }
 0x13c   : > { %v654_v9 = vadd.f32 %v1063_v49, %v615_v3  ;;  %v670_v10 = vadd.f32 %v1063_v49, %v631_v4  ;;  %v616_v11 = vmul.f32 %v1058_v47, %v526_v7  ;;  %v632_v12 = vmul.f32 %v1058_v47, %v590_v8  ;;  %v528_v13 = vpop.f32.mrb[31].mxu0  ;;  %v592_v14 = vpop.f32.mrb[31].mxu1 }
 0x13e   : > { %v686_v15 = vmax.f32 %v654_v9, 0.0  ;;  %v702_v16 = vmax.f32 %v670_v10, 0.0  ;;  %v655_v17 = vadd.f32 %v1063_v49, %v616_v11  ;;  %v671_v18 = vadd.f32 %v1063_v49, %v632_v12 }
 0x140   : > { %719 = vst.msk [vmem:[%s1075_s24 + $0x70] sm:$0xff] %vm704_vm3, %v686_v15  ;;  %735 = vst.msk [vmem:[%s1075_s24 + $0xf0] sm:$0xff] %vm704_vm3, %v702_v16  ;;  %v687_v19 = vmax.f32 %v655_v17, 0.0  ;;  %v703_v20 = vmax.f32 %v671_v18, 0.0 }
 0x142   : > { %720 = vst.msk [vmem:[%s1075_s24 + $0x78] sm:$0xff] %vm704_vm3, %v687_v19  ;;  %736 = vst.msk [vmem:[%s1075_s24 + $0xf8] sm:$0xff] %vm704_vm3, %v703_v20 }
 0x143 PF: > { %s14_s15 = sadd.s32 1, %s880_s15  }
 0x144   : > { %p11_p4 = scmp.ge.s32.totalorder %s14_s15, 4  }
 0x146   :  { %13 = sbr.rel (!%p11_p4) target bundleno = 1 (0x1), region = 66 }

// kernel: densenet_forward.16
= control target key start
LH: loop header
LB: loop body
LE: loop exit
PB: predicated region body
PF: predicated region fallthrough
CT: control target
= control target key end

     0   :  { %v320_v0 = vmov 0   ;;  %vm132_vm0 = vcmask 130048   ;;  %vm254_vm1 = vcmask 64512   ;;  %s531_s1 = inlined_call_operand.vmem [shape: bf16[144,8], index: 1, kind: input, shape index: {}]   ;;  %s532_s0 = inlined_call_operand.vmem [shape: f32[128,144], index: 0, kind: input, shape index: {}]   ;;  %s533_s2 = inlined_call_operand.vmem [shape: f32[128,8], index: 2, kind: output, shape index: {}]  }
   0x1   :  { %157 = vmatprep.subr.bf16.mxu0 %v320_v0  ;;  %292 = vmatprep.subr.bf16.mxu1 %v320_v0  ;;  %v311_v1 = vld [vmem:[%s531_s1] sm:$0xff]   ;;  %v312_v2 = vld [vmem:[%s531_s1 + $0x8] sm:$0xff]   ;;  %v313_v3 = vld [vmem:[%s531_s1 + $0x10] sm:$0xff]  }
   0x2   :  { %158 = vmatpush1.bf16.msra.mxu0 %v311_v1  ;;  %301 = vmatpush1.bf16.msra.mxu1 %v311_v1  ;;  %v13_v4 = vld [vmem:[%s532_s0 + $0x8] sm:$0xff]  ;;  %v15_v5 = vld [vmem:[%s532_s0 + $0x18] sm:$0xff]  ;;  %v315_v11 = vld [vmem:[%s531_s1 + $0x20] sm:$0xff]  }
   0x3   :  { %159 = vmatprep.subr.bf16.mxu0 %v320_v0  ;;  %293 = vmatprep.subr.bf16.mxu1 %v320_v0  ;;  %v29_v6 = vld [vmem:[%s532_s0 + $0x88] sm:$0xff]  ;;  %v314_v7 = vld [vmem:[%s531_s1 + $0x18] sm:$0xff]   ;;  %v45_v8 = vpack.c.bf16 %v15_v5, %v13_v4  ;;  %v317_v13 = vld [vmem:[%s531_s1 + $0x30] sm:$0xff]  }
   0x4   :  { %v31_v9 = vld [vmem:[%s532_s0 + $0x98] sm:$0xff]  ;;  %v316_v12 = vld [vmem:[%s531_s1 + $0x28] sm:$0xff]   ;;  %v319_v15 = vld [vmem:[%s531_s1 + $0x40] sm:$0xff]  }
   0x5   :  { %v53_v10 = vpack.c.bf16 %v31_v9, %v29_v6  ;;  %284 = vmatprep.mubr.msk.bf16.mxu0 %vm132_vm0, %v45_v8  ;;  %v318_v14 = vld [vmem:[%s531_s1 + $0x38] sm:$0xff]   ;;  %v12_v16 = vld [vmem:[%s532_s0] sm:$0xff]  ;;  %v14_v17 = vld [vmem:[%s532_s0 + $0x10] sm:$0xff] }
   0x6   :  { %160 = vmatpush1.bf16.msra.mxu0 %v312_v2  ;;  %302 = vmatpush1.bf16.msra.mxu1 %v312_v2  ;;  %v28_v18 = vld [vmem:[%s532_s0 + $0x80] sm:$0xff]  ;;  %v30_v19 = vld [vmem:[%s532_s0 + $0x90] sm:$0xff]  ;;  %v17_v20 = vld [vmem:[%s532_s0 + $0x28] sm:$0xff]  ;;  %v44_v24 = vpack.c.bf16 %v14_v17, %v12_v16 }
   0x7   :  { %161 = vmatprep.subr.bf16.mxu0 %v320_v0  ;;  %294 = vmatprep.subr.bf16.mxu1 %v320_v0  ;;  %v19_v21 = vld [vmem:[%s532_s0 + $0x38] sm:$0xff]  ;;  %v33_v22 = vld [vmem:[%s532_s0 + $0xa8] sm:$0xff]  ;;  %v52_v25 = vpack.c.bf16 %v30_v19, %v28_v18  ;;  %v16_v28 = vld [vmem:[%s532_s0 + $0x20] sm:$0xff] }
   0x8   :  { %288 = vmatprep.mubr.msk.bf16.mxu1 %vm132_vm0, %v53_v10  ;;  %v35_v23 = vld [vmem:[%s532_s0 + $0xb8] sm:$0xff]  ;;  %v47_v26 = vpack.c.bf16 %v19_v21, %v17_v20  ;;  %v18_v29 = vld [vmem:[%s532_s0 + $0x30] sm:$0xff]  ;;  %v32_v30 = vld [vmem:[%s532_s0 + $0xa0] sm:$0xff] }
   0x9   :  { %v55_v27 = vpack.c.bf16 %v35_v23, %v33_v22  ;;  %v34_v31 = vld [vmem:[%s532_s0 + $0xb0] sm:$0xff]  ;;  %v21_v32 = vld [vmem:[%s532_s0 + $0x48] sm:$0xff]  ;;  %v23_v33 = vld [vmem:[%s532_s0 + $0x58] sm:$0xff]  ;;  %v46_v36 = vpack.c.bf16 %v18_v29, %v16_v28 }
   0xa   :  { %162 = vmatpush1.bf16.msra.mxu0 %v313_v3  ;;  %303 = vmatpush1.bf16.msra.mxu1 %v313_v3  ;;  %v37_v34 = vld [vmem:[%s532_s0 + $0xc8] sm:$0xff]  ;;  %v39_v35 = vld [vmem:[%s532_s0 + $0xd8] sm:$0xff]  ;;  %v54_v37 = vpack.c.bf16 %v34_v31, %v32_v30  ;;  %v49_v38 = vpack.c.bf16 %v23_v33, %v21_v32  ;;  %v20_v40 = vld [vmem:[%s532_s0 + $0x40] sm:$0xff] }
   0xb   :  { %163 = vmatprep.subr.bf16.mxu0 %v320_v0  ;;  %295 = vmatprep.subr.bf16.mxu1 %v320_v0  ;;  %v57_v39 = vpack.c.bf16 %v39_v35, %v37_v34  ;;  %v22_v41 = vld [vmem:[%s532_s0 + $0x50] sm:$0xff]  ;;  %v36_v42 = vld [vmem:[%s532_s0 + $0xc0] sm:$0xff]  ;;  %v25_v44 = vld [vmem:[%s532_s0 + $0x68] sm:$0xff] }
   0xc   :  { %v38_v43 = vld [vmem:[%s532_s0 + $0xd0] sm:$0xff]  ;;  %v27_v45 = vld [vmem:[%s532_s0 + $0x78] sm:$0xff]  ;;  %v41_v46 = vld [vmem:[%s532_s0 + $0xe8] sm:$0xff]  ;;  %v48_v48 = vpack.c.bf16 %v22_v41, %v20_v40 }
   0xd   :  { %v43_v47 = vld [vmem:[%s532_s0 + $0xf8] sm:$0xff]  ;;  %v56_v49 = vpack.c.bf16 %v38_v43, %v36_v42  ;;  %v51_v50 = vpack.c.bf16 %v27_v45, %v25_v44  ;;  %v24_v52 = vld [vmem:[%s532_s0 + $0x60] sm:$0xff]  ;;  %v26_v53 = vld [vmem:[%s532_s0 + $0x70] sm:$0xff] }
   0xe   :  { %164 = vmatpush1.bf16.msra.mxu0 %v314_v7  ;;  %304 = vmatpush1.bf16.msra.mxu1 %v314_v7  ;;  %v59_v51 = vpack.c.bf16 %v43_v47, %v41_v46  ;;  %v40_v54 = vld [vmem:[%s532_s0 + $0xe0] sm:$0xff]  ;;  %v42_v55 = vld [vmem:[%s532_s0 + $0xf0] sm:$0xff]  ;;  %v50_v56 = vpack.c.bf16 %v26_v53, %v24_v52 }
   0xf   :  { %165 = vmatprep.subr.bf16.mxu0 %v320_v0  ;;  %296 = vmatprep.subr.bf16.mxu1 %v320_v0  ;;  %v58_v57 = vpack.c.bf16 %v42_v55, %v40_v54 }
  0x12   :  { %166 = vmatpush1.bf16.msra.mxu0 %v315_v11  ;;  %305 = vmatpush1.bf16.msra.mxu1 %v315_v11 }
  0x13   :  { %167 = vmatprep.subr.bf16.mxu0 %v320_v0  ;;  %297 = vmatprep.subr.bf16.mxu1 %v320_v0 }
  0x16   :  { %168 = vmatpush1.bf16.msra.mxu0 %v316_v12  ;;  %306 = vmatpush1.bf16.msra.mxu1 %v316_v12 }
  0x17   :  { %169 = vmatprep.subr.bf16.mxu0 %v320_v0  ;;  %298 = vmatprep.subr.bf16.mxu1 %v320_v0 }
  0x1a   :  { %170 = vmatpush1.bf16.msra.mxu0 %v317_v13  ;;  %307 = vmatpush1.bf16.msra.mxu1 %v317_v13 }
  0x1b   :  { %171 = vmatprep.subr.bf16.mxu0 %v320_v0  ;;  %299 = vmatprep.subr.bf16.mxu1 %v320_v0 }
  0x1e   :  { %172 = vmatpush1.bf16.msra.mxu0 %v318_v14  ;;  %308 = vmatpush1.bf16.msra.mxu1 %v318_v14 }
  0x1f   :  { %173 = vmatprep.subr.bf16.mxu0 %v320_v0  ;;  %300 = vmatprep.subr.bf16.mxu1 %v320_v0 }
  0x22   :  { %174 = vmatpush1.bf16.msra.mxu0 %v319_v15  ;;  %309 = vmatpush1.bf16.msra.mxu1 %v319_v15 }
  0x25   :  { %190 = vmatmul.mubr.bf16.vlgmr.msra.gmra.mrb[0].mxu0 %v44_v24  ;;  %222 = vmatmul.mubr.bf16.vlgmr.msra.gmra.mrb[0].mxu1 %v52_v25 }
  0x26   :  { %285 = vmatprep.mubr.msk.bf16.mxu0 %vm132_vm0, %v47_v26  ;;  %289 = vmatprep.mubr.msk.bf16.mxu1 %vm132_vm0, %v55_v27 }
  0x2d   :  { %198 = vmatmul.mubr.bf16.gmra.mrb[4].mxu0 %v46_v36  ;;  %230 = vmatmul.mubr.bf16.gmra.mrb[4].mxu1 %v54_v37 }
  0x2e   :  { %286 = vmatprep.mubr.msk.bf16.mxu0 %vm132_vm0, %v49_v38  ;;  %290 = vmatprep.mubr.msk.bf16.mxu1 %vm132_vm0, %v57_v39 }
  0x35   :  { %206 = vmatmul.mubr.bf16.gmra.mrb[8].mxu0 %v48_v48  ;;  %238 = vmatmul.mubr.bf16.gmra.mrb[8].mxu1 %v56_v49 }
  0x36   :  { %287 = vmatprep.mubr.msk.bf16.mxu0 %vm132_vm0, %v51_v50  ;;  %291 = vmatprep.mubr.msk.bf16.mxu1 %vm132_vm0, %v59_v51 }
  0x3d   :  { %214 = vmatmul.mubr.bf16.gmra.mrb[12].mxu0 %v50_v56  ;;  %246 = vmatmul.mubr.bf16.gmra.mrb[12].mxu1 %v58_v57 }
  0xf8   :  { %v191_v58 = vpop.f32.mrb[0].mxu0  ;;  %v223_v59 = vpop.f32.mrb[0].mxu1 }
  0xf9   :  { %255 = vst.msk [vmem:[%s533_s2] sm:$0xff] %vm254_vm1, %v191_v58  ;;  %263 = vst.msk [vmem:[%s533_s2 + $0x40] sm:$0xff] %vm254_vm1, %v223_v59  ;;  %v193_v60 = vpop.f32.mrb[1].mxu0  ;;  %v225_v61 = vpop.f32.mrb[1].mxu1 }
  0xfa   :  { %v194_v62 = vpop.f32.mrb[2].mxu0  ;;  %v226_v63 = vpop.f32.mrb[2].mxu1 }
  0xfb   :  { %256 = vst.msk [vmem:[%s533_s2 + $0x8] sm:$0xff] %vm254_vm1, %v194_v62  ;;  %264 = vst.msk [vmem:[%s533_s2 + $0x48] sm:$0xff] %vm254_vm1, %v226_v63  ;;  %v196_v0 = vpop.f32.mrb[3].mxu0  ;;  %v228_v1 = vpop.f32.mrb[3].mxu1 }
 0x100   :  { %v199_v2 = vpop.f32.mrb[4].mxu0  ;;  %v231_v3 = vpop.f32.mrb[4].mxu1 }
 0x101   :  { %257 = vst.msk [vmem:[%s533_s2 + $0x10] sm:$0xff] %vm254_vm1, %v199_v2  ;;  %265 = vst.msk [vmem:[%s533_s2 + $0x50] sm:$0xff] %vm254_vm1, %v231_v3  ;;  %v201_v4 = vpop.f32.mrb[5].mxu0  ;;  %v233_v5 = vpop.f32.mrb[5].mxu1 }
 0x102   :  { %v202_v6 = vpop.f32.mrb[6].mxu0  ;;  %v234_v7 = vpop.f32.mrb[6].mxu1 }
 0x103   :  { %258 = vst.msk [vmem:[%s533_s2 + $0x18] sm:$0xff] %vm254_vm1, %v202_v6  ;;  %266 = vst.msk [vmem:[%s533_s2 + $0x58] sm:$0xff] %vm254_vm1, %v234_v7  ;;  %v204_v8 = vpop.f32.mrb[7].mxu0  ;;  %v236_v9 = vpop.f32.mrb[7].mxu1 }
 0x108   :  { %v207_v10 = vpop.f32.mrb[8].mxu0  ;;  %v239_v11 = vpop.f32.mrb[8].mxu1 }
 0x109   :  { %259 = vst.msk [vmem:[%s533_s2 + $0x20] sm:$0xff] %vm254_vm1, %v207_v10  ;;  %267 = vst.msk [vmem:[%s533_s2 + $0x60] sm:$0xff] %vm254_vm1, %v239_v11  ;;  %v209_v12 = vpop.f32.mrb[9].mxu0  ;;  %v241_v13 = vpop.f32.mrb[9].mxu1 }
 0x10a   :  { %v210_v14 = vpop.f32.mrb[10].mxu0  ;;  %v242_v15 = vpop.f32.mrb[10].mxu1 }
 0x10b   :  { %260 = vst.msk [vmem:[%s533_s2 + $0x28] sm:$0xff] %vm254_vm1, %v210_v14  ;;  %268 = vst.msk [vmem:[%s533_s2 + $0x68] sm:$0xff] %vm254_vm1, %v242_v15  ;;  %v212_v16 = vpop.f32.mrb[11].mxu0  ;;  %v244_v17 = vpop.f32.mrb[11].mxu1 }
 0x110   :  { %v215_v18 = vpop.f32.mrb[12].mxu0  ;;  %v247_v19 = vpop.f32.mrb[12].mxu1 }
 0x111   :  { %261 = vst.msk [vmem:[%s533_s2 + $0x30] sm:$0xff] %vm254_vm1, %v215_v18  ;;  %269 = vst.msk [vmem:[%s533_s2 + $0x70] sm:$0xff] %vm254_vm1, %v247_v19  ;;  %v217_v20 = vpop.f32.mrb[13].mxu0  ;;  %v249_v21 = vpop.f32.mrb[13].mxu1 }
 0x112   :  { %v218_v22 = vpop.f32.mrb[14].mxu0  ;;  %v250_v23 = vpop.f32.mrb[14].mxu1 }
 0x113   :  { %262 = vst.msk [vmem:[%s533_s2 + $0x38] sm:$0xff] %vm254_vm1, %v218_v22  ;;  %270 = vst.msk [vmem:[%s533_s2 + $0x78] sm:$0xff] %vm254_vm1, %v250_v23  ;;  %v220_v24 = vpop.f32.mrb[15].mxu0  ;;  %v252_v25 = vpop.f32.mrb[15].mxu1 }

// kernel: densenet_forward.17
= control target key start
LH: loop header
LB: loop body
LE: loop exit
PB: predicated region body
PF: predicated region fallthrough
CT: control target
= control target key end

     0   :  { %vm147_vm0 = vcmask 1043456   ;;  %vm122_vm1 = vcmask 195584   ;;  %vm310_vm2 = vcmask 130048   ;;  %s631_s3 = inlined_call_operand.vmem [shape: bf16[24,16], index: 3, kind: input, shape index: {}]   ;;  %s632_s0 = inlined_call_operand.vmem [shape: f32[128,24], index: 0, kind: input, shape index: {}]   ;;  %s633_s1 = inlined_call_operand.vmem [shape: f32[1,24], index: 1, kind: input, shape index: {}]   ;;  %s634_s2 = inlined_call_operand.vmem [shape: f32[1,24], index: 2, kind: input, shape index: {}]   ;;  %s635_s4 = inlined_call_operand.vmem [shape: f32[1,16], index: 4, kind: input, shape index: {}]   ;;  %s636_s5 = inlined_call_operand.vmem [shape: f32[1,16], index: 5, kind: input, shape index: {}]   ;;  %s637_s6 = inlined_call_operand.vmem [shape: f32[128,16], index: 6, kind: output, shape index: {}]  }
   0x1   :  { %v381_v0 = vld [vmem:[%s631_s3] sm:$0xff]   ;;  %v382_v1 = vld [vmem:[%s631_s3 + $0x8] ss:$0 sps:$4 sm:$0xff]   ;;  %v26_v10 = vld [vmem:[%s632_s0 + $0x10] sm:$0xff] }
   0x2   :  { %v24_v2 = vld [vmem:[%s632_s0] sm:$0xff]  ;;  %355 = vmatprep.subr.bf16.mxu0 %v381_v0  ;;  %375 = vmatprep.subr.bf16.mxu1 %v381_v0  ;;  %v25_v3 = vld [vmem:[%s632_s0 + $0x8] sm:$0xff]  ;;  %v149_v11 = vsel %vm147_vm0, %v382_v1, 0  ;;  %v27_v14 = vld [vmem:[%s632_s0 + $0x18] sm:$0xff] }
   0x3   :  { %v433_v4 = vld [vmem:[%s633_s1] ss:$0 sm:$0xff]  ;;  %356 = vmatpush3.bf16.msra.mxu0 %v381_v0  ;;  %377 = vmatpush3.bf16.msra.mxu1 %v381_v0  ;;  %v33_v9 = vld [vmem:[%s632_s0 + $0x48] sm:$0xff]  ;;  %v34_v16 = vld [vmem:[%s632_s0 + $0x50] sm:$0xff] }
   0x4   :  { %v438_v5 = vld [vmem:[%s634_s2] ss:$0 sm:$0xff]  ;;  %v47_v6 = vmul.f32 %v433_v4, %v24_v2  ;;  %v48_v7 = vmul.f32 %v433_v4, %v25_v3  ;;  %379 = vmatprep.subr.msk.bf16.mxu0 %vm147_vm0, %v382_v1  ;;  %380 = vmatprep.subr.msk.bf16.mxu1 %vm147_vm0, %v382_v1  ;;  %v56_v13 = vmul.f32 %v433_v4, %v33_v9  ;;  %v35_v17 = vld [vmem:[%s632_s0 + $0x58] sm:$0xff]  ;;  %v29_v31 = vld [vmem:[%s632_s0 + $0x28] sm:$0xff] }
   0x5   :  { %v32_v8 = vld [vmem:[%s632_s0 + $0x40] sm:$0xff]  ;;  %v49_v15 = vmul.f32 %v433_v4, %v26_v10  ;;  %v50_v20 = vmul.f32 %v433_v4, %v27_v14  ;;  %v57_v21 = vmul.f32 %v433_v4, %v34_v16  ;;  %v58_v25 = vmul.f32 %v433_v4, %v35_v17  ;;  %v37_v37 = vld [vmem:[%s632_s0 + $0x68] sm:$0xff]  ;;  %v30_v38 = vld [vmem:[%s632_s0 + $0x30] sm:$0xff] }
   0x6   :  { %v55_v12 = vmul.f32 %v433_v4, %v32_v8  ;;  %v70_v18 = vadd.f32 %v438_v5, %v47_v6  ;;  %v71_v19 = vadd.f32 %v438_v5, %v48_v7  ;;  %v79_v23 = vadd.f32 %v438_v5, %v56_v13  ;;  %v28_v26 = vld [vmem:[%s632_s0 + $0x20] sm:$0xff]  ;;  %v31_v43 = vld [vmem:[%s632_s0 + $0x38] sm:$0xff]  ;;  %v38_v48 = vld [vmem:[%s632_s0 + $0x70] sm:$0xff] }
   0x7   :  { %v72_v24 = vadd.f32 %v438_v5, %v49_v15  ;;  %358 = vmatpush3.bf16.msra.mxu0 %v149_v11  ;;  %378 = vmatpush3.bf16.msra.mxu1 %v149_v11  ;;  %v73_v29 = vadd.f32 %v438_v5, %v50_v20  ;;  %v80_v30 = vadd.f32 %v438_v5, %v57_v21  ;;  %v36_v32 = vld [vmem:[%s632_s0 + $0x60] sm:$0xff]  ;;  %v39_v53 = vld [vmem:[%s632_s0 + $0x78] sm:$0xff] }
   0x8   :  { %v78_v22 = vadd.f32 %v438_v5, %v55_v12  ;;  %v86_v27 = vmax.f32 %v70_v18, 0.0  ;;  %v87_v28 = vmax.f32 %v71_v19, 0.0  ;;  %v95_v34 = vmax.f32 %v79_v23, 0.0 }
   0x9   :  { %v88_v35 = vmax.f32 %v72_v24, 0.0  ;;  %v81_v36 = vadd.f32 %v438_v5, %v58_v25  ;;  %v89_v40 = vmax.f32 %v73_v29, 0.0  ;;  %v96_v41 = vmax.f32 %v80_v30, 0.0 }
   0xa   :  { %v94_v33 = vmax.f32 %v78_v22, 0.0  ;;  %v102_v39 = vpack.c.bf16 %v87_v28, %v86_v27  ;;  %v51_v42 = vmul.f32 %v433_v4, %v28_v26  ;;  %v52_v46 = vmul.f32 %v433_v4, %v29_v31 }
   0xb   :  { %v97_v45 = vmax.f32 %v81_v36, 0.0  ;;  %v59_v47 = vmul.f32 %v433_v4, %v36_v32  ;;  %v103_v49 = vpack.c.bf16 %v89_v40, %v88_v35  ;;  %v60_v51 = vmul.f32 %v433_v4, %v37_v37 }
   0xc   :  { %v106_v44 = vpack.c.bf16 %v95_v34, %v94_v33  ;;  %359 = vmatprep.mubr.msk.bf16.mxu0 %vm122_vm1, %v102_v39  ;;  %v74_v50 = vadd.f32 %v438_v5, %v51_v42  ;;  %v53_v52 = vmul.f32 %v433_v4, %v30_v38  ;;  %v75_v55 = vadd.f32 %v438_v5, %v52_v46 }
   0xd   :  { %v107_v54 = vpack.c.bf16 %v97_v45, %v96_v41  ;;  %v82_v56 = vadd.f32 %v438_v5, %v59_v47  ;;  %v54_v57 = vmul.f32 %v433_v4, %v31_v43  ;;  %360 = vmatmul.mubr.msk.bf16.vlgmr.msra.gmra.mrb[0].mxu0 %vm122_vm1, %v103_v49  ;;  %v83_v59 = vadd.f32 %v438_v5, %v60_v51 }
   0xe   :  { %367 = vmatprep.mubr.msk.bf16.mxu1 %vm122_vm1, %v106_v44  ;;  %v90_v58 = vmax.f32 %v74_v50, 0.0  ;;  %v76_v60 = vadd.f32 %v438_v5, %v53_v52  ;;  %v61_v61 = vmul.f32 %v433_v4, %v38_v48  ;;  %v91_v62 = vmax.f32 %v75_v55, 0.0 }
   0xf   :  { %368 = vmatmul.mubr.msk.bf16.vlgmr.msra.gmra.mrb[0].mxu1 %vm122_vm1, %v107_v54  ;;  %v98_v63 = vmax.f32 %v82_v56, 0.0  ;;  %v77_v0 = vadd.f32 %v438_v5, %v54_v57  ;;  %v62_v1 = vmul.f32 %v433_v4, %v39_v53  ;;  %v99_v2 = vmax.f32 %v83_v59, 0.0  ;;  %v528_v4 = vld [vmem:[%s635_s4] ss:$0 sm:$0xff] }
  0x10   :  { %v92_v3 = vmax.f32 %v76_v60, 0.0  ;;  %v84_v6 = vadd.f32 %v438_v5, %v61_v61  ;;  %v104_v7 = vpack.c.bf16 %v91_v62, %v90_v58 }
  0x11   :  { %v93_v8 = vmax.f32 %v77_v0, 0.0  ;;  %v85_v9 = vadd.f32 %v438_v5, %v62_v1  ;;  %v108_v10 = vpack.c.bf16 %v99_v2, %v98_v63  ;;  %v533_v5 = vld [vmem:[%s636_s5] ss:$0 sm:$0xff] }
  0x12   :  { %v100_v11 = vmax.f32 %v84_v6, 0.0  ;;  %363 = vmatprep.mubr.msk.bf16.mxu0 %vm122_vm1, %v104_v7 }
  0x13   :  { %v105_v12 = vpack.c.bf16 %v93_v8, %v92_v3  ;;  %v101_v13 = vmax.f32 %v85_v9, 0.0  ;;  %371 = vmatprep.mubr.msk.bf16.mxu1 %vm122_vm1, %v108_v10 }
  0x15   :  { %v109_v14 = vpack.c.bf16 %v101_v13, %v100_v11  ;;  %364 = vmatmul.mubr.msk.bf16.gmra.mrb[4].mxu0 %vm122_vm1, %v105_v12 }
  0x17   :  { %372 = vmatmul.mubr.msk.bf16.gmra.mrb[4].mxu1 %vm122_vm1, %v109_v14 }
  0xe0   :  { %v361_v15 = vpop.f32.mrb[0].mxu0 }
  0xe1   :  { %v257_v16 = vmul.f32 %v361_v15, %v528_v4  ;;  %v185_v18 = vpop.f32.mrb[1].mxu0 }
  0xe2   :  { %v369_v17 = vpop.f32.mrb[0].mxu1  ;;  %v255_v20 = vmul.f32 %v528_v4, %v185_v18  ;;  %v362_v22 = vpop.f32.mrb[2].mxu0 }
  0xe3   :  { %v265_v19 = vmul.f32 %v369_v17, %v528_v4  ;;  %v217_v21 = vpop.f32.mrb[1].mxu1  ;;  %v280_v23 = vadd.f32 %v533_v5, %v257_v16  ;;  %v258_v25 = vmul.f32 %v362_v22, %v528_v4  ;;  %v188_v27 = vpop.f32.mrb[3].mxu0 }
  0xe4   :  { %v263_v24 = vmul.f32 %v528_v4, %v217_v21  ;;  %v370_v26 = vpop.f32.mrb[2].mxu1  ;;  %v278_v29 = vadd.f32 %v533_v5, %v255_v20  ;;  %v256_v31 = vmul.f32 %v528_v4, %v188_v27 }
  0xe5   :  { %v288_v28 = vadd.f32 %v533_v5, %v265_v19  ;;  %v266_v30 = vmul.f32 %v370_v26, %v528_v4  ;;  %v220_v32 = vpop.f32.mrb[3].mxu1  ;;  %v296_v33 = vmax.f32 %v280_v23, 0.0  ;;  %v281_v35 = vadd.f32 %v533_v5, %v258_v25 }
  0xe6   :  { %v286_v34 = vadd.f32 %v533_v5, %v263_v24  ;;  %v264_v36 = vmul.f32 %v528_v4, %v220_v32  ;;  %v294_v38 = vmax.f32 %v278_v29, 0.0  ;;  %v279_v40 = vadd.f32 %v533_v5, %v256_v31 }
  0xe7   :  { %v304_v37 = vmax.f32 %v288_v28, 0.0  ;;  %v289_v39 = vadd.f32 %v533_v5, %v266_v30  ;;  %313 = vst.msk [vmem:[%s637_s6 + $0x10] sm:$0xff] %vm310_vm2, %v296_v33  ;;  %v297_v42 = vmax.f32 %v281_v35, 0.0 }
  0xe8   :  { %v302_v41 = vmax.f32 %v286_v34, 0.0  ;;  %v287_v43 = vadd.f32 %v533_v5, %v264_v36  ;;  %311 = vst.msk [vmem:[%s637_s6] sm:$0xff] %vm310_vm2, %v294_v38  ;;  %v295_v45 = vmax.f32 %v279_v40, 0.0  ;;  %v365_v46 = vpop.f32.mrb[4].mxu0 }
  0xe9   :  { %321 = vst.msk [vmem:[%s637_s6 + $0x50] sm:$0xff] %vm310_vm2, %v304_v37  ;;  %v305_v44 = vmax.f32 %v289_v39, 0.0  ;;  %314 = vst.msk [vmem:[%s637_s6 + $0x18] sm:$0xff] %vm310_vm2, %v297_v42  ;;  %v261_v48 = vmul.f32 %v365_v46, %v528_v4  ;;  %v201_v50 = vpop.f32.mrb[5].mxu0 }
  0xea   :  { %319 = vst.msk [vmem:[%s637_s6 + $0x40] sm:$0xff] %vm310_vm2, %v302_v41  ;;  %v303_v47 = vmax.f32 %v287_v43, 0.0  ;;  %v373_v49 = vpop.f32.mrb[4].mxu1  ;;  %312 = vst.msk [vmem:[%s637_s6 + $0x8] sm:$0xff] %vm310_vm2, %v295_v45  ;;  %v259_v52 = vmul.f32 %v528_v4, %v201_v50  ;;  %v366_v54 = vpop.f32.mrb[6].mxu0 }
  0xeb   :  { %322 = vst.msk [vmem:[%s637_s6 + $0x58] sm:$0xff] %vm310_vm2, %v305_v44  ;;  %v269_v51 = vmul.f32 %v373_v49, %v528_v4  ;;  %v233_v53 = vpop.f32.mrb[5].mxu1  ;;  %v284_v55 = vadd.f32 %v533_v5, %v261_v48  ;;  %v262_v57 = vmul.f32 %v366_v54, %v528_v4  ;;  %v204_v59 = vpop.f32.mrb[7].mxu0 }
  0xec   :  { %320 = vst.msk [vmem:[%s637_s6 + $0x48] sm:$0xff] %vm310_vm2, %v303_v47  ;;  %v267_v56 = vmul.f32 %v528_v4, %v233_v53  ;;  %v374_v58 = vpop.f32.mrb[6].mxu1  ;;  %v282_v61 = vadd.f32 %v533_v5, %v259_v52  ;;  %v260_v63 = vmul.f32 %v528_v4, %v204_v59 }
  0xed   :  { %v292_v60 = vadd.f32 %v533_v5, %v269_v51  ;;  %v270_v62 = vmul.f32 %v374_v58, %v528_v4  ;;  %v236_v0 = vpop.f32.mrb[7].mxu1  ;;  %v300_v1 = vmax.f32 %v284_v55, 0.0  ;;  %v285_v3 = vadd.f32 %v533_v5, %v262_v57 }
  0xee   :  { %v290_v2 = vadd.f32 %v533_v5, %v267_v56  ;;  %v268_v6 = vmul.f32 %v528_v4, %v236_v0  ;;  %v298_v8 = vmax.f32 %v282_v61, 0.0  ;;  %v283_v10 = vadd.f32 %v533_v5, %v260_v63 }
  0xef   :  { %v308_v7 = vmax.f32 %v292_v60, 0.0  ;;  %v293_v9 = vadd.f32 %v533_v5, %v270_v62  ;;  %317 = vst.msk [vmem:[%s637_s6 + $0x30] sm:$0xff] %vm310_vm2, %v300_v1  ;;  %v301_v12 = vmax.f32 %v285_v3, 0.0 }
  0xf0   :  { %v306_v11 = vmax.f32 %v290_v2, 0.0  ;;  %v291_v13 = vadd.f32 %v533_v5, %v268_v6  ;;  %315 = vst.msk [vmem:[%s637_s6 + $0x20] sm:$0xff] %vm310_vm2, %v298_v8  ;;  %v299_v4 = vmax.f32 %v283_v10, 0.0 }
  0xf1   :  { %325 = vst.msk [vmem:[%s637_s6 + $0x70] sm:$0xff] %vm310_vm2, %v308_v7  ;;  %v309_v14 = vmax.f32 %v293_v9, 0.0  ;;  %318 = vst.msk [vmem:[%s637_s6 + $0x38] sm:$0xff] %vm310_vm2, %v301_v12 }
  0xf2   :  { %323 = vst.msk [vmem:[%s637_s6 + $0x60] sm:$0xff] %vm310_vm2, %v306_v11  ;;  %v307_v15 = vmax.f32 %v291_v13, 0.0  ;;  %316 = vst.msk [vmem:[%s637_s6 + $0x28] sm:$0xff] %vm310_vm2, %v299_v4 }
  0xf3   :  { %326 = vst.msk [vmem:[%s637_s6 + $0x78] sm:$0xff] %vm310_vm2, %v309_v14 }
  0xf4   :  { %324 = vst.msk [vmem:[%s637_s6 + $0x68] sm:$0xff] %vm310_vm2, %v307_v15 }

// kernel: densenet_forward.19
= control target key start
LH: loop header
LB: loop body
LE: loop exit
PB: predicated region body
PF: predicated region fallthrough
CT: control target
= control target key end

     0   :  { %vm120_vm0 = vcmask 261120   ;;  %vm242_vm1 = vcmask 130048   ;;  %s504_s3 = inlined_call_operand.vmem [shape: bf16[32,16], index: 3, kind: input, shape index: {}]   ;;  %s505_s0 = inlined_call_operand.vmem [shape: f32[128,32], index: 0, kind: input, shape index: {}]   ;;  %s506_s1 = inlined_call_operand.vmem [shape: f32[1,32], index: 1, kind: input, shape index: {}]   ;;  %s507_s2 = inlined_call_operand.vmem [shape: f32[1,32], index: 2, kind: input, shape index: {}]   ;;  %s508_s4 = inlined_call_operand.vmem [shape: f32[128,16], index: 4, kind: output, shape index: {}]  }
   0x1   :  { %v309_v0 = vld [vmem:[%s504_s3] sm:$0xff]   ;;  %v310_v1 = vld [vmem:[%s504_s3 + $0x8] sm:$0xff]   ;;  %v20_v12 = vld [vmem:[%s505_s0 + $0x10] sm:$0xff] }
   0x2   :  { %285 = vmatprep.subr.bf16.mxu0 %v309_v0  ;;  %305 = vmatprep.subr.bf16.mxu1 %v309_v0  ;;  %v18_v2 = vld [vmem:[%s505_s0] sm:$0xff]  ;;  %v19_v3 = vld [vmem:[%s505_s0 + $0x8] sm:$0xff]  ;;  %v21_v13 = vld [vmem:[%s505_s0 + $0x18] sm:$0xff] }
   0x3   :  { %v351_v4 = vld [vmem:[%s506_s1] ss:$0 sm:$0xff]  ;;  %286 = vmatpush3.bf16.msra.mxu0 %v309_v0  ;;  %307 = vmatpush3.bf16.msra.mxu1 %v309_v0  ;;  %v27_v9 = vld [vmem:[%s505_s0 + $0x48] sm:$0xff]  ;;  %v28_v14 = vld [vmem:[%s505_s0 + $0x50] sm:$0xff] }
   0x4   :  { %v41_v5 = vmul.f32 %v351_v4, %v18_v2  ;;  %v42_v6 = vmul.f32 %v351_v4, %v19_v3  ;;  %v358_v7 = vld [vmem:[%s507_s2] ss:$0 sm:$0xff]  ;;  %287 = vmatprep.subr.bf16.mxu0 %v310_v1  ;;  %306 = vmatprep.subr.bf16.mxu1 %v310_v1  ;;  %v50_v11 = vmul.f32 %v351_v4, %v27_v9  ;;  %v29_v19 = vld [vmem:[%s505_s0 + $0x58] sm:$0xff]  ;;  %v23_v29 = vld [vmem:[%s505_s0 + $0x28] sm:$0xff] }
   0x5   :  { %v26_v8 = vld [vmem:[%s505_s0 + $0x40] sm:$0xff]  ;;  %v43_v17 = vmul.f32 %v351_v4, %v20_v12  ;;  %v44_v18 = vmul.f32 %v351_v4, %v21_v13  ;;  %v51_v22 = vmul.f32 %v351_v4, %v28_v14  ;;  %v52_v23 = vmul.f32 %v351_v4, %v29_v19  ;;  %v31_v35 = vld [vmem:[%s505_s0 + $0x68] sm:$0xff]  ;;  %v24_v40 = vld [vmem:[%s505_s0 + $0x30] sm:$0xff] }
   0x6   :  { %v49_v10 = vmul.f32 %v351_v4, %v26_v8  ;;  %v64_v15 = vadd.f32 %v358_v7, %v41_v5  ;;  %v65_v16 = vadd.f32 %v358_v7, %v42_v6  ;;  %v73_v21 = vadd.f32 %v358_v7, %v50_v11  ;;  %v22_v24 = vld [vmem:[%s505_s0 + $0x20] sm:$0xff]  ;;  %v25_v41 = vld [vmem:[%s505_s0 + $0x38] sm:$0xff]  ;;  %v32_v46 = vld [vmem:[%s505_s0 + $0x70] sm:$0xff] }
   0x7   :  { %288 = vmatpush3.bf16.msra.mxu0 %v310_v1  ;;  %308 = vmatpush3.bf16.msra.mxu1 %v310_v1  ;;  %v66_v27 = vadd.f32 %v358_v7, %v43_v17  ;;  %v67_v28 = vadd.f32 %v358_v7, %v44_v18  ;;  %v74_v32 = vadd.f32 %v358_v7, %v51_v22  ;;  %v30_v34 = vld [vmem:[%s505_s0 + $0x60] sm:$0xff]  ;;  %v33_v51 = vld [vmem:[%s505_s0 + $0x78] sm:$0xff] }
   0x8   :  { %v72_v20 = vadd.f32 %v358_v7, %v49_v10  ;;  %v80_v25 = vmax.f32 %v64_v15, 0.0  ;;  %v81_v26 = vmax.f32 %v65_v16, 0.0  ;;  %v89_v31 = vmax.f32 %v73_v21, 0.0 }
   0x9   :  { %v75_v33 = vadd.f32 %v358_v7, %v52_v23  ;;  %v82_v37 = vmax.f32 %v66_v27, 0.0  ;;  %v83_v38 = vmax.f32 %v67_v28, 0.0  ;;  %v45_v39 = vmul.f32 %v351_v4, %v22_v24 }
   0xa   :  { %v88_v30 = vmax.f32 %v72_v20, 0.0  ;;  %v96_v36 = vpack.c.bf16 %v81_v26, %v80_v25  ;;  %v90_v43 = vmax.f32 %v74_v32, 0.0  ;;  %v46_v45 = vmul.f32 %v351_v4, %v23_v29 }
   0xb   :  { %v91_v44 = vmax.f32 %v75_v33, 0.0  ;;  %v97_v47 = vpack.c.bf16 %v83_v38, %v82_v37  ;;  %v68_v48 = vadd.f32 %v358_v7, %v45_v39  ;;  %v53_v49 = vmul.f32 %v351_v4, %v30_v34 }
   0xc   :  { %v100_v42 = vpack.c.bf16 %v89_v31, %v88_v30  ;;  %289 = vmatprep.mubr.msk.bf16.mxu0 %vm120_vm0, %v96_v36  ;;  %v54_v50 = vmul.f32 %v351_v4, %v31_v35  ;;  %v69_v53 = vadd.f32 %v358_v7, %v46_v45  ;;  %v47_v54 = vmul.f32 %v351_v4, %v24_v40 }
   0xd   :  { %v101_v52 = vpack.c.bf16 %v91_v44, %v90_v43  ;;  %v48_v55 = vmul.f32 %v351_v4, %v25_v41  ;;  %290 = vmatmul.mubr.msk.bf16.vlgmr.msra.gmra.mrb[0].mxu0 %vm120_vm0, %v97_v47  ;;  %v84_v56 = vmax.f32 %v68_v48, 0.0  ;;  %v76_v57 = vadd.f32 %v358_v7, %v53_v49 }
   0xe   :  { %297 = vmatprep.mubr.msk.bf16.mxu1 %vm120_vm0, %v100_v42  ;;  %v77_v58 = vadd.f32 %v358_v7, %v54_v50  ;;  %v55_v59 = vmul.f32 %v351_v4, %v32_v46  ;;  %v85_v60 = vmax.f32 %v69_v53, 0.0  ;;  %v70_v61 = vadd.f32 %v358_v7, %v47_v54 }
   0xf   :  { %298 = vmatmul.mubr.msk.bf16.vlgmr.msra.gmra.mrb[0].mxu1 %vm120_vm0, %v101_v52  ;;  %v71_v62 = vadd.f32 %v358_v7, %v48_v55  ;;  %v56_v63 = vmul.f32 %v351_v4, %v33_v51  ;;  %v92_v0 = vmax.f32 %v76_v57, 0.0 }
  0x10   :  { %v93_v1 = vmax.f32 %v77_v58, 0.0  ;;  %v78_v2 = vadd.f32 %v358_v7, %v55_v59  ;;  %v98_v3 = vpack.c.bf16 %v85_v60, %v84_v56  ;;  %v86_v5 = vmax.f32 %v70_v61, 0.0 }
  0x11   :  { %v87_v6 = vmax.f32 %v71_v62, 0.0  ;;  %v79_v8 = vadd.f32 %v358_v7, %v56_v63 }
  0x12   :  { %v102_v9 = vpack.c.bf16 %v93_v1, %v92_v0  ;;  %v94_v10 = vmax.f32 %v78_v2, 0.0  ;;  %293 = vmatprep.mubr.msk.bf16.mxu0 %vm120_vm0, %v98_v3 }
  0x13   :  { %v99_v11 = vpack.c.bf16 %v87_v6, %v86_v5  ;;  %v95_v12 = vmax.f32 %v79_v8, 0.0 }
  0x14   :  { %301 = vmatprep.mubr.msk.bf16.mxu1 %vm120_vm0, %v102_v9 }
  0x15   :  { %v103_v13 = vpack.c.bf16 %v95_v12, %v94_v10  ;;  %294 = vmatmul.mubr.msk.bf16.gmra.mrb[4].mxu0 %vm120_vm0, %v99_v11 }
  0x17   :  { %302 = vmatmul.mubr.msk.bf16.gmra.mrb[4].mxu1 %vm120_vm0, %v103_v13 }
  0xe0   :  { %v291_v4 = vpop.f32.mrb[0].mxu0 }
  0xe1   :  { %245 = vst.msk [vmem:[%s508_s4 + $0x10] sm:$0xff] %vm242_vm1, %v291_v4  ;;  %v179_v14 = vpop.f32.mrb[1].mxu0 }
  0xe2   :  { %v299_v7 = vpop.f32.mrb[0].mxu1  ;;  %243 = vst.msk [vmem:[%s508_s4] sm:$0xff] %vm242_vm1, %v179_v14  ;;  %v292_v16 = vpop.f32.mrb[2].mxu0 }
  0xe3   :  { %253 = vst.msk [vmem:[%s508_s4 + $0x50] sm:$0xff] %vm242_vm1, %v299_v7  ;;  %v211_v15 = vpop.f32.mrb[1].mxu1  ;;  %246 = vst.msk [vmem:[%s508_s4 + $0x18] sm:$0xff] %vm242_vm1, %v292_v16  ;;  %v182_v18 = vpop.f32.mrb[3].mxu0 }
  0xe4   :  { %251 = vst.msk [vmem:[%s508_s4 + $0x40] sm:$0xff] %vm242_vm1, %v211_v15  ;;  %v300_v17 = vpop.f32.mrb[2].mxu1  ;;  %244 = vst.msk [vmem:[%s508_s4 + $0x8] sm:$0xff] %vm242_vm1, %v182_v18 }
  0xe5   :  { %254 = vst.msk [vmem:[%s508_s4 + $0x58] sm:$0xff] %vm242_vm1, %v300_v17  ;;  %v214_v19 = vpop.f32.mrb[3].mxu1 }
  0xe6   :  { %252 = vst.msk [vmem:[%s508_s4 + $0x48] sm:$0xff] %vm242_vm1, %v214_v19 }
  0xe8   :  { %v295_v20 = vpop.f32.mrb[4].mxu0 }
  0xe9   :  { %249 = vst.msk [vmem:[%s508_s4 + $0x30] sm:$0xff] %vm242_vm1, %v295_v20  ;;  %v195_v22 = vpop.f32.mrb[5].mxu0 }
  0xea   :  { %v303_v21 = vpop.f32.mrb[4].mxu1  ;;  %247 = vst.msk [vmem:[%s508_s4 + $0x20] sm:$0xff] %vm242_vm1, %v195_v22  ;;  %v296_v24 = vpop.f32.mrb[6].mxu0 }
  0xeb   :  { %257 = vst.msk [vmem:[%s508_s4 + $0x70] sm:$0xff] %vm242_vm1, %v303_v21  ;;  %v227_v23 = vpop.f32.mrb[5].mxu1  ;;  %250 = vst.msk [vmem:[%s508_s4 + $0x38] sm:$0xff] %vm242_vm1, %v296_v24  ;;  %v198_v26 = vpop.f32.mrb[7].mxu0 }
  0xec   :  { %255 = vst.msk [vmem:[%s508_s4 + $0x60] sm:$0xff] %vm242_vm1, %v227_v23  ;;  %v304_v25 = vpop.f32.mrb[6].mxu1  ;;  %248 = vst.msk [vmem:[%s508_s4 + $0x28] sm:$0xff] %vm242_vm1, %v198_v26 }
  0xed   :  { %258 = vst.msk [vmem:[%s508_s4 + $0x78] sm:$0xff] %vm242_vm1, %v304_v25  ;;  %v230_v27 = vpop.f32.mrb[7].mxu1 }
  0xee   :  { %256 = vst.msk [vmem:[%s508_s4 + $0x68] sm:$0xff] %vm242_vm1, %v230_v27 }

// kernel: densenet_forward.20
= control target key start
LH: loop header
LB: loop body
LE: loop exit
PB: predicated region body
PF: predicated region fallthrough
CT: control target
= control target key end

     0   :  { %vm81_vm0 = vcmask 125952   ;;  %s247_s0 = inlined_call_operand.vmem [shape: f32[2,4,4,16], index: 0, kind: input, shape index: {}]   ;;  %s248_s1 = inlined_call_operand.vmem [shape: f32[2,4,4,16], index: 1, kind: input, shape index: {}]   ;;  %s249_s2 = inlined_call_operand.vmem [shape: f32[2,4,4,16], index: 2, kind: input, shape index: {}]   ;;  %s250_s3 = inlined_call_operand.vmem [shape: f32[2,4,4,16], index: 3, kind: input, shape index: {}]   ;;  %s251_s4 = inlined_call_operand.vmem [shape: f32[2,4,4,16], index: 4, kind: output, shape index: {}]  }
   0x1   :  { %v17_v0 = vld [vmem:[%s247_s0] sm:$0xf]  ;;  %v18_v5 = vld [vmem:[%s247_s0 + $0x4] sm:$0xf]  ;;  %v19_v10 = vld [vmem:[%s247_s0 + $0x8] sm:$0xf] }
   0x2   :  { %v25_v1 = vld [vmem:[%s248_s1] sm:$0xf]  ;;  %v26_v6 = vld [vmem:[%s248_s1 + $0x4] sm:$0xf]  ;;  %v27_v12 = vld [vmem:[%s248_s1 + $0x8] sm:$0xf] }
   0x3   :  { %v41_v2 = vld [vmem:[%s249_s2] sm:$0xf]  ;;  %v33_v3 = vadd.f32 %v25_v1, %v17_v0  ;;  %v34_v7 = vadd.f32 %v26_v6, %v18_v5  ;;  %v42_v8 = vld [vmem:[%s249_s2 + $0x4] sm:$0xf]  ;;  %v43_v13 = vld [vmem:[%s249_s2 + $0x8] sm:$0xf]  ;;  %v35_v16 = vadd.f32 %v27_v12, %v19_v10 }
   0x4   :  { %v57_v4 = vld [vmem:[%s250_s3] sm:$0xf]  ;;  %v58_v9 = vld [vmem:[%s250_s3 + $0x4] sm:$0xf]  ;;  %v59_v14 = vld [vmem:[%s250_s3 + $0x8] sm:$0xf] }
   0x5   :  { %v49_v11 = vadd.f32 %v41_v2, %v33_v3  ;;  %v50_v15 = vadd.f32 %v42_v8, %v34_v7  ;;  %v20_v17 = vld [vmem:[%s247_s0 + $0xc] sm:$0xf]  ;;  %v21_v23 = vld [vmem:[%s247_s0 + $0x10] sm:$0xf]  ;;  %v51_v26 = vadd.f32 %v43_v13, %v35_v16  ;;  %v22_v30 = vld [vmem:[%s247_s0 + $0x14] sm:$0xf] }
   0x6   :  { %v28_v18 = vld [vmem:[%s248_s1 + $0xc] sm:$0xf]  ;;  %v29_v24 = vld [vmem:[%s248_s1 + $0x10] sm:$0xf]  ;;  %v30_v33 = vld [vmem:[%s248_s1 + $0x14] sm:$0xf] }
   0x7   :  { %v44_v19 = vld [vmem:[%s249_s2 + $0xc] sm:$0xf]  ;;  %v65_v20 = vadd.f32 %v57_v4, %v49_v11  ;;  %v36_v21 = vadd.f32 %v28_v18, %v20_v17  ;;  %v66_v25 = vadd.f32 %v58_v9, %v50_v15  ;;  %v37_v27 = vadd.f32 %v29_v24, %v21_v23  ;;  %v45_v28 = vld [vmem:[%s249_s2 + $0x10] sm:$0xf]  ;;  %v46_v34 = vld [vmem:[%s249_s2 + $0x14] sm:$0xf] }
   0x8   :  { %v60_v22 = vld [vmem:[%s250_s3 + $0xc] sm:$0xf]  ;;  %v61_v29 = vld [vmem:[%s250_s3 + $0x10] sm:$0xf]  ;;  %v67_v36 = vadd.f32 %v59_v14, %v51_v26  ;;  %v38_v38 = vadd.f32 %v30_v33, %v22_v30  ;;  %v23_v39 = vld [vmem:[%s247_s0 + $0x18] sm:$0xf] }
   0x9   :  { %v73_v31 = vmul.f32 0.25, %v65_v20  ;;  %v52_v32 = vadd.f32 %v44_v19, %v36_v21  ;;  %v74_v35 = vmul.f32 0.25, %v66_v25  ;;  %v53_v37 = vadd.f32 %v45_v28, %v37_v27  ;;  %v62_v41 = vld [vmem:[%s250_s3 + $0x14] sm:$0xf]  ;;  %v31_v42 = vld [vmem:[%s248_s1 + $0x18] sm:$0xf] }
   0xa   :  { %v47_v43 = vld [vmem:[%s249_s2 + $0x18] sm:$0xf]  ;;  %v75_v44 = vmul.f32 0.25, %v67_v36  ;;  %v54_v46 = vadd.f32 %v46_v34, %v38_v38  ;;  %v39_v47 = vadd.f32 %v31_v42, %v23_v39  ;;  %v24_v48 = vld [vmem:[%s247_s0 + $0x1c] sm:$0xf] }
   0xb   :  { %82 = vst.msk [vmem:[%s251_s4] sm:$0xf] %vm81_vm0, %v73_v31  ;;  %v68_v40 = vadd.f32 %v60_v22, %v52_v32  ;;  %83 = vst.msk [vmem:[%s251_s4 + $0x4] sm:$0xf] %vm81_vm0, %v74_v35  ;;  %v69_v45 = vadd.f32 %v61_v29, %v53_v37  ;;  %v32_v49 = vld [vmem:[%s248_s1 + $0x1c] sm:$0xf] }
   0xc   :  { %v63_v51 = vld [vmem:[%s250_s3 + $0x18] sm:$0xf]  ;;  %v40_v52 = vadd.f32 %v32_v49, %v24_v48  ;;  %v48_v53 = vld [vmem:[%s249_s2 + $0x1c] sm:$0xf]  ;;  %84 = vst.msk [vmem:[%s251_s4 + $0x8] sm:$0xf] %vm81_vm0, %v75_v44  ;;  %v70_v55 = vadd.f32 %v62_v41, %v54_v46  ;;  %v55_v56 = vadd.f32 %v47_v43, %v39_v47 }
   0xd   :  { %v76_v50 = vmul.f32 0.25, %v68_v40  ;;  %v77_v54 = vmul.f32 0.25, %v69_v45  ;;  %v64_v57 = vld [vmem:[%s250_s3 + $0x1c] sm:$0xf] }
   0xe   :  { %v56_v58 = vadd.f32 %v48_v53, %v40_v52  ;;  %v78_v59 = vmul.f32 0.25, %v70_v55  ;;  %v71_v60 = vadd.f32 %v63_v51, %v55_v56 }
   0xf   :  { %85 = vst.msk [vmem:[%s251_s4 + $0xc] sm:$0xf] %vm81_vm0, %v76_v50  ;;  %86 = vst.msk [vmem:[%s251_s4 + $0x10] sm:$0xf] %vm81_vm0, %v77_v54 }
  0x10   :  { %v72_v61 = vadd.f32 %v64_v57, %v56_v58  ;;  %87 = vst.msk [vmem:[%s251_s4 + $0x14] sm:$0xf] %vm81_vm0, %v78_v59  ;;  %v79_v62 = vmul.f32 0.25, %v71_v60 }
  0x12   :  { %v80_v63 = vmul.f32 0.25, %v72_v61  ;;  %88 = vst.msk [vmem:[%s251_s4 + $0x18] sm:$0xf] %vm81_vm0, %v79_v62 }
  0x14   :  { %89 = vst.msk [vmem:[%s251_s4 + $0x1c] sm:$0xf] %vm81_vm0, %v80_v63 }

// kernel: densenet_forward.21
= control target key start
LH: loop header
LB: loop body
LE: loop exit
PB: predicated region body
PF: predicated region fallthrough
CT: control target
= control target key end

     0   :  { %vm64_vm0 = vcmask 130048   ;;  %s251_s3 = inlined_call_operand.vmem [shape: bf16[16,16], index: 3, kind: input, shape index: {}]   ;;  %s252_s0 = inlined_call_operand.vmem [shape: f32[32,16], index: 0, kind: input, shape index: {}]   ;;  %s253_s1 = inlined_call_operand.vmem [shape: f32[1,16], index: 1, kind: input, shape index: {}]   ;;  %s254_s2 = inlined_call_operand.vmem [shape: f32[1,16], index: 2, kind: input, shape index: {}]   ;;  %s255_s4 = inlined_call_operand.vmem [shape: f32[1,16], index: 4, kind: input, shape index: {}]   ;;  %s256_s5 = inlined_call_operand.vmem [shape: f32[1,16], index: 5, kind: input, shape index: {}]   ;;  %s257_s6 = inlined_call_operand.vmem [shape: f32[32,16], index: 6, kind: output, shape index: {}]  }
   0x1   :  { %v170_v0 = vld [vmem:[%s251_s3] sm:$0xff]   ;;  %v25_v2 = vld [vmem:[%s252_s0 + $0x8] sm:$0xff]  ;;  %v26_v7 = vld [vmem:[%s252_s0 + $0x10] sm:$0xff] }
   0x2   :  { %v24_v1 = vld [vmem:[%s252_s0] sm:$0xff]  ;;  %164 = vmatprep.subr.bf16.mxu0 %v170_v0  ;;  %v27_v8 = vld [vmem:[%s252_s0 + $0x18] sm:$0xff] }
   0x3   :  { %v154_v3 = vld [vmem:[%s253_s1] ss:$0 sm:$0xff]  ;;  %165 = vmatpush3.bf16.msra.mxu0 %v170_v0 }
   0x4   :  { %v35_v4 = vmul.f32 %v154_v3, %v24_v1  ;;  %v36_v5 = vmul.f32 %v154_v3, %v25_v2  ;;  %v155_v6 = vld [vmem:[%s254_s2] ss:$0 sm:$0xff]  ;;  %v37_v9 = vmul.f32 %v154_v3, %v26_v7  ;;  %v38_v10 = vmul.f32 %v154_v3, %v27_v8 }
   0x5   :  { %v159_v21 = vld [vmem:[%s255_s4] ss:$0 sm:$0xff] }
   0x6   :  { %v46_v11 = vadd.f32 %v155_v6, %v35_v4  ;;  %v47_v12 = vadd.f32 %v155_v6, %v36_v5  ;;  %v48_v13 = vadd.f32 %v155_v6, %v37_v9  ;;  %v49_v14 = vadd.f32 %v155_v6, %v38_v10  ;;  %v160_v23 = vld [vmem:[%s256_s5] ss:$0 sm:$0xff] }
   0x8   :  { %v50_v15 = vmax.f32 %v46_v11, 0.0  ;;  %v51_v16 = vmax.f32 %v47_v12, 0.0  ;;  %v52_v17 = vmax.f32 %v48_v13, 0.0  ;;  %v53_v18 = vmax.f32 %v49_v14, 0.0 }
   0xa   :  { %v54_v19 = vpack.c.bf16 %v51_v16, %v50_v15  ;;  %v55_v20 = vpack.c.bf16 %v53_v18, %v52_v17 }
   0xc   :  { %166 = vmatprep.mubr.msk.bf16.mxu0 %vm64_vm0, %v54_v19 }
   0xd   :  { %167 = vmatmul.mubr.msk.bf16.vlgmr.msra.gmra.mrb[0].mxu0 %vm64_vm0, %v55_v20 }
  0xe0   :  { %v168_v22 = vpop.f32.mrb[0].mxu0 }
  0xe1   :  { %v129_v24 = vmul.f32 %v168_v22, %v159_v21  ;;  %v105_v25 = vpop.f32.mrb[1].mxu0 }
  0xe2   :  { %v127_v26 = vmul.f32 %v159_v21, %v105_v25  ;;  %v169_v27 = vpop.f32.mrb[2].mxu0 }
  0xe3   :  { %v140_v28 = vadd.f32 %v160_v23, %v129_v24  ;;  %v130_v29 = vmul.f32 %v169_v27, %v159_v21  ;;  %v108_v30 = vpop.f32.mrb[3].mxu0 }
  0xe4   :  { %v138_v31 = vadd.f32 %v160_v23, %v127_v26  ;;  %v128_v32 = vmul.f32 %v159_v21, %v108_v30 }
  0xe5   :  { %v144_v33 = vmax.f32 %v140_v28, 0.0  ;;  %v141_v34 = vadd.f32 %v160_v23, %v130_v29 }
  0xe6   :  { %v142_v35 = vmax.f32 %v138_v31, 0.0  ;;  %v139_v36 = vadd.f32 %v160_v23, %v128_v32 }
  0xe7   :  { %148 = vst.msk [vmem:[%s257_s6 + $0x10] sm:$0xff] %vm64_vm0, %v144_v33  ;;  %v145_v37 = vmax.f32 %v141_v34, 0.0 }
  0xe8   :  { %146 = vst.msk [vmem:[%s257_s6] sm:$0xff] %vm64_vm0, %v142_v35  ;;  %v143_v38 = vmax.f32 %v139_v36, 0.0 }
  0xe9   :  { %149 = vst.msk [vmem:[%s257_s6 + $0x18] sm:$0xff] %vm64_vm0, %v145_v37 }
  0xea   :  { %147 = vst.msk [vmem:[%s257_s6 + $0x8] sm:$0xff] %vm64_vm0, %v143_v38 }

// kernel: densenet_forward.22
= control target key start
LH: loop header
LB: loop body
LE: loop exit
PB: predicated region body
PF: predicated region fallthrough
CT: control target
= control target key end

     0   :  { %v200_v0 = vmov 0   ;;  %vm96_vm0 = vcmask 130048   ;;  %vm152_vm1 = vcmask 64512   ;;  %s279_s1 = inlined_call_operand.vmem [shape: bf16[144,8], index: 1, kind: input, shape index: {}]   ;;  %s280_s0 = inlined_call_operand.vmem [shape: f32[32,144], index: 0, kind: input, shape index: {}]   ;;  %s281_s2 = inlined_call_operand.vmem [shape: f32[32,8], index: 2, kind: output, shape index: {}]  }
   0x1   :  { %103 = vmatprep.subr.bf16.mxu0 %v200_v0  ;;  %172 = vmatprep.subr.bf16.mxu1 %v200_v0  ;;  %v191_v1 = vld [vmem:[%s279_s1] sm:$0xff]   ;;  %v192_v2 = vld [vmem:[%s279_s1 + $0x8] sm:$0xff]   ;;  %v193_v3 = vld [vmem:[%s279_s1 + $0x10] sm:$0xff]  }
   0x2   :  { %104 = vmatpush1.bf16.msra.mxu0 %v191_v1  ;;  %181 = vmatpush1.bf16.msra.mxu1 %v191_v1  ;;  %v13_v4 = vld [vmem:[%s280_s0 + $0x8] sm:$0xff]  ;;  %v15_v5 = vld [vmem:[%s280_s0 + $0x18] sm:$0xff]  ;;  %v195_v11 = vld [vmem:[%s279_s1 + $0x20] sm:$0xff]  }
   0x3   :  { %105 = vmatprep.subr.bf16.mxu0 %v200_v0  ;;  %173 = vmatprep.subr.bf16.mxu1 %v200_v0  ;;  %v17_v6 = vld [vmem:[%s280_s0 + $0x28] sm:$0xff]  ;;  %v194_v7 = vld [vmem:[%s279_s1 + $0x18] sm:$0xff]   ;;  %v21_v8 = vpack.c.bf16 %v15_v5, %v13_v4  ;;  %v197_v13 = vld [vmem:[%s279_s1 + $0x30] sm:$0xff]  }
   0x4   :  { %v19_v9 = vld [vmem:[%s280_s0 + $0x38] sm:$0xff]  ;;  %v196_v12 = vld [vmem:[%s279_s1 + $0x28] sm:$0xff]   ;;  %v199_v15 = vld [vmem:[%s279_s1 + $0x40] sm:$0xff]  }
   0x5   :  { %v23_v10 = vpack.c.bf16 %v19_v9, %v17_v6  ;;  %170 = vmatprep.mubr.msk.bf16.mxu0 %vm96_vm0, %v21_v8  ;;  %v198_v14 = vld [vmem:[%s279_s1 + $0x38] sm:$0xff]   ;;  %v12_v16 = vld [vmem:[%s280_s0] sm:$0xff]  ;;  %v14_v17 = vld [vmem:[%s280_s0 + $0x10] sm:$0xff] }
   0x6   :  { %106 = vmatpush1.bf16.msra.mxu0 %v192_v2  ;;  %182 = vmatpush1.bf16.msra.mxu1 %v192_v2  ;;  %v16_v18 = vld [vmem:[%s280_s0 + $0x20] sm:$0xff]  ;;  %v18_v19 = vld [vmem:[%s280_s0 + $0x30] sm:$0xff]  ;;  %v20_v20 = vpack.c.bf16 %v14_v17, %v12_v16 }
   0x7   :  { %107 = vmatprep.subr.bf16.mxu0 %v200_v0  ;;  %174 = vmatprep.subr.bf16.mxu1 %v200_v0  ;;  %v22_v21 = vpack.c.bf16 %v18_v19, %v16_v18 }
   0x8   :  { %171 = vmatprep.mubr.msk.bf16.mxu1 %vm96_vm0, %v23_v10 }
   0xa   :  { %108 = vmatpush1.bf16.msra.mxu0 %v193_v3  ;;  %183 = vmatpush1.bf16.msra.mxu1 %v193_v3 }
   0xb   :  { %109 = vmatprep.subr.bf16.mxu0 %v200_v0  ;;  %175 = vmatprep.subr.bf16.mxu1 %v200_v0 }
   0xe   :  { %110 = vmatpush1.bf16.msra.mxu0 %v194_v7  ;;  %184 = vmatpush1.bf16.msra.mxu1 %v194_v7 }
   0xf   :  { %111 = vmatprep.subr.bf16.mxu0 %v200_v0  ;;  %176 = vmatprep.subr.bf16.mxu1 %v200_v0 }
  0x12   :  { %112 = vmatpush1.bf16.msra.mxu0 %v195_v11  ;;  %185 = vmatpush1.bf16.msra.mxu1 %v195_v11 }
  0x13   :  { %113 = vmatprep.subr.bf16.mxu0 %v200_v0  ;;  %177 = vmatprep.subr.bf16.mxu1 %v200_v0 }
  0x16   :  { %114 = vmatpush1.bf16.msra.mxu0 %v196_v12  ;;  %186 = vmatpush1.bf16.msra.mxu1 %v196_v12 }
  0x17   :  { %115 = vmatprep.subr.bf16.mxu0 %v200_v0  ;;  %178 = vmatprep.subr.bf16.mxu1 %v200_v0 }
  0x1a   :  { %116 = vmatpush1.bf16.msra.mxu0 %v197_v13  ;;  %187 = vmatpush1.bf16.msra.mxu1 %v197_v13 }
  0x1b   :  { %117 = vmatprep.subr.bf16.mxu0 %v200_v0  ;;  %179 = vmatprep.subr.bf16.mxu1 %v200_v0 }
  0x1e   :  { %118 = vmatpush1.bf16.msra.mxu0 %v198_v14  ;;  %188 = vmatpush1.bf16.msra.mxu1 %v198_v14 }
  0x1f   :  { %119 = vmatprep.subr.bf16.mxu0 %v200_v0  ;;  %180 = vmatprep.subr.bf16.mxu1 %v200_v0 }
  0x22   :  { %120 = vmatpush1.bf16.msra.mxu0 %v199_v15  ;;  %189 = vmatpush1.bf16.msra.mxu1 %v199_v15 }
  0x25   :  { %136 = vmatmul.mubr.bf16.vlgmr.msra.gmra.mrb[0].mxu0 %v20_v20  ;;  %144 = vmatmul.mubr.bf16.vlgmr.msra.gmra.mrb[0].mxu1 %v22_v21 }
  0xf8   :  { %v137_v22 = vpop.f32.mrb[0].mxu0  ;;  %v145_v23 = vpop.f32.mrb[0].mxu1 }
  0xf9   :  { %153 = vst.msk [vmem:[%s281_s2] sm:$0xff] %vm152_vm1, %v137_v22  ;;  %155 = vst.msk [vmem:[%s281_s2 + $0x10] sm:$0xff] %vm152_vm1, %v145_v23  ;;  %v139_v24 = vpop.f32.mrb[1].mxu0  ;;  %v147_v25 = vpop.f32.mrb[1].mxu1 }
  0xfa   :  { %v140_v26 = vpop.f32.mrb[2].mxu0  ;;  %v148_v27 = vpop.f32.mrb[2].mxu1 }
  0xfb   :  { %154 = vst.msk [vmem:[%s281_s2 + $0x8] sm:$0xff] %vm152_vm1, %v140_v26  ;;  %156 = vst.msk [vmem:[%s281_s2 + $0x18] sm:$0xff] %vm152_vm1, %v148_v27  ;;  %v142_v28 = vpop.f32.mrb[3].mxu0  ;;  %v150_v29 = vpop.f32.mrb[3].mxu1 }

// kernel: densenet_forward.25
= control target key start
LH: loop header
LB: loop body
LE: loop exit
PB: predicated region body
PF: predicated region fallthrough
CT: control target
= control target key end

     0   :  { %v211_v1 = vmov 0.0   ;;  %vm212_vm0 = vmmov 0   ;;  %s288_s0 = inlined_call_operand.vmem [shape: f32[2,16,32], index: 0, kind: input, shape index: {}]   ;;  %s289_s1 = inlined_call_operand.vmem [shape: f32[1,1,32], index: 1, kind: input, shape index: {}]   ;;  %s290_s2 = inlined_call_operand.vmem [shape: f32[1,1,32], index: 2, kind: input, shape index: {}]   ;;  %s291_s3 = inlined_call_operand.vmem [shape: bf16[32,2], index: 3, kind: input, shape index: {}]   ;;  %s292_s4 = inlined_call_operand.vmem [shape: f32[1,2], index: 4, kind: input, shape index: {}]   ;;  %s293_s5 = inlined_call_operand.hbm [shape: f32[2,2], index: 5, kind: output, shape index: {}]  }
   0x1   :  { %v185_v0 = vld [vmem:[%s291_s3] sm:$0xff]   ;;  %174 = vmatprep.subr.bf16.mxu0 %v211_v1  ;;  %v186_v2 = vld [vmem:[%s291_s3 + $0x8] sm:$0xff]   ;;  %178 = vmatprep.mubr.msk.bf16.mxu0 %vm212_vm0, %v211_v1  ;;  %v24_v5 = vld [vmem:[%s288_s0 + $0x10] sm:$0xff] }
   0x2   :  { %175 = vmatpush3.bf16.msra.mxu0 %v185_v0  ;;  %v22_v3 = vld [vmem:[%s288_s0] sm:$0xff]  ;;  %v23_v4 = vld [vmem:[%s288_s0 + $0x8] sm:$0xff]  ;;  %v25_v6 = vld [vmem:[%s288_s0 + $0x18] sm:$0xff] }
   0x3   :  { %176 = vmatprep.subr.bf16.mxu0 %v211_v1  ;;  %v165_v7 = vld [vmem:[%s289_s1] ss:$0 sm:$0xff] }
   0x4   :  { %v166_v8 = vld [vmem:[%s290_s2] ss:$0 sm:$0xff]  ;;  %v33_v9 = vmul.f32 %v165_v7, %v22_v3  ;;  %v34_v10 = vmul.f32 %v165_v7, %v23_v4  ;;  %v35_v11 = vmul.f32 %v165_v7, %v24_v5  ;;  %v36_v12 = vmul.f32 %v165_v7, %v25_v6 }
   0x5   :  { %10 = vsyncpa [#allocation3], 0  ;;  %vm52_vm1 = vcmask 261120   ;;  %vm91_vm2 = vcmask 1041409   ;;  %v167_v47 = vld [vmem:[%s292_s4] ss:$0 sm:$0xff] }
   0x6   :  { %177 = vmatpush3.bf16.msra.mxu0 %v186_v2  ;;  %v44_v13 = vadd.f32 %v166_v8, %v33_v9  ;;  %v45_v14 = vadd.f32 %v166_v8, %v34_v10  ;;  %v46_v15 = vadd.f32 %v166_v8, %v35_v11  ;;  %v47_v16 = vadd.f32 %v166_v8, %v36_v12  ;;  %s213_s2 = smov [#allocation2]  }
   0x7   :  { %s157_s8 = sshll.u32 %s213_s2, 4  ;;  %vm149_vm3 = vcmask 9216   ;;  %s158_s8 = int_to_ptr.vmem [resolvable:$true] %s157_s8 }
   0x8   :  { %v48_v17 = vmax.f32 %v44_v13, 0.0  ;;  %v49_v18 = vmax.f32 %v45_v14, 0.0  ;;  %v50_v19 = vmax.f32 %v46_v15, 0.0  ;;  %v51_v20 = vmax.f32 %v47_v16, 0.0  ;;  %s187_s9 = scalar_lea.vmem %s158_s8, 32  ;;  %p192_p1 = scmp.lt.s32.totalorder %s158_s8, %s158_s8 }
   0x9   :  { %p188_p0 = scmp.ne.s32.totalorder %s158_s8, %s187_s9  ;;  %p193_p2 = scmp.lt.s32.totalorder %s187_s9, %s187_s9 }
   0xa   :  { %v53_v21 = vsel %vm52_vm1, %v48_v17, 0.0  ;;  %v54_v22 = vsel %vm52_vm1, %v49_v18, 0.0  ;;  %v62_v23 = vsel %vm52_vm1, %v50_v19, 0.0  ;;  %v63_v24 = vsel %vm52_vm1, %v51_v20, 0.0 }
   0xb   :  { %v55_v25 = vadd.f32 %v54_v22, %v53_v21  ;;  %v64_v26 = vadd.f32 %v63_v24, %v62_v23  ;;  %p194_p3 = por %p193_p2, %p192_p1 }
   0xd   :  { %v56_v27 = vrot.slane %v55_v25, 4  ;;  %v65_v28 = vrot.slane %v64_v26, 4  ;;  %p195_p4 = pnand %p194_p3, %p188_p0 }
   0xf   :  { %v57_v29 = vadd.f32 %v56_v27, %v55_v25  ;;  %v66_v30 = vadd.f32 %v65_v28, %v64_v26 }
  0x11   :  { %v58_v31 = vrot.slane %v57_v29, 2  ;;  %v67_v32 = vrot.slane %v66_v30, 2 }
  0x13   :  { %v59_v33 = vadd.f32 %v58_v31, %v57_v29  ;;  %v68_v34 = vadd.f32 %v67_v32, %v66_v30 }
  0x15   :  { %v60_v35 = vrot.slane %v59_v33, 1  ;;  %v69_v36 = vrot.slane %v68_v34, 1 }
  0x17   :  { %v61_v37 = vadd.f32 %v60_v35, %v59_v33  ;;  %v70_v38 = vadd.f32 %v69_v36, %v68_v34 }
  0x19   :  { %v72_v39 = vmul.f32 0.0625, %v61_v37  ;;  %v73_v40 = vmul.f32 0.0625, %v70_v38 }
  0x1b   :  { %v74_v41 = vpack.c.bf16 %v72_v39, %v72_v39  ;;  %v75_v42 = vpack.c.bf16 %v73_v40, %v73_v40 }
  0x1d   :  { %v89_v43 = vunpack.c.l.b16 %v74_v41  ;;  %v90_v44 = vunpack.c.l.b16 %v75_v42 }
  0x1f   :  { %v92_v45 = vsel %vm91_vm2, %v90_v44, %v89_v43 }
  0x20   :  { %v93_v46 = vpack.c.b16 %v92_v45, %v92_v45 }
  0x22   :  { %179 = vmatmul.mubr.msk.bf16.vlgmr.msra.gmra.mrb[0].mxu0 %vm52_vm1, %v93_v46 }
  0xf5   :  { %v143_v48 = vpop.f32.mrb[0].mxu0 }
  0xf6   :  { %v144_v49 = vadd.f32 %v167_v47, %v143_v48  ;;  %v180_v50 = vpop.f32.mrb[1].mxu0 }
  0xf7   :  { %v146_v51 = vpop.f32.mrb[2].mxu0 }
  0xf8   :  { %v181_v52 = vpop.f32.mrb[3].mxu0  ;;  %150 = vst.msk [vmem:[#allocation2] sm:$0x3] %vm149_vm3, %v144_v49 }
  0xf9   :  { %198 = shalt.err (!%p195_p4)
}
  0xfa   :  { %s199_s4 = scalar_lea.hbm %s293_s5, 32 }
  0xfb   :  { %p200_p5 = scmp.ne.s32.totalorder %s293_s5, %s199_s4  ;;  %p203_p6 = scmp.lt.u32.totalorder %s199_s4, %s293_s5 }
  0xfd   :  { %p205_p7 = pnand %p203_p6, %p200_p5 }
  0xff   :  { %208 = shalt.err (!%p205_p7)
}
 0x100   :  { %160 = dma.vmem_to_hbm [thread:$0]  %s158_s8, 32, %s293_s5, [#allocation3]  }
 0x101   :  { %209 = dma.done.wait [#allocation3], 32  }
 0x102   :  { %210 = vsyncadd [#allocation3], 4294967264 }
 0x103   :  { %164 = vsyncpa [#allocation3], 1 }

// kernel: densenet_forward.23
= control target key start
LH: loop header
LB: loop body
LE: loop exit
PB: predicated region body
PF: predicated region fallthrough
CT: control target
= control target key end

     0   :  { %vm75_vm0 = vcmask 1043456   ;;  %vm68_vm1 = vcmask 195584   ;;  %vm154_vm2 = vcmask 130048   ;;  %s263_s3 = inlined_call_operand.vmem [shape: bf16[24,16], index: 3, kind: input, shape index: {}]   ;;  %s264_s0 = inlined_call_operand.vmem [shape: f32[32,24], index: 0, kind: input, shape index: {}]   ;;  %s265_s1 = inlined_call_operand.vmem [shape: f32[1,24], index: 1, kind: input, shape index: {}]   ;;  %s266_s2 = inlined_call_operand.vmem [shape: f32[1,24], index: 2, kind: input, shape index: {}]   ;;  %s267_s4 = inlined_call_operand.vmem [shape: f32[1,16], index: 4, kind: input, shape index: {}]   ;;  %s268_s5 = inlined_call_operand.vmem [shape: f32[1,16], index: 5, kind: input, shape index: {}]   ;;  %s269_s6 = inlined_call_operand.vmem [shape: f32[32,16], index: 6, kind: output, shape index: {}]  }
   0x1   :  { %v184_v0 = vld [vmem:[%s263_s3] sm:$0xff]   ;;  %v185_v1 = vld [vmem:[%s263_s3 + $0x8] ss:$0 sps:$4 sm:$0xff]   ;;  %v26_v8 = vld [vmem:[%s264_s0 + $0x10] sm:$0xff] }
   0x2   :  { %v24_v2 = vld [vmem:[%s264_s0] sm:$0xff]  ;;  %v25_v3 = vld [vmem:[%s264_s0 + $0x8] sm:$0xff]  ;;  %175 = vmatprep.subr.bf16.mxu0 %v184_v0  ;;  %v27_v9 = vld [vmem:[%s264_s0 + $0x18] sm:$0xff]  ;;  %v77_v12 = vsel %vm75_vm0, %v185_v1, 0 }
   0x3   :  { %v163_v4 = vld [vmem:[%s265_s1] ss:$0 sm:$0xff]  ;;  %176 = vmatpush3.bf16.msra.mxu0 %v184_v0 }
   0x4   :  { %v164_v5 = vld [vmem:[%s266_s2] ss:$0 sm:$0xff]  ;;  %v35_v6 = vmul.f32 %v163_v4, %v24_v2  ;;  %v36_v7 = vmul.f32 %v163_v4, %v25_v3  ;;  %v37_v10 = vmul.f32 %v163_v4, %v26_v8  ;;  %v38_v11 = vmul.f32 %v163_v4, %v27_v9  ;;  %183 = vmatprep.subr.msk.bf16.mxu0 %vm75_vm0, %v185_v1 }
   0x5   :  { %v169_v23 = vld [vmem:[%s267_s4] ss:$0 sm:$0xff] }
   0x6   :  { %v46_v13 = vadd.f32 %v164_v5, %v35_v6  ;;  %v47_v14 = vadd.f32 %v164_v5, %v36_v7  ;;  %v48_v15 = vadd.f32 %v164_v5, %v37_v10  ;;  %v49_v16 = vadd.f32 %v164_v5, %v38_v11  ;;  %v170_v25 = vld [vmem:[%s268_s5] ss:$0 sm:$0xff] }
   0x7   :  { %178 = vmatpush3.bf16.msra.mxu0 %v77_v12 }
   0x8   :  { %v50_v17 = vmax.f32 %v46_v13, 0.0  ;;  %v51_v18 = vmax.f32 %v47_v14, 0.0  ;;  %v52_v19 = vmax.f32 %v48_v15, 0.0  ;;  %v53_v20 = vmax.f32 %v49_v16, 0.0 }
   0xa   :  { %v54_v21 = vpack.c.bf16 %v51_v18, %v50_v17  ;;  %v55_v22 = vpack.c.bf16 %v53_v20, %v52_v19 }
   0xc   :  { %179 = vmatprep.mubr.msk.bf16.mxu0 %vm68_vm1, %v54_v21 }
   0xd   :  { %180 = vmatmul.mubr.msk.bf16.vlgmr.msra.gmra.mrb[0].mxu0 %vm68_vm1, %v55_v22 }
  0xe0   :  { %v181_v24 = vpop.f32.mrb[0].mxu0 }
  0xe1   :  { %v137_v26 = vmul.f32 %v181_v24, %v169_v23  ;;  %v113_v27 = vpop.f32.mrb[1].mxu0 }
  0xe2   :  { %v135_v28 = vmul.f32 %v169_v23, %v113_v27  ;;  %v182_v29 = vpop.f32.mrb[2].mxu0 }
  0xe3   :  { %v148_v30 = vadd.f32 %v170_v25, %v137_v26  ;;  %v138_v31 = vmul.f32 %v182_v29, %v169_v23  ;;  %v116_v32 = vpop.f32.mrb[3].mxu0 }
  0xe4   :  { %v146_v33 = vadd.f32 %v170_v25, %v135_v28  ;;  %v136_v34 = vmul.f32 %v169_v23, %v116_v32 }
  0xe5   :  { %v152_v35 = vmax.f32 %v148_v30, 0.0  ;;  %v149_v36 = vadd.f32 %v170_v25, %v138_v31 }
  0xe6   :  { %v150_v37 = vmax.f32 %v146_v33, 0.0  ;;  %v147_v38 = vadd.f32 %v170_v25, %v136_v34 }
  0xe7   :  { %157 = vst.msk [vmem:[%s269_s6 + $0x10] sm:$0xff] %vm154_vm2, %v152_v35  ;;  %v153_v39 = vmax.f32 %v149_v36, 0.0 }
  0xe8   :  { %155 = vst.msk [vmem:[%s269_s6] sm:$0xff] %vm154_vm2, %v150_v37  ;;  %v151_v40 = vmax.f32 %v147_v38, 0.0 }
  0xe9   :  { %158 = vst.msk [vmem:[%s269_s6 + $0x18] sm:$0xff] %vm154_vm2, %v153_v39 }
  0xea   :  { %156 = vst.msk [vmem:[%s269_s6 + $0x8] sm:$0xff] %vm154_vm2, %v151_v40 }

</bundles_post_ra>
